<compile_context>
chip_gen: v6e
topology: v6e:2x2x1
jax: 0.10.0
libtpu: 0.0.40
codegen_flags: <defaults>
</compile_context>

<pallas_src>
import functools

import jax
import jax.numpy as jnp
from jax.experimental import pallas as pl
from jax.experimental.pallas import tpu as pltpu

_LANE = 128


def _vmem_plan():
    """Per-kernel scoped-VMEM limit and the planning budget underneath it."""
    try:
        cap = int(pltpu.get_tpu_info().vmem_capacity_bytes)
    except Exception:  # no device / unknown field -> conservative default
        cap = 64 * 1024 * 1024
    cap = max(cap, 32 * 1024 * 1024)
    limit = max(32 * 1024 * 1024, min(cap * 3 // 4, 96 * 1024 * 1024))
    budget = max(16 * 1024 * 1024, limit - 8 * 1024 * 1024)
    return limit, budget


_VMEM_LIMIT, _VMEM_BUDGET = _vmem_plan()


def _round_up(x, m):
    return (x + m - 1) // m * m


def _pad_last(a, target):
    pad = target - a.shape[-1]
    if pad <= 0:
        return a
    cfg = [(0, 0)] * (a.ndim - 1) + [(0, pad)]
    return jnp.pad(a, cfg)


# ----------------------------- Pallas kernels ------------------------------ #

def _mm_bn_kernel(x_ref, w_ref, sb_ref, o_ref, *, relu):
    """y = act((x @ w) * scale + bias).  bf16 MXU matmul, f32 accumulation."""
    y = jnp.dot(x_ref[...].astype(jnp.bfloat16), w_ref[...],
                preferred_element_type=jnp.float32)
    sb = sb_ref[...]
    y = y * sb[0:1, :] + sb[1:2, :]
    if relu:
        y = jnp.maximum(y, 0.0)
    o_ref[...] = y.astype(o_ref.dtype)


def _mm_bn_addt_kernel(x_ref, w_ref, sb_ref, xt_ref, o_ref):
    """conv1 + bn1 + relu + fused x_t add: y = relu((x@w)*s + b) + x_t."""
    y = jnp.dot(x_ref[...].astype(jnp.bfloat16), w_ref[...],
                preferred_element_type=jnp.float32)
    sb = sb_ref[...]
    y = jnp.maximum(y * sb[0:1, :] + sb[1:2, :], 0.0)
    y = y + xt_ref[...].astype(jnp.float32)
    o_ref[...] = y.astype(o_ref.dtype)


def _mm_bn_resmm_kernel(x_ref, w_ref, sb_ref, xr_ref, wr_ref, sbr_ref, o_ref):
    """Fused conv3 + residual conv: y = relu((x@w)*s+b + (xr@wr)*sr+br)."""
    y = jnp.dot(x_ref[...].astype(jnp.bfloat16), w_ref[...],
                preferred_element_type=jnp.float32)
    sb = sb_ref[...]
    y = y * sb[0:1, :] + sb[1:2, :]
    r = jnp.dot(xr_ref[...].astype(jnp.bfloat16), wr_ref[...],
                preferred_element_type=jnp.float32)
    sbr = sbr_ref[...]
    y = y + r * sbr[0:1, :] + sbr[1:2, :]
    o_ref[...] = jnp.maximum(y, 0.0).astype(o_ref.dtype)


def _mm_bn_resadd_kernel(x_ref, w_ref, sb_ref, r_ref, o_ref):
    """Fused conv3 + identity residual: y = relu((x@w)*s + b + r)."""
    y = jnp.dot(x_ref[...].astype(jnp.bfloat16), w_ref[...],
                preferred_element_type=jnp.float32)
    sb = sb_ref[...]
    y = y * sb[0:1, :] + sb[1:2, :] + r_ref[...].astype(jnp.float32)
    o_ref[...] = jnp.maximum(y, 0.0).astype(o_ref.dtype)


def _conv3x3_bn_kernel(xp_ref, w_ref, sb_ref, o_ref, *, th, wo):
    """3x3 / stride-1 / pad-1 conv + BN + ReLU without materialized im2col.

    xp_ref: (1, Hp, Wp, C)   spatially padded bf16 image (full, per batch)
    w_ref : (3, 3, C, Co)    bf16 weights
    sb_ref: (2, Co)          folded BN scale / bias (f32)
    o_ref : (1, th*wo, Co)   bf16 output rows [i*th, i*th+th) flattened over W
    """
    i = pl.program_id(1)
    acc = None
    for dh in range(3):                 # 9 taps, unrolled, accumulate in f32
        for dw in range(3):
            x = xp_ref[0, pl.ds(i * th + dh, th), pl.ds(dw, wo), :]
            x = x.reshape(th * wo, x.shape[-1])
            p = jnp.dot(x, w_ref[dh, dw], preferred_element_type=jnp.float32)
            acc = p if acc is None else acc + p
    sb = sb_ref[...]
    y = acc * sb[0:1, :] + sb[1:2, :]
    o_ref[0] = jnp.maximum(y, 0.0).astype(o_ref.dtype)


# --------------------------- pallas_call wrappers --------------------------- #

def _pick_tm(m, stream_row_bytes, temp_row_bytes, fixed_bytes,
             budget=None):
    """Largest row tile whose footprint (2x double-buffered streamed blocks +
    in-kernel temporaries + 2x constant blocks) fits the VMEM budget; prefers
    tiles giving >= 2 grid steps so v7x can use both TensorCores."""
    budget = _VMEM_BUDGET if budget is None else budget
    cands = (4096, 2048, 1024, 512, 256, 128, 64, 32, 16, 8)

    def fits(tm):
        return (2 * tm * stream_row_bytes + tm * temp_row_bytes
                + fixed_bytes) <= budget

    for tm in cands:                    # exact divisor, >= 2 grid steps
        if 2 * tm <= m and m % tm == 0 and fits(tm):
            return tm
    for tm in cands:                    # exact divisor, single step allowed
        if tm <= m and m % tm == 0 and fits(tm):
            return tm
    for tm in cands:                    # masked tail block
        if tm <= m and fits(tm):
            return tm
    return 8


def matmul_bn_act(x, w, sb, xt=None, relu=True, out_dtype=jnp.bfloat16):
    """x:[M,K], w:[K,N] bf16 (N%128==0), sb:[2,N] f32, xt optional [M,N]."""
    m, k = x.shape
    k2, n = w.shape
    assert k == k2 and n % _LANE == 0
    if xt is not None:
        assert relu and xt.shape == (m, n)
    xb = x.dtype.itemsize
    ob = jnp.dtype(out_dtype).itemsize
    stream = k * xb + n * ob + (n * xt.dtype.itemsize if xt is not None else 0)
    temps = 2 * n * 4 + k * 2           # f32 result + bf16 operand copy
    fixed = 2 * (k * n * 2 + 2 * n * 4)
    tm = _pick_tm(m, stream, temps, fixed)

    in_specs = [
        pl.BlockSpec((tm, k), lambda i: (i, 0)),
        pl.BlockSpec((k, n), lambda i: (0, 0)),
        pl.BlockSpec((2, n), lambda i: (0, 0)),
    ]
    args = [x, w, sb]
    if xt is None:
        kernel = functools.partial(_mm_bn_kernel, relu=relu)
    else:
        kernel = _mm_bn_addt_kernel
        in_specs.append(pl.BlockSpec((tm, n), lambda i: (i, 0)))
        args.append(xt)

    return pl.pallas_call(
        kernel,
        out_shape=jax.ShapeDtypeStruct((m, n), out_dtype),
        grid=(pl.cdiv(m, tm),),
        in_specs=in_specs,
        out_specs=pl.BlockSpec((tm, n), lambda i: (i, 0)),
        compiler_params=pltpu.CompilerParams(
            dimension_semantics=("parallel",),
            vmem_limit_bytes=_VMEM_LIMIT),
        cost_estimate=pl.CostEstimate(
            flops=2 * m * k * n, transcendentals=0,
            bytes_accessed=m * k * xb + k * n * 2 + m * n * ob),
    )(*args)


def matmul_bn_res_act(x2, w3, sb3, xr, wr, sbr):
    """Fused conv3 + residual-conv + BNs + add + ReLU.  Output f32."""
    m, k = x2.shape
    _, n = w3.shape
    mr, kr = xr.shape
    assert mr == m and n % _LANE == 0 and wr.shape == (kr, n)
    stream = k * x2.dtype.itemsize + kr * xr.dtype.itemsize + n * 4
    temps = 3 * n * 4 + k * 2 + kr * 2
    fixed = 2 * ((k + kr) * n * 2 + 2 * (2 * n * 4))
    tm = _pick_tm(m, stream, temps, fixed)
    return pl.pallas_call(
        _mm_bn_resmm_kernel,
        out_shape=jax.ShapeDtypeStruct((m, n), jnp.float32),
        grid=(pl.cdiv(m, tm),),
        in_specs=[
            pl.BlockSpec((tm, k), lambda i: (i, 0)),
            pl.BlockSpec((k, n), lambda i: (0, 0)),
            pl.BlockSpec((2, n), lambda i: (0, 0)),
            pl.BlockSpec((tm, kr), lambda i: (i, 0)),
            pl.BlockSpec((kr, n), lambda i: (0, 0)),
            pl.BlockSpec((2, n), lambda i: (0, 0)),
        ],
        out_specs=pl.BlockSpec((tm, n), lambda i: (i, 0)),
        compiler_params=pltpu.CompilerParams(
            dimension_semantics=("parallel",),
            vmem_limit_bytes=_VMEM_LIMIT),
        cost_estimate=pl.CostEstimate(
            flops=2 * m * (k + kr) * n, transcendentals=0,
            bytes_accessed=m * (k * 2 + kr * 4) + (k + kr) * n * 2
            + m * n * 4),
    )(x2, w3, sb3, xr, wr, sbr)


def matmul_bn_add_act(x2, w3, sb3, r):
    """Fused conv3 + BN + identity-residual add + ReLU.  Output f32."""
    m, k = x2.shape
    _, n = w3.shape
    assert r.shape == (m, n) and n % _LANE == 0
    stream = k * x2.dtype.itemsize + n * r.dtype.itemsize + n * 4
    temps = 2 * n * 4 + k * 2
    fixed = 2 * (k * n * 2 + 2 * n * 4)
    tm = _pick_tm(m, stream, temps, fixed)
    return pl.pallas_call(
        _mm_bn_resadd_kernel,
        out_shape=jax.ShapeDtypeStruct((m, n), jnp.float32),
        grid=(pl.cdiv(m, tm),),
        in_specs=[
            pl.BlockSpec((tm, k), lambda i: (i, 0)),
            pl.BlockSpec((k, n), lambda i: (0, 0)),
            pl.BlockSpec((2, n), lambda i: (0, 0)),
            pl.BlockSpec((tm, n), lambda i: (i, 0)),
        ],
        out_specs=pl.BlockSpec((tm, n), lambda i: (i, 0)),
        compiler_params=pltpu.CompilerParams(
            dimension_semantics=("parallel",),
            vmem_limit_bytes=_VMEM_LIMIT),
        cost_estimate=pl.CostEstimate(
            flops=2 * m * k * n, transcendentals=0,
            bytes_accessed=m * k * 2 + k * n * 2 + m * n * (4 + 4)),
    )(x2, w3, sb3, r)


def _plan_conv3x3(nb, hp, wp, c, co, budget=None):
    """Pick a row tile for the whole-image-resident 3x3 kernel, or None if the
    (double-buffered bf16) image + weights + output block + temporaries cannot
    fit the VMEM budget.  Prefers >= 2 total grid steps (v7x dual-TC)."""
    budget = _VMEM_BUDGET if budget is None else budget
    ho, wo = hp - 2, wp - 2
    fixed = 2 * hp * wp * c * 2 + 2 * (9 * c * co * 2) + 2 * (2 * co * 4)

    def foot(th):
        out_blk = 2 * th * wo * co * 2                 # bf16 out, 2x buffered
        temps = th * wo * (2 * c * 2 + 2 * co * 4)     # tap slice + f32 acc/y
        return fixed + out_blk + temps

    best = None
    for th in range(ho, 0, -1):
        if ho % th:
            continue
        if th != ho and (th * wo) % 8:
            continue
        if foot(th) > budget:
            continue
        if best is None:
            best = th
        if nb * (ho // th) >= 2:
            return th
    return best


def conv3x3_bn_act(h1p, w2, sb2, th):
    """Stride-1 3x3 conv + BN + ReLU.  h1p: [N, H+2, W+2, C] bf16 pre-padded,
    w2: [3,3,C,Co] bf16, sb2: [2,Co] f32.  Returns [N, H*W, Co] bf16."""
    n, hp, wp, c = h1p.shape
    co = w2.shape[-1]
    assert c % _LANE == 0 and co % _LANE == 0
    ho, wo = hp - 2, wp - 2
    assert ho % th == 0
    return pl.pallas_call(
        functools.partial(_conv3x3_bn_kernel, th=th, wo=wo),
        out_shape=jax.ShapeDtypeStruct((n, ho * wo, co), jnp.bfloat16),
        grid=(n, ho // th),
        in_specs=[
            pl.BlockSpec((1, hp, wp, c), lambda b, i: (b, 0, 0, 0)),
            pl.BlockSpec((3, 3, c, co), lambda b, i: (0, 0, 0, 0)),
            pl.BlockSpec((2, co), lambda b, i: (0, 0)),
        ],
        out_specs=pl.BlockSpec((1, th * wo, co), lambda b, i: (b, i, 0)),
        compiler_params=pltpu.CompilerParams(
            dimension_semantics=("parallel", "parallel"),
            vmem_limit_bytes=_VMEM_LIMIT),
        cost_estimate=pl.CostEstimate(
            flops=2 * n * ho * wo * 9 * c * co, transcendentals=0,
            bytes_accessed=n * hp * wp * c * 2 + 9 * c * co * 2
            + n * ho * wo * co * 2),
    )(h1p, w2, sb2)


# ------------------------------- JAX glue ---------------------------------- #

def _fold_bn(bn, c_pad, eps=1e-6):
    gamma, beta, mean, var = bn
    scale = gamma / jnp.sqrt(var + eps)
    bias = beta - mean * scale
    sb = jnp.stack([scale, bias], axis=0).astype(jnp.float32)   # (2, C)
    return _pad_last(sb, c_pad)                                  # (2, Cp)


def _prep_w_1x1(w, kin_p, kout_p):
    cin, cout = w.shape[2], w.shape[3]
    w2 = w.reshape(cin, cout)
    w2 = jnp.pad(w2, ((0, kin_p - cin), (0, kout_p - cout)))
    return w2.astype(jnp.bfloat16)


def _prep_w_3x3(w, kin_p, kout_p):
    cin, cout = w.shape[2], w.shape[3]
    wp = jnp.pad(w, ((0, 0), (0, 0), (0, kin_p - cin), (0, kout_p - cout)))
    return wp.astype(jnp.bfloat16)


def _im2col_3x3(x, stride):
    """Fallback (stride > 1 or image too large for VMEM residency).
    x: [N,H,W,C] -> [N,Ho,Wo,9C]."""
    n, h, w, c = x.shape
    ho = (h + 2 - 3) // stride + 1
    wo = (w + 2 - 3) // stride + 1
    xp = jnp.pad(x, ((0, 0), (1, 1), (1, 1), (0, 0)))
    cols = []
    for dh in range(3):
        for dw in range(3):
            cols.append(xp[:, dh:dh + (ho - 1) * stride + 1:stride,
                           dw:dw + (wo - 1) * stride + 1:stride, :])
    return jnp.concatenate(cols, axis=-1), ho, wo


def conv_block_forward(x_nchw, params, stride=1, res_conv=False, x_t=None,
                       return_x_2=True):
    x = jnp.transpose(x_nchw, (0, 2, 3, 1)).astype(jnp.float32)   # -> NHWC
    n, h, w, cin = x.shape
    med = params["w1"].shape[-1]
    cout = params["w3"].shape[-1]
    medp = _round_up(med, _LANE)       # lane-dense intermediate channels
    coutp = _round_up(cout, _LANE)     # lane-dense output channels

    # conv1 (1x1) + bn1 + relu (+ fused x_t add)  ->  bf16, medp channels
    w1 = _prep_w_1x1(params["w1"], cin, medp)
    sb1 = _fold_bn(params["bn1"], medp)
    xt2d = None
    if x_t is not None:
        x_t_nhwc = jnp.transpose(x_t, (0, 2, 3, 1)).astype(jnp.float32)
        xt2d = _pad_last(x_t_nhwc, medp).reshape(n * h * w, medp)
    h1 = matmul_bn_act(x.reshape(n * h * w, cin), w1, sb1, xt=xt2d,
                       relu=True, out_dtype=jnp.bfloat16)
    h1 = h1.reshape(n, h, w, medp)

    # conv2 (3x3, pad 1, stride) + bn2 + relu  ->  x2 bf16, medp channels
    sb2 = _fold_bn(params["bn2"], medp)
    th = _plan_conv3x3(n, h + 2, w + 2, medp, medp) if stride == 1 else None
    if th is not None:
        w2 = _prep_w_3x3(params["w2"], medp, medp)
        # TODO(synk): the 1-pixel spatial pad is still an XLA pass over the
        # (bf16) h1; a halo-DMA kernel would fuse it away.
        h1p = jnp.pad(h1, ((0, 0), (1, 1), (1, 1), (0, 0)))
        x2 = conv3x3_bn_act(h1p, w2, sb2, th)                 # [N, H*W, medp]
        ho, wo = h, w
        x2f = x2.reshape(n * ho * wo, medp)
    else:
        # TODO(synk): stride>1 (or VMEM-overflow) path still materializes the
        # 9x im2col tensor; a strided / halo-slab in-kernel gather would
        # remove it.
        patches, ho, wo = _im2col_3x3(h1[..., :med], stride)
        w2k = _pad_last(params["w2"].reshape(9 * med, med),
                        medp).astype(jnp.bfloat16)
        x2f = matmul_bn_act(patches.reshape(n * ho * wo, 9 * med), w2k, sb2,
                            relu=True, out_dtype=jnp.bfloat16)
    m2 = n * ho * wo

    # conv3 (1x1) + bn3 + residual (+BN) + relu, all in one fused kernel
    sb3 = _fold_bn(params["bn3"], coutp)
    w3 = _prep_w_1x1(params["w3"], medp, coutp)
    if res_conv:
        sbr = _fold_bn(params["bnr"], coutp)
        wr = _prep_w_1x1(params["wr"], cin, coutp)
        xr = x[:, ::stride, ::stride, :].reshape(m2, cin)
        out = matmul_bn_res_act(x2f, w3, sb3, xr, wr, sbr)
    else:
        assert stride == 1 and cin == cout, (
            "identity residual requires stride == 1 and cin == cout")
        r = _pad_last(x.reshape(m2, cin), coutp)
        out = matmul_bn_add_act(x2f, w3, sb3, r)

    out = out.reshape(n, ho, wo, coutp)[..., :cout]
    out_nchw = jnp.transpose(out, (0, 3, 1, 2))
    if not return_x_2:
        return out_nchw
    x2_nhwc = x2f.reshape(n, ho, wo, medp)[..., :med].astype(jnp.float32)
    x2_nchw = jnp.transpose(x2_nhwc, (0, 3, 1, 2))
    return out_nchw, x2_nchw


# --------------------------- parameter init -------------------------------- #

def init_params(key, in_channels, out_channels, res_conv=False):
    expansion = 4
    med = out_channels // expansion
    keys = jax.random.split(key, 8)

    def conv_w(k, cin, cout, kh=1, kw=1):
        fan_in = cin * kh * kw
        return jax.random.normal(k, (kh, kw, cin, cout), jnp.float32) / jnp.sqrt(fan_in)

    def bn_p(k, c):
        k1, k2, k3, k4 = jax.random.split(k, 4)
        gamma = 1.0 + 0.1 * jax.random.normal(k1, (c,), jnp.float32)
        beta = 0.1 * jax.random.normal(k2, (c,), jnp.float32)
        mean = 0.1 * jax.random.normal(k3, (c,), jnp.float32)
        var = jax.nn.softplus(jax.random.normal(k4, (c,), jnp.float32)) + 0.5
        return gamma, beta, mean, var

    params = {
        "w1": conv_w(keys[0], in_channels, med, 1, 1),
        "bn1": bn_p(keys[1], med),
        "w2": conv_w(keys[2], med, med, 3, 3),
        "bn2": bn_p(keys[3], med),
        "w3": conv_w(keys[4], med, out_channels, 1, 1),
        "bn3": bn_p(keys[5], out_channels),
    }
    if res_conv:
        params["wr"] = conv_w(keys[6], in_channels, out_channels, 1, 1)
        params["bnr"] = bn_p(keys[7], out_channels)
    return params


# ---------------------------- pure-JAX reference ---------------------------- #

def reference_forward(x_nchw, params, stride=1, res_conv=False):
    x = jnp.transpose(x_nchw, (0, 2, 3, 1))

    def conv(inp, w, s=1, pad=0):
        return jax.lax.conv_general_dilated(
            inp, w, (s, s), [(pad, pad), (pad, pad)],
            dimension_numbers=("NHWC", "HWIO", "NHWC"),
            precision=jax.lax.Precision.HIGHEST)

    def bn(inp, p):
        g, b, m, v = p
        return (inp - m) / jnp.sqrt(v + 1e-6) * g + b

    h = jax.nn.relu(bn(conv(x, params["w1"]), params["bn1"]))
    x2 = jax.nn.relu(bn(conv(h, params["w2"], stride, 1), params["bn2"]))
    y = bn(conv(x2, params["w3"]), params["bn3"])
    if res_conv:
        r = bn(conv(x, params["wr"], stride), params["bnr"])
    else:
        r = x
    out = jax.nn.relu(y + r)
    return jnp.transpose(out, (0, 3, 1, 2)), jnp.transpose(x2, (0, 3, 1, 2))


# ----------------------------------- main ----------------------------------- #

if __name__ == "__main__":
    key = jax.random.PRNGKey(0)
    k_x, k_p = jax.random.split(key)

    batch, in_channels, out_channels, spatial = 2, 16, 32, 16
    stride, res_conv = 1, True

    x = jax.random.normal(k_x, (batch, in_channels, spatial, spatial), jnp.float32)
    params = init_params(k_p, in_channels, out_channels, res_conv=res_conv)

    fwd = jax.jit(functools.partial(conv_block_forward, stride=stride,
                                    res_conv=res_conv, return_x_2=True))
    out, x2 = fwd(x, params)
    jax.block_until_ready((out, x2))

    ref_out, ref_x2 = reference_forward(x, params, stride=stride, res_conv=res_conv)
    assert out.shape == ref_out.shape and x2.shape == ref_x2.shape
    # bf16 matmul operands / bf16 intermediates vs the f32 HIGHEST reference.
    assert jnp.allclose(out, ref_out, rtol=3e-2, atol=3e-2)
    assert jnp.allclose(x2, ref_x2, rtol=3e-2, atol=3e-2)

    print("KERNEL_OK")
</pallas_src>

<mosaic_0001>
module attributes {stable_mosaic.version = 11 : i64} {
  func.func @_mm_bn_kernel(%arg0: i32, %arg1: memref<256x16xf32, #tpu.memory_space<vmem>>, %arg2: memref<16x128xbf16, #tpu.memory_space<vmem>>, %arg3: memref<2x128xf32, #tpu.memory_space<vmem>>, %arg4: memref<256x128xbf16, #tpu.memory_space<vmem>>) attributes {dimension_semantics = [#tpu.dimension_semantics<parallel>], iteration_bounds = array<i64: 2>, scalar_prefetch = 0 : i64, scratch_operands = 0 : i64, tpu.core_type = #tpu.core_type<tc>, window_params = [{transform_indices = @transform_0, window_bounds = array<i64: 256, 16>}, {pipeline_mode = #tpu.pipeline_mode<synchronous>, transform_indices = @transform_1, window_bounds = array<i64: 16, 128>}, {pipeline_mode = #tpu.pipeline_mode<synchronous>, transform_indices = @transform_2, window_bounds = array<i64: 2, 128>}, {transform_indices = @transform_3, window_bounds = array<i64: 256, 128>}]} {
    %c0 = arith.constant 0 : index
    %c0_0 = arith.constant 0 : index
    %0 = vector.load %arg1[%c0, %c0_0] : memref<256x16xf32, #tpu.memory_space<vmem>>, vector<256x16xf32>
    %1 = arith.truncf %0 : vector<256x16xf32> to vector<256x16xbf16>
    %c0_1 = arith.constant 0 : index
    %c0_2 = arith.constant 0 : index
    %2 = vector.load %arg2[%c0_1, %c0_2] : memref<16x128xbf16, #tpu.memory_space<vmem>>, vector<16x128xbf16>
    %cst = arith.constant dense<0.000000e+00> : vector<256x128xf32>
    %3 = tpu.matmul %1, %2, %cst {dimension_numbers = #tpu.dot_dimension_numbers<[1], [0], [0], [1], [0, 0, 1, 1], [], []>} : vector<256x16xbf16>, vector<16x128xbf16>, vector<256x128xf32> -> vector<256x128xf32>
    %c0_3 = arith.constant 0 : index
    %c0_4 = arith.constant 0 : index
    %4 = vector.load %arg3[%c0_3, %c0_4] : memref<2x128xf32, #tpu.memory_space<vmem>>, vector<2x128xf32>
    %5 = vector.extract_strided_slice %4 {offsets = [0, 0], sizes = [1, 128], strides = [1, 1]} : vector<2x128xf32> to vector<1x128xf32>
    %6 = vector.broadcast %5 : vector<1x128xf32> to vector<256x128xf32>
    %7 = arith.mulf %3, %6 : vector<256x128xf32>
    %8 = vector.extract_strided_slice %4 {offsets = [1, 0], sizes = [1, 128], strides = [1, 1]} : vector<2x128xf32> to vector<1x128xf32>
    %9 = vector.broadcast %8 : vector<1x128xf32> to vector<256x128xf32>
    %10 = arith.addf %7, %9 : vector<256x128xf32>
    %cst_5 = arith.constant 0.000000e+00 : f32
    %11 = vector.broadcast %cst_5 : f32 to vector<256x128xf32>
    %12 = arith.maximumf %10, %11 : vector<256x128xf32>
    %13 = arith.truncf %12 : vector<256x128xf32> to vector<256x128xbf16>
    %c0_6 = arith.constant 0 : index
    %c0_7 = arith.constant 0 : index
    %14 = vector.load %arg4[%c0_6, %c0_7] : memref<256x128xbf16, #tpu.memory_space<vmem>>, vector<256x128xbf16>
    tpu.vector_store %arg4[%c0_6, %c0_7], %13 {strides = array<i32>} : memref<256x128xbf16, #tpu.memory_space<vmem>>, vector<256x128xbf16>,
    return
  }
  func.func @transform_0(%arg0: i32) -> (i32, i32) {
    %c0_i32 = arith.constant 0 : i32
    %c0_i32_0 = arith.constant 0 : i32
    return %arg0, %c0_i32 : i32, i32
  }
  func.func @transform_1(%arg0: i32) -> (i32, i32) {
    %c0_i32 = arith.constant 0 : i32
    %c0_i32_0 = arith.constant 0 : i32
    %c0_i32_1 = arith.constant 0 : i32
    return %c0_i32, %c0_i32_0 : i32, i32
  }
  func.func @transform_2(%arg0: i32) -> (i32, i32) {
    %c0_i32 = arith.constant 0 : i32
    %c0_i32_0 = arith.constant 0 : i32
    %c0_i32_1 = arith.constant 0 : i32
    return %c0_i32, %c0_i32_0 : i32, i32
  }
  func.func @transform_3(%arg0: i32) -> (i32, i32) {
    %c0_i32 = arith.constant 0 : i32
    %c0_i32_0 = arith.constant 0 : i32
    return %arg0, %c0_i32 : i32, i32
  }
}

module attributes {stable_mosaic.version = 11 : i64} {
  func.func @_conv3x3_bn_kernel(%arg0: i32, %arg1: i32, %arg2: memref<1x18x18x128xbf16, #tpu.memory_space<vmem>>, %arg3: memref<3x3x128x128xbf16, #tpu.memory_space<vmem>>, %arg4: memref<2x128xf32, #tpu.memory_space<vmem>>, %arg5: memref<1x256x128xbf16, #tpu.memory_space<vmem>>) attributes {dimension_semantics = [#tpu.dimension_semantics<parallel>, #tpu.dimension_semantics<parallel>], iteration_bounds = array<i64: 2, 1>, scalar_prefetch = 0 : i64, scratch_operands = 0 : i64, tpu.core_type = #tpu.core_type<tc>, window_params = [{transform_indices = @transform_0, window_bounds = array<i64: 1, 18, 18, 128>}, {pipeline_mode = #tpu.pipeline_mode<synchronous>, transform_indices = @transform_1, window_bounds = array<i64: 3, 3, 128, 128>}, {pipeline_mode = #tpu.pipeline_mode<synchronous>, transform_indices = @transform_2, window_bounds = array<i64: 2, 128>}, {transform_indices = @transform_3, window_bounds = array<i64: 1, 256, 128>}]} {
    %c16_i32 = arith.constant 16 : i32
    %0 = arith.muli %arg1, %c16_i32 : i32
    %c0_i32 = arith.constant 0 : i32
    %1 = arith.addi %0, %c0_i32 : i32
    %c0 = arith.constant 0 : index
    %2 = arith.index_cast %1 : i32 to index
    %c0_0 = arith.constant 0 : index
    %c0_1 = arith.constant 0 : index
    %3 = vector.load %arg2[%c0, %2, %c0_0, %c0_1] : memref<1x18x18x128xbf16, #tpu.memory_space<vmem>>, vector<1x16x16x128xbf16>
    %4 = vector.shape_cast %3 : vector<1x16x16x128xbf16> to vector<16x16x128xbf16>
    %5 = vector.shape_cast %4 : vector<16x16x128xbf16> to vector<256x128xbf16>
    %c0_2 = arith.constant 0 : index
    %c0_3 = arith.constant 0 : index
    %c0_4 = arith.constant 0 : index
    %c0_5 = arith.constant 0 : index
    %6 = vector.load %arg3[%c0_2, %c0_3, %c0_4, %c0_5] : memref<3x3x128x128xbf16, #tpu.memory_space<vmem>>, vector<1x1x128x128xbf16>
    %7 = vector.shape_cast %6 : vector<1x1x128x128xbf16> to vector<128x128xbf16>
    %cst = arith.constant dense<0.000000e+00> : vector<256x128xf32>
    %8 = tpu.matmul %5, %7, %cst {dimension_numbers = #tpu.dot_dimension_numbers<[1], [0], [0], [1], [0, 0, 1, 1], [], []>} : vector<256x128xbf16>, vector<128x128xbf16>, vector<256x128xf32> -> vector<256x128xf32>
    %c16_i32_6 = arith.constant 16 : i32
    %9 = arith.muli %arg1, %c16_i32_6 : i32
    %c0_i32_7 = arith.constant 0 : i32
    %10 = arith.addi %9, %c0_i32_7 : i32
    %c0_8 = arith.constant 0 : index
    %11 = arith.index_cast %10 : i32 to index
    %c1 = arith.constant 1 : index
    %c0_9 = arith.constant 0 : index
    %12 = vector.load %arg2[%c0_8, %11, %c1, %c0_9] : memref<1x18x18x128xbf16, #tpu.memory_space<vmem>>, vector<1x16x16x128xbf16>
    %13 = vector.shape_cast %12 : vector<1x16x16x128xbf16> to vector<16x16x128xbf16>
    %14 = vector.shape_cast %13 : vector<16x16x128xbf16> to vector<256x128xbf16>
    %c0_10 = arith.constant 0 : index
    %c1_11 = arith.constant 1 : index
    %c0_12 = arith.constant 0 : index
    %c0_13 = arith.constant 0 : index
    %15 = vector.load %arg3[%c0_10, %c1_11, %c0_12, %c0_13] : memref<3x3x128x128xbf16, #tpu.memory_space<vmem>>, vector<1x1x128x128xbf16>
    %16 = vector.shape_cast %15 : vector<1x1x128x128xbf16> to vector<128x128xbf16>
    %cst_14 = arith.constant dense<0.000000e+00> : vector<256x128xf32>
    %17 = tpu.matmul %14, %16, %cst_14 {dimension_numbers = #tpu.dot_dimension_numbers<[1], [0], [0], [1], [0, 0, 1, 1], [], []>} : vector<256x128xbf16>, vector<128x128xbf16>, vector<256x128xf32> -> vector<256x128xf32>
    %18 = arith.addf %8, %17 : vector<256x128xf32>
    %c16_i32_15 = arith.constant 16 : i32
    %19 = arith.muli %arg1, %c16_i32_15 : i32
    %c0_i32_16 = arith.constant 0 : i32
    %20 = arith.addi %19, %c0_i32_16 : i32
    %c0_17 = arith.constant 0 : index
    %21 = arith.index_cast %20 : i32 to index
    %c2 = arith.constant 2 : index
    %c0_18 = arith.constant 0 : index
    %22 = vector.load %arg2[%c0_17, %21, %c2, %c0_18] : memref<1x18x18x128xbf16, #tpu.memory_space<vmem>>, vector<1x16x16x128xbf16>
    %23 = vector.shape_cast %22 : vector<1x16x16x128xbf16> to vector<16x16x128xbf16>
    %24 = vector.shape_cast %23 : vector<16x16x128xbf16> to vector<256x128xbf16>
    %c0_19 = arith.constant 0 : index
    %c2_20 = arith.constant 2 : index
    %c0_21 = arith.constant 0 : index
    %c0_22 = arith.constant 0 : index
    %25 = vector.load %arg3[%c0_19, %c2_20, %c0_21, %c0_22] : memref<3x3x128x128xbf16, #tpu.memory_space<vmem>>, vector<1x1x128x128xbf16>
    %26 = vector.shape_cast %25 : vector<1x1x128x128xbf16> to vector<128x128xbf16>
    %cst_23 = arith.constant dense<0.000000e+00> : vector<256x128xf32>
    %27 = tpu.matmul %24, %26, %cst_23 {dimension_numbers = #tpu.dot_dimension_numbers<[1], [0], [0], [1], [0, 0, 1, 1], [], []>} : vector<256x128xbf16>, vector<128x128xbf16>, vector<256x128xf32> -> vector<256x128xf32>
    %28 = arith.addf %18, %27 : vector<256x128xf32>
    %c16_i32_24 = arith.constant 16 : i32
    %29 = arith.muli %arg1, %c16_i32_24 : i32
    %c1_i32 = arith.constant 1 : i32
    %30 = arith.addi %29, %c1_i32 : i32
    %c0_25 = arith.constant 0 : index
    %31 = arith.index_cast %30 : i32 to index
    %c0_26 = arith.constant 0 : index
    %c0_27 = arith.constant 0 : index
    %32 = vector.load %arg2[%c0_25, %31, %c0_26, %c0_27] : memref<1x18x18x128xbf16, #tpu.memory_space<vmem>>, vector<1x16x16x128xbf16>
    %33 = vector.shape_cast %32 : vector<1x16x16x128xbf16> to vector<16x16x128xbf16>
    %34 = vector.shape_cast %33 : vector<16x16x128xbf16> to vector<256x128xbf16>
    %c1_28 = arith.constant 1 : index
    %c0_29 = arith.constant 0 : index
    %c0_30 = arith.constant 0 : index
    %c0_31 = arith.constant 0 : index
    %35 = vector.load %arg3[%c1_28, %c0_29, %c0_30, %c0_31] : memref<3x3x128x128xbf16, #tpu.memory_space<vmem>>, vector<1x1x128x128xbf16>
    %36 = vector.shape_cast %35 : vector<1x1x128x128xbf16> to vector<128x128xbf16>
    %cst_32 = arith.constant dense<0.000000e+00> : vector<256x128xf32>
    %37 = tpu.matmul %34, %36, %cst_32 {dimension_numbers = #tpu.dot_dimension_numbers<[1], [0], [0], [1], [0, 0, 1, 1], [], []>} : vector<256x128xbf16>, vector<128x128xbf16>, vector<256x128xf32> -> vector<256x128xf32>
    %38 = arith.addf %28, %37 : vector<256x128xf32>
    %c16_i32_33 = arith.constant 16 : i32
    %39 = arith.muli %arg1, %c16_i32_33 : i32
    %c1_i32_34 = arith.constant 1 : i32
    %40 = arith.addi %39, %c1_i32_34 : i32
    %c0_35 = arith.constant 0 : index
    %41 = arith.index_cast %40 : i32 to index
    %c1_36 = arith.constant 1 : index
    %c0_37 = arith.constant 0 : index
    %42 = vector.load %arg2[%c0_35, %41, %c1_36, %c0_37] : memref<1x18x18x128xbf16, #tpu.memory_space<vmem>>, vector<1x16x16x128xbf16>
    %43 = vector.shape_cast %42 : vector<1x16x16x128xbf16> to vector<16x16x128xbf16>
    %44 = vector.shape_cast %43 : vector<16x16x128xbf16> to vector<256x128xbf16>
    %c1_38 = arith.constant 1 : index
    %c1_39 = arith.constant 1 : index
    %c0_40 = arith.constant 0 : index
    %c0_41 = arith.constant 0 : index
    %45 = vector.load %arg3[%c1_38, %c1_39, %c0_40, %c0_41] : memref<3x3x128x128xbf16, #tpu.memory_space<vmem>>, vector<1x1x128x128xbf16>
    %46 = vector.shape_cast %45 : vector<1x1x128x128xbf16> to vector<128x128xbf16>
    %cst_42 = arith.constant dense<0.000000e+00> : vector<256x128xf32>
    %47 = tpu.matmul %44, %46, %cst_42 {dimension_numbers = #tpu.dot_dimension_numbers<[1], [0], [0], [1], [0, 0, 1, 1], [], []>} : vector<256x128xbf16>, vector<128x128xbf16>, vector<256x128xf32> -> vector<256x128xf32>
    %48 = arith.addf %38, %47 : vector<256x128xf32>
    %c16_i32_43 = arith.constant 16 : i32
    %49 = arith.muli %arg1, %c16_i32_43 : i32
    %c1_i32_44 = arith.constant 1 : i32
    %50 = arith.addi %49, %c1_i32_44 : i32
    %c0_45 = arith.constant 0 : index
    %51 = arith.index_cast %50 : i32 to index
    %c2_46 = arith.constant 2 : index
    %c0_47 = arith.constant 0 : index
    %52 = vector.load %arg2[%c0_45, %51, %c2_46, %c0_47] : memref<1x18x18x128xbf16, #tpu.memory_space<vmem>>, vector<1x16x16x128xbf16>
    %53 = vector.shape_cast %52 : vector<1x16x16x128xbf16> to vector<16x16x128xbf16>
    %54 = vector.shape_cast %53 : vector<16x16x128xbf16> to vector<256x128xbf16>
    %c1_48 = arith.constant 1 : index
    %c2_49 = arith.constant 2 : index
    %c0_50 = arith.constant 0 : index
    %c0_51 = arith.constant 0 : index
    %55 = vector.load %arg3[%c1_48, %c2_49, %c0_50, %c0_51] : memref<3x3x128x128xbf16, #tpu.memory_space<vmem>>, vector<1x1x128x128xbf16>
    %56 = vector.shape_cast %55 : vector<1x1x128x128xbf16> to vector<128x128xbf16>
    %cst_52 = arith.constant dense<0.000000e+00> : vector<256x128xf32>
    %57 = tpu.matmul %54, %56, %cst_52 {dimension_numbers = #tpu.dot_dimension_numbers<[1], [0], [0], [1], [0, 0, 1, 1], [], []>} : vector<256x128xbf16>, vector<128x128xbf16>, vector<256x128xf32> -> vector<256x128xf32>
    %58 = arith.addf %48, %57 : vector<256x128xf32>
    %c16_i32_53 = arith.constant 16 : i32
    %59 = arith.muli %arg1, %c16_i32_53 : i32
    %c2_i32 = arith.constant 2 : i32
    %60 = arith.addi %59, %c2_i32 : i32
    %c0_54 = arith.constant 0 : index
    %61 = arith.index_cast %60 : i32 to index
    %c0_55 = arith.constant 0 : index
    %c0_56 = arith.constant 0 : index
    %62 = vector.load %arg2[%c0_54, %61, %c0_55, %c0_56] : memref<1x18x18x128xbf16, #tpu.memory_space<vmem>>, vector<1x16x16x128xbf16>
    %63 = vector.shape_cast %62 : vector<1x16x16x128xbf16> to vector<16x16x128xbf16>
    %64 = vector.shape_cast %63 : vector<16x16x128xbf16> to vector<256x128xbf16>
    %c2_57 = arith.constant 2 : index
    %c0_58 = arith.constant 0 : index
    %c0_59 = arith.constant 0 : index
    %c0_60 = arith.constant 0 : index
    %65 = vector.load %arg3[%c2_57, %c0_58, %c0_59, %c0_60] : memref<3x3x128x128xbf16, #tpu.memory_space<vmem>>, vector<1x1x128x128xbf16>
    %66 = vector.shape_cast %65 : vector<1x1x128x128xbf16> to vector<128x128xbf16>
    %cst_61 = arith.constant dense<0.000000e+00> : vector<256x128xf32>
    %67 = tpu.matmul %64, %66, %cst_61 {dimension_numbers = #tpu.dot_dimension_numbers<[1], [0], [0], [1], [0, 0, 1, 1], [], []>} : vector<256x128xbf16>, vector<128x128xbf16>, vector<256x128xf32> -> vector<256x128xf32>
    %68 = arith.addf %58, %67 : vector<256x128xf32>
    %c16_i32_62 = arith.constant 16 : i32
    %69 = arith.muli %arg1, %c16_i32_62 : i32
    %c2_i32_63 = arith.constant 2 : i32
    %70 = arith.addi %69, %c2_i32_63 : i32
    %c0_64 = arith.constant 0 : index
    %71 = arith.index_cast %70 : i32 to index
    %c1_65 = arith.constant 1 : index
    %c0_66 = arith.constant 0 : index
    %72 = vector.load %arg2[%c0_64, %71, %c1_65, %c0_66] : memref<1x18x18x128xbf16, #tpu.memory_space<vmem>>, vector<1x16x16x128xbf16>
    %73 = vector.shape_cast %72 : vector<1x16x16x128xbf16> to vector<16x16x128xbf16>
    %74 = vector.shape_cast %73 : vector<16x16x128xbf16> to vector<256x128xbf16>
    %c2_67 = arith.constant 2 : index
    %c1_68 = arith.constant 1 : index
    %c0_69 = arith.constant 0 : index
    %c0_70 = arith.constant 0 : index
    %75 = vector.load %arg3[%c2_67, %c1_68, %c0_69, %c0_70] : memref<3x3x128x128xbf16, #tpu.memory_space<vmem>>, vector<1x1x128x128xbf16>
    %76 = vector.shape_cast %75 : vector<1x1x128x128xbf16> to vector<128x128xbf16>
    %cst_71 = arith.constant dense<0.000000e+00> : vector<256x128xf32>
    %77 = tpu.matmul %74, %76, %cst_71 {dimension_numbers = #tpu.dot_dimension_numbers<[1], [0], [0], [1], [0, 0, 1, 1], [], []>} : vector<256x128xbf16>, vector<128x128xbf16>, vector<256x128xf32> -> vector<256x128xf32>
    %78 = arith.addf %68, %77 : vector<256x128xf32>
    %c16_i32_72 = arith.constant 16 : i32
    %79 = arith.muli %arg1, %c16_i32_72 : i32
    %c2_i32_73 = arith.constant 2 : i32
    %80 = arith.addi %79, %c2_i32_73 : i32
    %c0_74 = arith.constant 0 : index
    %81 = arith.index_cast %80 : i32 to index
    %c2_75 = arith.constant 2 : index
    %c0_76 = arith.constant 0 : index
    %82 = vector.load %arg2[%c0_74, %81, %c2_75, %c0_76] : memref<1x18x18x128xbf16, #tpu.memory_space<vmem>>, vector<1x16x16x128xbf16>
    %83 = vector.shape_cast %82 : vector<1x16x16x128xbf16> to vector<16x16x128xbf16>
    %84 = vector.shape_cast %83 : vector<16x16x128xbf16> to vector<256x128xbf16>
    %c2_77 = arith.constant 2 : index
    %c2_78 = arith.constant 2 : index
    %c0_79 = arith.constant 0 : index
    %c0_80 = arith.constant 0 : index
    %85 = vector.load %arg3[%c2_77, %c2_78, %c0_79, %c0_80] : memref<3x3x128x128xbf16, #tpu.memory_space<vmem>>, vector<1x1x128x128xbf16>
    %86 = vector.shape_cast %85 : vector<1x1x128x128xbf16> to vector<128x128xbf16>
    %cst_81 = arith.constant dense<0.000000e+00> : vector<256x128xf32>
    %87 = tpu.matmul %84, %86, %cst_81 {dimension_numbers = #tpu.dot_dimension_numbers<[1], [0], [0], [1], [0, 0, 1, 1], [], []>} : vector<256x128xbf16>, vector<128x128xbf16>, vector<256x128xf32> -> vector<256x128xf32>
    %88 = arith.addf %78, %87 : vector<256x128xf32>
    %c0_82 = arith.constant 0 : index
    %c0_83 = arith.constant 0 : index
    %89 = vector.load %arg4[%c0_82, %c0_83] : memref<2x128xf32, #tpu.memory_space<vmem>>, vector<2x128xf32>
    %90 = vector.extract_strided_slice %89 {offsets = [0, 0], sizes = [1, 128], strides = [1, 1]} : vector<2x128xf32> to vector<1x128xf32>
    %91 = vector.broadcast %90 : vector<1x128xf32> to vector<256x128xf32>
    %92 = arith.mulf %88, %91 : vector<256x128xf32>
    %93 = vector.extract_strided_slice %89 {offsets = [1, 0], sizes = [1, 128], strides = [1, 1]} : vector<2x128xf32> to vector<1x128xf32>
    %94 = vector.broadcast %93 : vector<1x128xf32> to vector<256x128xf32>
    %95 = arith.addf %92, %94 : vector<256x128xf32>
    %cst_84 = arith.constant 0.000000e+00 : f32
    %96 = vector.broadcast %cst_84 : f32 to vector<256x128xf32>
    %97 = arith.maximumf %95, %96 : vector<256x128xf32>
    %98 = arith.truncf %97 : vector<256x128xf32> to vector<256x128xbf16>
    %c0_85 = arith.constant 0 : index
    %c0_86 = arith.constant 0 : index
    %c0_87 = arith.constant 0 : index
    %99 = vector.load %arg5[%c0_85, %c0_86, %c0_87] : memref<1x256x128xbf16, #tpu.memory_space<vmem>>, vector<1x256x128xbf16>
    %100 = vector.shape_cast %99 : vector<1x256x128xbf16> to vector<256x128xbf16>
    %101 = vector.shape_cast %98 : vector<256x128xbf16> to vector<1x256x128xbf16>
    tpu.vector_store %arg5[%c0_85, %c0_86, %c0_87], %101 {strides = array<i32>} : memref<1x256x128xbf16, #tpu.memory_space<vmem>>, vector<1x256x128xbf16>,
    return
  }
  func.func @transform_0(%arg0: i32, %arg1: i32) -> (i32, i32, i32, i32) {
    %c0_i32 = arith.constant 0 : i32
    %c0_i32_0 = arith.constant 0 : i32
    %c0_i32_1 = arith.constant 0 : i32
    %c0_i32_2 = arith.constant 0 : i32
    return %arg0, %c0_i32, %c0_i32_0, %c0_i32_1 : i32, i32, i32, i32
  }
  func.func @transform_1(%arg0: i32, %arg1: i32) -> (i32, i32, i32, i32) {
    %c0_i32 = arith.constant 0 : i32
    %c0_i32_0 = arith.constant 0 : i32
    %c0_i32_1 = arith.constant 0 : i32
    %c0_i32_2 = arith.constant 0 : i32
    %c0_i32_3 = arith.constant 0 : i32
    return %c0_i32, %c0_i32_0, %c0_i32_1, %c0_i32_2 : i32, i32, i32, i32
  }
  func.func @transform_2(%arg0: i32, %arg1: i32) -> (i32, i32) {
    %c0_i32 = arith.constant 0 : i32
    %c0_i32_0 = arith.constant 0 : i32
    %c0_i32_1 = arith.constant 0 : i32
    return %c0_i32, %c0_i32_0 : i32, i32
  }
  func.func @transform_3(%arg0: i32, %arg1: i32) -> (i32, i32, i32) {
    %c0_i32 = arith.constant 0 : i32
    %c0_i32_0 = arith.constant 0 : i32
    return %arg0, %arg1, %c0_i32 : i32, i32, i32
  }
}

module attributes {stable_mosaic.version = 11 : i64} {
  func.func @_mm_bn_resmm_kernel(%arg0: i32, %arg1: memref<256x128xbf16, #tpu.memory_space<vmem>>, %arg2: memref<128x128xbf16, #tpu.memory_space<vmem>>, %arg3: memref<2x128xf32, #tpu.memory_space<vmem>>, %arg4: memref<256x16xf32, #tpu.memory_space<vmem>>, %arg5: memref<16x128xbf16, #tpu.memory_space<vmem>>, %arg6: memref<2x128xf32, #tpu.memory_space<vmem>>, %arg7: memref<256x128xf32, #tpu.memory_space<vmem>>) attributes {dimension_semantics = [#tpu.dimension_semantics<parallel>], iteration_bounds = array<i64: 2>, scalar_prefetch = 0 : i64, scratch_operands = 0 : i64, tpu.core_type = #tpu.core_type<tc>, window_params = [{transform_indices = @transform_0, window_bounds = array<i64: 256, 128>}, {pipeline_mode = #tpu.pipeline_mode<synchronous>, transform_indices = @transform_1, window_bounds = array<i64: 128, 128>}, {pipeline_mode = #tpu.pipeline_mode<synchronous>, transform_indices = @transform_2, window_bounds = array<i64: 2, 128>}, {transform_indices = @transform_3, window_bounds = array<i64: 256, 16>}, {pipeline_mode = #tpu.pipeline_mode<synchronous>, transform_indices = @transform_4, window_bounds = array<i64: 16, 128>}, {pipeline_mode = #tpu.pipeline_mode<synchronous>, transform_indices = @transform_5, window_bounds = array<i64: 2, 128>}, {transform_indices = @transform_6, window_bounds = array<i64: 256, 128>}]} {
    %c0 = arith.constant 0 : index
    %c0_0 = arith.constant 0 : index
    %0 = vector.load %arg1[%c0, %c0_0] : memref<256x128xbf16, #tpu.memory_space<vmem>>, vector<256x128xbf16>
    %c0_1 = arith.constant 0 : index
    %c0_2 = arith.constant 0 : index
    %1 = vector.load %arg2[%c0_1, %c0_2] : memref<128x128xbf16, #tpu.memory_space<vmem>>, vector<128x128xbf16>
    %cst = arith.constant dense<0.000000e+00> : vector<256x128xf32>
    %2 = tpu.matmul %0, %1, %cst {dimension_numbers = #tpu.dot_dimension_numbers<[1], [0], [0], [1], [0, 0, 1, 1], [], []>} : vector<256x128xbf16>, vector<128x128xbf16>, vector<256x128xf32> -> vector<256x128xf32>
    %c0_3 = arith.constant 0 : index
    %c0_4 = arith.constant 0 : index
    %3 = vector.load %arg3[%c0_3, %c0_4] : memref<2x128xf32, #tpu.memory_space<vmem>>, vector<2x128xf32>
    %4 = vector.extract_strided_slice %3 {offsets = [0, 0], sizes = [1, 128], strides = [1, 1]} : vector<2x128xf32> to vector<1x128xf32>
    %5 = vector.broadcast %4 : vector<1x128xf32> to vector<256x128xf32>
    %6 = arith.mulf %2, %5 : vector<256x128xf32>
    %7 = vector.extract_strided_slice %3 {offsets = [1, 0], sizes = [1, 128], strides = [1, 1]} : vector<2x128xf32> to vector<1x128xf32>
    %8 = vector.broadcast %7 : vector<1x128xf32> to vector<256x128xf32>
    %9 = arith.addf %6, %8 : vector<256x128xf32>
    %c0_5 = arith.constant 0 : index
    %c0_6 = arith.constant 0 : index
    %10 = vector.load %arg4[%c0_5, %c0_6] : memref<256x16xf32, #tpu.memory_space<vmem>>, vector<256x16xf32>
    %11 = arith.truncf %10 : vector<256x16xf32> to vector<256x16xbf16>
    %c0_7 = arith.constant 0 : index
    %c0_8 = arith.constant 0 : index
    %12 = vector.load %arg5[%c0_7, %c0_8] : memref<16x128xbf16, #tpu.memory_space<vmem>>, vector<16x128xbf16>
    %cst_9 = arith.constant dense<0.000000e+00> : vector<256x128xf32>
    %13 = tpu.matmul %11, %12, %cst_9 {dimension_numbers = #tpu.dot_dimension_numbers<[1], [0], [0], [1], [0, 0, 1, 1], [], []>} : vector<256x16xbf16>, vector<16x128xbf16>, vector<256x128xf32> -> vector<256x128xf32>
    %c0_10 = arith.constant 0 : index
    %c0_11 = arith.constant 0 : index
    %14 = vector.load %arg6[%c0_10, %c0_11] : memref<2x128xf32, #tpu.memory_space<vmem>>, vector<2x128xf32>
    %15 = vector.extract_strided_slice %14 {offsets = [0, 0], sizes = [1, 128], strides = [1, 1]} : vector<2x128xf32> to vector<1x128xf32>
    %16 = vector.broadcast %15 : vector<1x128xf32> to vector<256x128xf32>
    %17 = arith.mulf %13, %16 : vector<256x128xf32>
    %18 = arith.addf %9, %17 : vector<256x128xf32>
    %19 = vector.extract_strided_slice %14 {offsets = [1, 0], sizes = [1, 128], strides = [1, 1]} : vector<2x128xf32> to vector<1x128xf32>
    %20 = vector.broadcast %19 : vector<1x128xf32> to vector<256x128xf32>
    %21 = arith.addf %18, %20 : vector<256x128xf32>
    %cst_12 = arith.constant 0.000000e+00 : f32
    %22 = vector.broadcast %cst_12 : f32 to vector<256x128xf32>
    %23 = arith.maximumf %21, %22 : vector<256x128xf32>
    %c0_13 = arith.constant 0 : index
    %c0_14 = arith.constant 0 : index
    %24 = vector.load %arg7[%c0_13, %c0_14] : memref<256x128xf32, #tpu.memory_space<vmem>>, vector<256x128xf32>
    tpu.vector_store %arg7[%c0_13, %c0_14], %23 {strides = array<i32>} : memref<256x128xf32, #tpu.memory_space<vmem>>, vector<256x128xf32>,
    return
  }
  func.func @transform_0(%arg0: i32) -> (i32, i32) {
    %c0_i32 = arith.constant 0 : i32
    %c0_i32_0 = arith.constant 0 : i32
    return %arg0, %c0_i32 : i32, i32
  }
  func.func @transform_1(%arg0: i32) -> (i32, i32) {
    %c0_i32 = arith.constant 0 : i32
    %c0_i32_0 = arith.constant 0 : i32
    %c0_i32_1 = arith.constant 0 : i32
    return %c0_i32, %c0_i32_0 : i32, i32
  }
  func.func @transform_2(%arg0: i32) -> (i32, i32) {
    %c0_i32 = arith.constant 0 : i32
    %c0_i32_0 = arith.constant 0 : i32
    %c0_i32_1 = arith.constant 0 : i32
    return %c0_i32, %c0_i32_0 : i32, i32
  }
  func.func @transform_3(%arg0: i32) -> (i32, i32) {
    %c0_i32 = arith.constant 0 : i32
    %c0_i32_0 = arith.constant 0 : i32
    return %arg0, %c0_i32 : i32, i32
  }
  func.func @transform_4(%arg0: i32) -> (i32, i32) {
    %c0_i32 = arith.constant 0 : i32
    %c0_i32_0 = arith.constant 0 : i32
    %c0_i32_1 = arith.constant 0 : i32
    return %c0_i32, %c0_i32_0 : i32, i32
  }
  func.func @transform_5(%arg0: i32) -> (i32, i32) {
    %c0_i32 = arith.constant 0 : i32
    %c0_i32_0 = arith.constant 0 : i32
    %c0_i32_1 = arith.constant 0 : i32
    return %c0_i32, %c0_i32_0 : i32, i32
  }
  func.func @transform_6(%arg0: i32) -> (i32, i32) {
    %c0_i32 = arith.constant 0 : i32
    %c0_i32_0 = arith.constant 0 : i32
    return %arg0, %c0_i32 : i32, i32
  }
}

</mosaic_0001>

<bundles_post_ra>
// kernel: conv_block_forward.3
= control target key start
LH: loop header
LB: loop body
LE: loop exit
PB: predicated region body
PF: predicated region fallthrough
CT: control target
= control target key end

     0   :  { %s1039_s12 = smov 0   ;;  %s1202_s0 = inlined_call_operand.vmem [shape: f32[512,16], index: 0, kind: input, shape index: {}]   ;;  %s1203_s1 = inlined_call_operand.vmem [shape: bf16[16,128], index: 1, kind: input, shape index: {}]   ;;  %s1204_s2 = inlined_call_operand.vmem [shape: f32[2,128], index: 2, kind: input, shape index: {}]   ;;  %s1205_s3 = inlined_call_operand.vmem [shape: bf16[512,128], index: 3, kind: output, shape index: {}]  }
   0x1 LB: > { %s762_s13 = sadd.s32 4294967295, %s1017_s12   ;;  %p766_p0 = scmp.ge.s32.totalorder %s1017_s12, 1  ;;  %s1017_s12 = sphi %s1039_s12, %s13_s12  }
   0x2   : > { %p138_p1 = scmp.lt.s32.totalorder %s1017_s12, 3 }
   0x4   : > { %p139_p2 = pnand %p766_p0, %p138_p1 }
   0x5   : > { %s767_s16 = sshll.u32 (!%p139_p2), %s762_s13, 5 }
   0x6   : > { %142 = sbr.rel (%p139_p2) target bundleno = 251 (0xfb), region = 32  ;;  %p163_p3 = scmp.lt.s32.totalorder (!%p139_p2), %s767_s16, 63 }
   0xb   : > { %v1010_v0 = vld [vmem:[%s1203_s1] sm:$0xff]   ;;  %s1207_s16 = smov (!%p163_p3, %s767_s16), 63  ;;  %vm231_vm0 = vcmask 130048   ;;  %v442_v49 = vlaneseq }
   0xc   : > { %966 = vmatprep.subr.bf16.mxu0 %v1010_v0  ;;  %1000 = vmatprep.subr.bf16.mxu1 %v1010_v0  ;;  %s768_s17 = sshll.u32 %s1207_s16, 3  ;;  %v441_v52 = vld [vmem:[%s1204_s2] sm:$0x3]  ;;  %s770_s23 = sshll.u32 %s1207_s16, 2 }
   0xd   : > { %967 = vmatpush3.bf16.msra.mxu0 %v1010_v0  ;;  %1001 = vmatpush3.bf16.msra.mxu1 %v1010_v0  ;;  %s1056_s20 = scalar_lea.vmem %s1202_s0, %s768_s17  ;;  %v443_v50 = vshrl.u32 %v442_v49, 7  ;;  %s1133_s26 = scalar_lea.vmem %s1205_s3, %s770_s23 }
   0xe   : > { %v175_v1 = vld [vmem:[%s1056_s20] sm:$0xff]  ;;  %v176_v2 = vld [vmem:[%s1056_s20 + $0x8] sm:$0xff]  ;;  %v177_v6 = vld [vmem:[%s1056_s20 + $0x10] sm:$0xff] }
   0xf   : > { %v191_v3 = vld [vmem:[%s1056_s20 + $0x80] sm:$0xff]  ;;  %v207_v4 = vpack.c.bf16 %v176_v2, %v175_v1  ;;  %v192_v5 = vld [vmem:[%s1056_s20 + $0x88] sm:$0xff]  ;;  %v178_v7 = vld [vmem:[%s1056_s20 + $0x18] sm:$0xff]  ;;  %v444_v51 = vsub.s32 0, %v443_v50  ;;  %v480_v54 = vsub.s32 1, %v443_v50 }
  0x10   : > { %v215_v8 = vpack.c.bf16 %v192_v5, %v191_v3  ;;  %v208_v9 = vpack.c.bf16 %v178_v7, %v177_v6  ;;  %v193_v10 = vld [vmem:[%s1056_s20 + $0x90] sm:$0xff]  ;;  %v194_v11 = vld [vmem:[%s1056_s20 + $0x98] sm:$0xff]  ;;  %v179_v12 = vld [vmem:[%s1056_s20 + $0x20] sm:$0xff] }
  0x11   : > { %968 = vmatprep.mubr.msk.bf16.mxu0 %vm231_vm0, %v207_v4  ;;  %v216_v13 = vpack.c.bf16 %v194_v11, %v193_v10  ;;  %v180_v14 = vld [vmem:[%s1056_s20 + $0x28] sm:$0xff]  ;;  %v195_v15 = vld [vmem:[%s1056_s20 + $0xa0] sm:$0xff]  ;;  %v181_v19 = vld [vmem:[%s1056_s20 + $0x30] sm:$0xff]  ;;  %v1109_v53 = vrot.slane %v441_v52, %v444_v51  ;;  %v1112_v57 = vrot.slane %v441_v52, %v480_v54 }
  0x12   : > { %v196_v16 = vld [vmem:[%s1056_s20 + $0xa8] sm:$0xff]  ;;  %984 = vmatprep.mubr.msk.bf16.mxu1 %vm231_vm0, %v215_v8  ;;  %969 = vmatmul.mubr.msk.bf16.vlgmr.msra.gmra.mxu0 %vm231_vm0, %v208_v9  ;;  %v209_v17 = vpack.c.bf16 %v180_v14, %v179_v12  ;;  %v182_v20 = vld [vmem:[%s1056_s20 + $0x38] sm:$0xff]  ;;  %v197_v21 = vld [vmem:[%s1056_s20 + $0xb0] sm:$0xff] }
  0x13   : > { %v217_v18 = vpack.c.bf16 %v196_v16, %v195_v15  ;;  %985 = vmatmul.mubr.msk.bf16.vlgmr.msra.gmra.mxu1 %vm231_vm0, %v216_v13  ;;  %v198_v22 = vld [vmem:[%s1056_s20 + $0xb8] sm:$0xff]  ;;  %v183_v23 = vld [vmem:[%s1056_s20 + $0x40] sm:$0xff]  ;;  %v184_v24 = vld [vmem:[%s1056_s20 + $0x48] sm:$0xff]  ;;  %v210_v27 = vpack.c.bf16 %v182_v20, %v181_v19 }
  0x14   : > { %972 = vmatprep.mubr.msk.bf16.mxu0 %vm231_vm0, %v209_v17  ;;  %v199_v25 = vld [vmem:[%s1056_s20 + $0xc0] sm:$0xff]  ;;  %v200_v26 = vld [vmem:[%s1056_s20 + $0xc8] sm:$0xff]  ;;  %v218_v28 = vpack.c.bf16 %v198_v22, %v197_v21  ;;  %v211_v29 = vpack.c.bf16 %v184_v24, %v183_v23  ;;  %v185_v31 = vld [vmem:[%s1056_s20 + $0x50] sm:$0xff] }
  0x15   : > { %988 = vmatprep.mubr.msk.bf16.mxu1 %vm231_vm0, %v217_v18  ;;  %v219_v30 = vpack.c.bf16 %v200_v26, %v199_v25  ;;  %v186_v32 = vld [vmem:[%s1056_s20 + $0x58] sm:$0xff]  ;;  %v201_v33 = vld [vmem:[%s1056_s20 + $0xd0] sm:$0xff]  ;;  %v187_v35 = vld [vmem:[%s1056_s20 + $0x60] sm:$0xff] }
  0x16   : > { %v202_v34 = vld [vmem:[%s1056_s20 + $0xd8] sm:$0xff]  ;;  %v188_v36 = vld [vmem:[%s1056_s20 + $0x68] sm:$0xff]  ;;  %v203_v37 = vld [vmem:[%s1056_s20 + $0xe0] sm:$0xff]  ;;  %v212_v39 = vpack.c.bf16 %v186_v32, %v185_v31 }
  0x17   : > { %v204_v38 = vld [vmem:[%s1056_s20 + $0xe8] sm:$0xff]  ;;  %v220_v40 = vpack.c.bf16 %v202_v34, %v201_v33  ;;  %v213_v41 = vpack.c.bf16 %v188_v36, %v187_v35  ;;  %v189_v43 = vld [vmem:[%s1056_s20 + $0x70] sm:$0xff]  ;;  %v190_v44 = vld [vmem:[%s1056_s20 + $0x78] sm:$0xff] }
  0x18   : > { %v221_v42 = vpack.c.bf16 %v204_v38, %v203_v37  ;;  %v205_v45 = vld [vmem:[%s1056_s20 + $0xf0] sm:$0xff]  ;;  %v206_v46 = vld [vmem:[%s1056_s20 + $0xf8] sm:$0xff]  ;;  %v214_v47 = vpack.c.bf16 %v190_v44, %v189_v43 }
  0x19   : > { %v222_v48 = vpack.c.bf16 %v206_v46, %v205_v45 }
  0x1a   : > { %973 = vmatmul.mubr.msk.bf16.gmra.mxu0 %vm231_vm0, %v210_v27 }
  0x1b   : > { %989 = vmatmul.mubr.msk.bf16.gmra.mxu1 %vm231_vm0, %v218_v28  ;;  %976 = vmatprep.mubr.msk.bf16.mxu0 %vm231_vm0, %v211_v29 }
  0x1c   : > { %992 = vmatprep.mubr.msk.bf16.mxu1 %vm231_vm0, %v219_v30 }
  0x22   : > { %977 = vmatmul.mubr.msk.bf16.gmra.mxu0 %vm231_vm0, %v212_v39 }
  0x23   : > { %993 = vmatmul.mubr.msk.bf16.gmra.mxu1 %vm231_vm0, %v220_v40  ;;  %980 = vmatprep.mubr.msk.bf16.mxu0 %vm231_vm0, %v213_v41 }
  0x24   : > { %996 = vmatprep.mubr.msk.bf16.mxu1 %vm231_vm0, %v221_v42 }
  0x2a   : > { %981 = vmatmul.mubr.msk.bf16.gmra.mxu0 %vm231_vm0, %v214_v47 }
  0x2b   : > { %997 = vmatmul.mubr.msk.bf16.gmra.mxu1 %vm231_vm0, %v222_v48 }
  0xd2   : > { %v970_v55 = vpop.f32.mrf.mxu0 }
  0xd3   : > { %v448_v56 = vmul.f32 %v970_v55, %v1109_v53  ;;  %v986_v58 = vpop.f32.mrf.mxu1 }
  0xd4   : > { %v464_v59 = vmul.f32 %v986_v58, %v1109_v53  ;;  %v314_v60 = vpop.f32.mrf.mxu0 }
  0xd5   : > { %v446_v61 = vmul.f32 %v1109_v53, %v314_v60  ;;  %v378_v62 = vpop.f32.mrf.mxu1  ;;  %v484_v1 = vadd.f32 %v1112_v57, %v448_v56 }
  0xd6   : > { %v462_v63 = vmul.f32 %v1109_v53, %v378_v62  ;;  %v971_v0 = vpop.f32.mrf.mxu0  ;;  %v500_v4 = vadd.f32 %v1112_v57, %v464_v59 }
  0xd7   : > { %v449_v2 = vmul.f32 %v971_v0, %v1109_v53  ;;  %v987_v3 = vpop.f32.mrf.mxu1  ;;  %v482_v7 = vadd.f32 %v1112_v57, %v446_v61  ;;  %v516_v15 = vmax.f32 %v484_v1, 0.0 }
  0xd8   : > { %v465_v5 = vmul.f32 %v987_v3, %v1109_v53  ;;  %v317_v6 = vpop.f32.mrf.mxu0  ;;  %v498_v11 = vadd.f32 %v1112_v57, %v462_v63  ;;  %v532_v20 = vmax.f32 %v500_v4, 0.0 }
  0xd9   : > { %v485_v8 = vadd.f32 %v1112_v57, %v449_v2  ;;  %v447_v9 = vmul.f32 %v1109_v53, %v317_v6  ;;  %v381_v10 = vpop.f32.mrf.mxu1  ;;  %v514_v25 = vmax.f32 %v482_v7, 0.0 }
  0xda   : > { %v501_v12 = vadd.f32 %v1112_v57, %v465_v5  ;;  %v463_v13 = vmul.f32 %v1109_v53, %v381_v10  ;;  %v974_v14 = vpop.f32.mrf.mxu0  ;;  %v530_v30 = vmax.f32 %v498_v11, 0.0 }
  0xdb   : > { %v517_v16 = vmax.f32 %v485_v8, 0.0  ;;  %v483_v17 = vadd.f32 %v1112_v57, %v447_v9  ;;  %v452_v18 = vmul.f32 %v974_v14, %v1109_v53  ;;  %v990_v19 = vpop.f32.mrf.mxu1 }
  0xdc   : > { %v533_v21 = vmax.f32 %v501_v12, 0.0  ;;  %v499_v22 = vadd.f32 %v1112_v57, %v463_v13  ;;  %v468_v23 = vmul.f32 %v990_v19, %v1109_v53  ;;  %v330_v24 = vpop.f32.mrf.mxu0 }
  0xdd   : > { %v862_v26 = vpack.c.bf16 %v517_v16, %v516_v15  ;;  %v515_v27 = vmax.f32 %v483_v17, 0.0  ;;  %v450_v28 = vmul.f32 %v1109_v53, %v330_v24  ;;  %v394_v29 = vpop.f32.mrf.mxu1  ;;  %v488_v36 = vadd.f32 %v1112_v57, %v452_v18 }
  0xde   : > { %v902_v31 = vpack.c.bf16 %v533_v21, %v532_v20  ;;  %v531_v32 = vmax.f32 %v499_v22, 0.0  ;;  %v466_v33 = vmul.f32 %v1109_v53, %v394_v29  ;;  %v975_v34 = vpop.f32.mrf.mxu0  ;;  %v504_v40 = vadd.f32 %v1112_v57, %v468_v23 }
  0xdf   : > { %934 = vst [vmem:[%s1133_s26 + $0x8] sm:$0xff] %v862_v26   ;;  %v857_v35 = vpack.c.bf16 %v515_v27, %v514_v25  ;;  %v453_v37 = vmul.f32 %v975_v34, %v1109_v53  ;;  %v991_v38 = vpop.f32.mrf.mxu1  ;;  %v486_v43 = vadd.f32 %v1112_v57, %v450_v28  ;;  %v520_v51 = vmax.f32 %v488_v36, 0.0 }
  0xe0   : > { %942 = vst [vmem:[%s1133_s26 + $0x48] sm:$0xff] %v902_v31   ;;  %v897_v39 = vpack.c.bf16 %v531_v32, %v530_v30  ;;  %v469_v41 = vmul.f32 %v991_v38, %v1109_v53  ;;  %v333_v42 = vpop.f32.mrf.mxu0  ;;  %v502_v47 = vadd.f32 %v1112_v57, %v466_v33  ;;  %v536_v58 = vmax.f32 %v504_v40, 0.0 }
  0xe1   : > { %858 = vst [vmem:[%s1133_s26] sm:$0xff] %v857_v35   ;;  %v489_v44 = vadd.f32 %v1112_v57, %v453_v37  ;;  %v451_v45 = vmul.f32 %v1109_v53, %v333_v42  ;;  %v397_v46 = vpop.f32.mrf.mxu1  ;;  %v518_v63 = vmax.f32 %v486_v43, 0.0 }
  0xe2   : > { %941 = vst [vmem:[%s1133_s26 + $0x40] sm:$0xff] %v897_v39   ;;  %v505_v48 = vadd.f32 %v1112_v57, %v469_v41  ;;  %v467_v49 = vmul.f32 %v1109_v53, %v397_v46  ;;  %v978_v50 = vpop.f32.mrf.mxu0  ;;  %v534_v4 = vmax.f32 %v502_v47, 0.0 }
  0xe3   : > { %v521_v52 = vmax.f32 %v489_v44, 0.0  ;;  %v487_v54 = vadd.f32 %v1112_v57, %v451_v45  ;;  %v456_v55 = vmul.f32 %v978_v50, %v1109_v53  ;;  %v994_v56 = vpop.f32.mrf.mxu1 }
  0xe4   : > { %v537_v59 = vmax.f32 %v505_v48, 0.0  ;;  %v503_v60 = vadd.f32 %v1112_v57, %v467_v49  ;;  %v472_v61 = vmul.f32 %v994_v56, %v1109_v53  ;;  %v346_v62 = vpop.f32.mrf.mxu0 }
  0xe5   : > { %v872_v0 = vpack.c.bf16 %v521_v52, %v520_v51  ;;  %v519_v1 = vmax.f32 %v487_v54, 0.0  ;;  %v454_v2 = vmul.f32 %v1109_v53, %v346_v62  ;;  %v410_v3 = vpop.f32.mrf.mxu1  ;;  %v492_v10 = vadd.f32 %v1112_v57, %v456_v55 }
  0xe6   : > { %v912_v5 = vpack.c.bf16 %v537_v59, %v536_v58  ;;  %v535_v6 = vmax.f32 %v503_v60, 0.0  ;;  %v470_v7 = vmul.f32 %v1109_v53, %v410_v3  ;;  %v979_v8 = vpop.f32.mrf.mxu0  ;;  %v508_v14 = vadd.f32 %v1112_v57, %v472_v61 }
  0xe7   : > { %936 = vst [vmem:[%s1133_s26 + $0x18] sm:$0xff] %v872_v0   ;;  %v867_v9 = vpack.c.bf16 %v519_v1, %v518_v63  ;;  %v457_v11 = vmul.f32 %v979_v8, %v1109_v53  ;;  %v995_v12 = vpop.f32.mrf.mxu1  ;;  %v490_v17 = vadd.f32 %v1112_v57, %v454_v2  ;;  %v524_v25 = vmax.f32 %v492_v10, 0.0 }
  0xe8   : > { %944 = vst [vmem:[%s1133_s26 + $0x58] sm:$0xff] %v912_v5   ;;  %v907_v13 = vpack.c.bf16 %v535_v6, %v534_v4  ;;  %v473_v15 = vmul.f32 %v995_v12, %v1109_v53  ;;  %v349_v16 = vpop.f32.mrf.mxu0  ;;  %v506_v21 = vadd.f32 %v1112_v57, %v470_v7  ;;  %v540_v30 = vmax.f32 %v508_v14, 0.0 }
  0xe9   : > { %935 = vst [vmem:[%s1133_s26 + $0x10] sm:$0xff] %v867_v9   ;;  %v493_v18 = vadd.f32 %v1112_v57, %v457_v11  ;;  %v455_v19 = vmul.f32 %v1109_v53, %v349_v16  ;;  %v413_v20 = vpop.f32.mrf.mxu1  ;;  %v522_v35 = vmax.f32 %v490_v17, 0.0 }
  0xea   : > { %943 = vst [vmem:[%s1133_s26 + $0x50] sm:$0xff] %v907_v13   ;;  %v509_v22 = vadd.f32 %v1112_v57, %v473_v15  ;;  %v471_v23 = vmul.f32 %v1109_v53, %v413_v20  ;;  %v982_v24 = vpop.f32.mrf.mxu0  ;;  %v538_v40 = vmax.f32 %v506_v21, 0.0 }
  0xeb   : > { %v525_v26 = vmax.f32 %v493_v18, 0.0  ;;  %v491_v27 = vadd.f32 %v1112_v57, %v455_v19  ;;  %v460_v28 = vmul.f32 %v982_v24, %v1109_v53  ;;  %v998_v29 = vpop.f32.mrf.mxu1 }
  0xec   : > { %v541_v31 = vmax.f32 %v509_v22, 0.0  ;;  %v507_v32 = vadd.f32 %v1112_v57, %v471_v23  ;;  %v476_v33 = vmul.f32 %v998_v29, %v1109_v53  ;;  %v362_v34 = vpop.f32.mrf.mxu0 }
  0xed   : > { %v882_v36 = vpack.c.bf16 %v525_v26, %v524_v25  ;;  %v523_v37 = vmax.f32 %v491_v27, 0.0  ;;  %v458_v38 = vmul.f32 %v1109_v53, %v362_v34  ;;  %v426_v39 = vpop.f32.mrf.mxu1  ;;  %v496_v46 = vadd.f32 %v1112_v57, %v460_v28 }
  0xee   : > { %v922_v41 = vpack.c.bf16 %v541_v31, %v540_v30  ;;  %v539_v42 = vmax.f32 %v507_v32, 0.0  ;;  %v474_v43 = vmul.f32 %v1109_v53, %v426_v39  ;;  %v983_v44 = vpop.f32.mrf.mxu0  ;;  %v512_v50 = vadd.f32 %v1112_v57, %v476_v33 }
  0xef   : > { %938 = vst [vmem:[%s1133_s26 + $0x28] sm:$0xff] %v882_v36   ;;  %v877_v45 = vpack.c.bf16 %v523_v37, %v522_v35  ;;  %v461_v47 = vmul.f32 %v983_v44, %v1109_v53  ;;  %v999_v48 = vpop.f32.mrf.mxu1  ;;  %v494_v54 = vadd.f32 %v1112_v57, %v458_v38  ;;  %v528_v62 = vmax.f32 %v496_v46, 0.0 }
  0xf0   : > { %946 = vst [vmem:[%s1133_s26 + $0x68] sm:$0xff] %v922_v41   ;;  %v917_v49 = vpack.c.bf16 %v539_v42, %v538_v40  ;;  %v477_v51 = vmul.f32 %v999_v48, %v1109_v53  ;;  %v365_v52 = vpop.f32.mrf.mxu0  ;;  %v510_v59 = vadd.f32 %v1112_v57, %v474_v43  ;;  %v544_v1 = vmax.f32 %v512_v50, 0.0 }
  0xf1   : > { %937 = vst [vmem:[%s1133_s26 + $0x20] sm:$0xff] %v877_v45   ;;  %v497_v55 = vadd.f32 %v1112_v57, %v461_v47  ;;  %v459_v56 = vmul.f32 %v1109_v53, %v365_v52  ;;  %v429_v58 = vpop.f32.mrf.mxu1  ;;  %v526_v4 = vmax.f32 %v494_v54, 0.0 }
  0xf2   : > { %945 = vst [vmem:[%s1133_s26 + $0x60] sm:$0xff] %v917_v49   ;;  %v513_v60 = vadd.f32 %v1112_v57, %v477_v51  ;;  %v475_v61 = vmul.f32 %v1109_v53, %v429_v58  ;;  %v542_v7 = vmax.f32 %v510_v59, 0.0 }
  0xf3   : > { %v529_v63 = vmax.f32 %v497_v55, 0.0  ;;  %v495_v0 = vadd.f32 %v1112_v57, %v459_v56 }
  0xf4   : > { %v545_v2 = vmax.f32 %v513_v60, 0.0  ;;  %v511_v3 = vadd.f32 %v1112_v57, %v475_v61 }
  0xf5   : > { %v892_v5 = vpack.c.bf16 %v529_v63, %v528_v62  ;;  %v527_v6 = vmax.f32 %v495_v0, 0.0 }
  0xf6   : > { %v932_v8 = vpack.c.bf16 %v545_v2, %v544_v1  ;;  %v543_v9 = vmax.f32 %v511_v3, 0.0 }
  0xf7   : > { %940 = vst [vmem:[%s1133_s26 + $0x38] sm:$0xff] %v892_v5   ;;  %v887_v10 = vpack.c.bf16 %v527_v6, %v526_v4 }
  0xf8   : > { %948 = vst [vmem:[%s1133_s26 + $0x78] sm:$0xff] %v932_v8   ;;  %v927_v53 = vpack.c.bf16 %v543_v9, %v542_v7 }
  0xf9   : > { %939 = vst [vmem:[%s1133_s26 + $0x30] sm:$0xff] %v887_v10  }
  0xfa   : > { %947 = vst [vmem:[%s1133_s26 + $0x70] sm:$0xff] %v927_v53  }
  0xfb PF: > { %s13_s12 = sadd.s32 1, %s1017_s12  }
  0xfc   : > { %p10_p4 = scmp.ge.s32.totalorder %s13_s12, 4  }
  0xfe   :  { %12 = sbr.rel (!%p10_p4) target bundleno = 1 (0x1), region = 62 }

// kernel: conv_block_forward.5
= control target key start
LH: loop header
LB: loop body
LE: loop exit
PB: predicated region body
PF: predicated region fallthrough
CT: control target
= control target key end

     0   :  { %s1460_s21 = smov 0   ;;  %s1813_s0 = inlined_call_operand.vmem [shape: bf16[512,128], index: 0, kind: input, shape index: {}]   ;;  %s1814_s1 = inlined_call_operand.vmem [shape: bf16[128,128], index: 1, kind: input, shape index: {}]   ;;  %s1815_s2 = inlined_call_operand.vmem [shape: f32[2,128], index: 2, kind: input, shape index: {}]   ;;  %s1816_s3 = inlined_call_operand.vmem [shape: f32[512,16], index: 3, kind: input, shape index: {}]   ;;  %s1817_s4 = inlined_call_operand.vmem [shape: bf16[16,128], index: 4, kind: input, shape index: {}]   ;;  %s1818_s5 = inlined_call_operand.vmem [shape: f32[2,128], index: 5, kind: input, shape index: {}]   ;;  %s1819_s6 = inlined_call_operand.vmem [shape: f32[512,128], index: 6, kind: output, shape index: {}]  }
   0x1 LB: > { %s1207_s22 = sadd.s32 4294967295, %s1423_s21   ;;  %p1211_p0 = scmp.ge.s32.totalorder %s1423_s21, 1  ;;  %s1423_s21 = sphi %s1460_s21, %s16_s21  }
   0x2   : > { %p224_p1 = scmp.lt.s32.totalorder %s1423_s21, 3 }
   0x4   : > { %p225_p2 = pnand %p1211_p0, %p224_p1 }
   0x5   : > { %s1212_s25 = sshll.u32 (!%p225_p2), %s1207_s22, 5 }
   0x6   : > { %228 = sbr.rel (%p225_p2) target bundleno = 310 (0x136), region = 44  ;;  %p260_p3 = scmp.lt.s32.totalorder (!%p225_p2), %s1212_s25, 63 }
   0xb   : > { %v1392_v0 = vld [vmem:[%s1814_s1 + $0x38] sm:$0xff]   ;;  %v1393_v1 = vld [vmem:[%s1814_s1 + $0x30] sm:$0xff]   ;;  %s1821_s25 = smov (!%p260_p3, %s1212_s25), 63  ;;  %v1394_v2 = vld [vmem:[%s1814_s1 + $0x28] sm:$0xff]   ;;  %vm760_vm0 = vcmask 130048  }
   0xc   : > { %1302 = vmatprep.subr.bf16.mxu0 %v1392_v0  ;;  %s1215_s30 = sshll.u32 %s1821_s25, 3  ;;  %v1395_v3 = vld [vmem:[%s1814_s1 + $0x20] sm:$0xff]   ;;  %s1213_s14 = sshll.u32 %s1821_s25, 2  ;;  %v1396_v12 = vld [vmem:[%s1814_s1 + $0x18] sm:$0xff]   ;;  %v1397_v19 = vld [vmem:[%s1814_s1 + $0x10] sm:$0xff]  }
   0xd   : > { %1303 = vmatpush3.bf16.msra.mxu0 %v1392_v0  ;;  %s1488_s11 = scalar_lea.vmem %s1816_s3, %s1215_s30  ;;  %v1399_v4 = vld [vmem:[%s1817_s4] sm:$0xff]   ;;  %s1499_s17 = scalar_lea.vmem %s1813_s0, %s1213_s14  ;;  %v1398_v23 = vld [vmem:[%s1814_s1 + $0x8] sm:$0xff]  }
   0xe   : > { %1304 = vmatprep.subr.bf16.mxu0 %v1393_v1  ;;  %v704_v5 = vld [vmem:[%s1488_s11] sm:$0xff]  ;;  %v705_v6 = vld [vmem:[%s1488_s11 + $0x8] sm:$0xff]  ;;  %1350 = vmatprep.subr.bf16.mxu1 %v1399_v4  ;;  %v706_v8 = vld [vmem:[%s1488_s11 + $0x10] sm:$0xff] }
   0xf   : > { %v736_v7 = vpack.c.bf16 %v705_v6, %v704_v5  ;;  %1351 = vmatpush3.bf16.msra.mxu1 %v1399_v4  ;;  %v707_v9 = vld [vmem:[%s1488_s11 + $0x18] sm:$0xff]  ;;  %v1401_v11 = vld [vmem:[%s1499_s17] sm:$0xff]   ;;  %v709_v14 = vld [vmem:[%s1488_s11 + $0x28] sm:$0xff] }
  0x10   : > { %v737_v10 = vpack.c.bf16 %v707_v9, %v706_v8  ;;  %v708_v13 = vld [vmem:[%s1488_s11 + $0x20] sm:$0xff]  ;;  %1318 = vmatprep.mubr.bf16.mxu0 %v1401_v11  ;;  %v710_v16 = vld [vmem:[%s1488_s11 + $0x30] sm:$0xff]  ;;  %v711_v17 = vld [vmem:[%s1488_s11 + $0x38] sm:$0xff] }
  0x11   : > { %1305 = vmatpush3.bf16.msra.mxu0 %v1393_v1  ;;  %1352 = vmatprep.mubr.msk.bf16.mxu1 %vm760_vm0, %v736_v7  ;;  %v738_v15 = vpack.c.bf16 %v709_v14, %v708_v13  ;;  %v712_v18 = vld [vmem:[%s1488_s11 + $0x40] sm:$0xff]  ;;  %v713_v20 = vld [vmem:[%s1488_s11 + $0x48] sm:$0xff]  ;;  %v739_v21 = vpack.c.bf16 %v711_v17, %v710_v16  ;;  %v714_v24 = vld [vmem:[%s1488_s11 + $0x50] sm:$0xff] }
  0x12   : > { %1306 = vmatprep.subr.bf16.mxu0 %v1394_v2  ;;  %1353 = vmatmul.mubr.msk.bf16.vlgmr.msra.gmra.mxu1 %vm760_vm0, %v737_v10  ;;  %v740_v22 = vpack.c.bf16 %v713_v20, %v712_v18  ;;  %v715_v25 = vld [vmem:[%s1488_s11 + $0x58] sm:$0xff]  ;;  %v716_v26 = vld [vmem:[%s1488_s11 + $0x60] sm:$0xff]  ;;  %v717_v27 = vld [vmem:[%s1488_s11 + $0x68] sm:$0xff] }
  0x13   : > { %1356 = vmatprep.mubr.msk.bf16.mxu1 %vm760_vm0, %v738_v15  ;;  %v1400_v28 = vld [vmem:[%s1814_s1] sm:$0xff]   ;;  %v741_v29 = vpack.c.bf16 %v715_v25, %v714_v24  ;;  %v742_v30 = vpack.c.bf16 %v717_v27, %v716_v26  ;;  %v1402_v31 = vld [vmem:[%s1499_s17 + $0x8] sm:$0xff]   ;;  %v1403_v32 = vld [vmem:[%s1499_s17 + $0x10] sm:$0xff]  }
  0x14   : > { %v718_v33 = vld [vmem:[%s1488_s11 + $0x70] sm:$0xff]  ;;  %v719_v34 = vld [vmem:[%s1488_s11 + $0x78] sm:$0xff]  ;;  %v720_v35 = vld [vmem:[%s1488_s11 + $0x80] sm:$0xff] }
  0x15   : > { %1307 = vmatpush3.bf16.msra.mxu0 %v1394_v2  ;;  %v721_v36 = vld [vmem:[%s1488_s11 + $0x88] sm:$0xff]  ;;  %v743_v37 = vpack.c.bf16 %v719_v34, %v718_v33  ;;  %v1404_v39 = vld [vmem:[%s1499_s17 + $0x18] sm:$0xff]   ;;  %v722_v40 = vld [vmem:[%s1488_s11 + $0x90] sm:$0xff] }
  0x16   : > { %1308 = vmatprep.subr.bf16.mxu0 %v1395_v3  ;;  %v744_v38 = vpack.c.bf16 %v721_v36, %v720_v35  ;;  %v723_v41 = vld [vmem:[%s1488_s11 + $0x98] sm:$0xff]  ;;  %v1405_v42 = vld [vmem:[%s1499_s17 + $0x20] sm:$0xff]   ;;  %v725_v44 = vld [vmem:[%s1488_s11 + $0xa8] sm:$0xff] }
  0x17   : > { %v724_v43 = vld [vmem:[%s1488_s11 + $0xa0] sm:$0xff]  ;;  %v745_v45 = vpack.c.bf16 %v723_v41, %v722_v40  ;;  %v1406_v47 = vld [vmem:[%s1499_s17 + $0x28] sm:$0xff]   ;;  %v726_v48 = vld [vmem:[%s1488_s11 + $0xb0] sm:$0xff] }
  0x18   : > { %v746_v46 = vpack.c.bf16 %v725_v44, %v724_v43  ;;  %v727_v49 = vld [vmem:[%s1488_s11 + $0xb8] sm:$0xff]  ;;  %v1407_v50 = vld [vmem:[%s1499_s17 + $0x30] sm:$0xff]   ;;  %v728_v51 = vld [vmem:[%s1488_s11 + $0xc0] sm:$0xff] }
  0x19   : > { %1309 = vmatpush3.bf16.msra.mxu0 %v1395_v3  ;;  %v729_v52 = vld [vmem:[%s1488_s11 + $0xc8] sm:$0xff]  ;;  %v747_v53 = vpack.c.bf16 %v727_v49, %v726_v48  ;;  %v1408_v55 = vld [vmem:[%s1499_s17 + $0x38] sm:$0xff]   ;;  %v730_v56 = vld [vmem:[%s1488_s11 + $0xd0] sm:$0xff] }
  0x1a   : > { %1310 = vmatprep.subr.bf16.mxu0 %v1396_v12  ;;  %1357 = vmatmul.mubr.msk.bf16.gmra.mxu1 %vm760_vm0, %v739_v21  ;;  %v748_v54 = vpack.c.bf16 %v729_v52, %v728_v51  ;;  %v731_v57 = vld [vmem:[%s1488_s11 + $0xd8] sm:$0xff]  ;;  %v1409_v58 = vld [vmem:[%s1499_s17 + $0x40] sm:$0xff]   ;;  %v733_v60 = vld [vmem:[%s1488_s11 + $0xe8] sm:$0xff] }
  0x1b   : > { %1360 = vmatprep.mubr.msk.bf16.mxu1 %vm760_vm0, %v740_v22  ;;  %v732_v59 = vld [vmem:[%s1488_s11 + $0xe0] sm:$0xff]  ;;  %v749_v61 = vpack.c.bf16 %v731_v57, %v730_v56  ;;  %v1410_v63 = vld [vmem:[%s1499_s17 + $0x48] sm:$0xff]   ;;  %v734_v0 = vld [vmem:[%s1488_s11 + $0xf0] sm:$0xff] }
  0x1c   : > { %v750_v62 = vpack.c.bf16 %v733_v60, %v732_v59  ;;  %v735_v1 = vld [vmem:[%s1488_s11 + $0xf8] sm:$0xff]  ;;  %v1411_v2 = vld [vmem:[%s1499_s17 + $0x50] sm:$0xff]   ;;  %v1413_v5 = vld [vmem:[%s1499_s17 + $0x60] sm:$0xff]   ;;  %s1621_s11 = scalar_lea.vmem %s1819_s6, %s1215_s30 }
  0x1d   : > { %1311 = vmatpush3.bf16.msra.mxu0 %v1396_v12  ;;  %v751_v3 = vpack.c.bf16 %v735_v1, %v734_v0  ;;  %v1412_v4 = vld [vmem:[%s1499_s17 + $0x58] sm:$0xff]   ;;  %v1414_v6 = vld [vmem:[%s1499_s17 + $0x68] sm:$0xff]   ;;  %v1415_v7 = vld [vmem:[%s1499_s17 + $0x70] sm:$0xff]   ;;  %v632_v12 = vlaneseq }
  0x1e   : > { %1312 = vmatprep.subr.bf16.mxu0 %v1397_v19  ;;  %v1416_v8 = vld [vmem:[%s1499_s17 + $0x78] sm:$0xff]   ;;  %v970_v20 = vld [vmem:[%s1818_s5] sm:$0x3] }
  0x1f   : > { %v633_v15 = vshrl.u32 %v632_v12, 7  ;;  %v631_v21 = vld [vmem:[%s1815_s2] sm:$0x3] }
  0x21   : > { %1313 = vmatpush3.bf16.msra.mxu0 %v1397_v19  ;;  %v634_v18 = vsub.s32 0, %v633_v15  ;;  %v670_v22 = vsub.s32 1, %v633_v15 }
  0x22   : > { %1314 = vmatprep.subr.bf16.mxu0 %v1398_v23  ;;  %1361 = vmatmul.mubr.msk.bf16.gmra.mxu1 %vm760_vm0, %v741_v29 }
  0x23   : > { %1364 = vmatprep.mubr.msk.bf16.mxu1 %vm760_vm0, %v742_v30  ;;  %v1585_v24 = vrot.slane %v970_v20, %v634_v18  ;;  %v1587_v25 = vrot.slane %v631_v21, %v634_v18  ;;  %v1591_v27 = vrot.slane %v631_v21, %v670_v22  ;;  %v1600_v35 = vrot.slane %v970_v20, %v670_v22 }
  0x25   : > { %1315 = vmatpush3.bf16.msra.mxu0 %v1398_v23 }
  0x26   : > { %1316 = vmatprep.subr.bf16.mxu0 %v1400_v28 }
  0x29   : > { %1317 = vmatpush3.bf16.msra.mxu0 %v1400_v28 }
  0x2a   : > { %1365 = vmatmul.mubr.msk.bf16.gmra.mxu1 %vm760_vm0, %v743_v37 }
  0x2b   : > { %1368 = vmatprep.mubr.msk.bf16.mxu1 %vm760_vm0, %v744_v38 }
  0x2c   : > { %1319 = vmatmul.mubr.bf16.vlgmr.msra.gmra.mxu0 %v1402_v31 }
  0x2d   : > { %1322 = vmatprep.mubr.bf16.mxu0 %v1403_v32 }
  0x32   : > { %1369 = vmatmul.mubr.msk.bf16.gmra.mxu1 %vm760_vm0, %v745_v45 }
  0x33   : > { %1372 = vmatprep.mubr.msk.bf16.mxu1 %vm760_vm0, %v746_v46 }
  0x34   : > { %1323 = vmatmul.mubr.bf16.gmra.mxu0 %v1404_v39 }
  0x35   : > { %1326 = vmatprep.mubr.bf16.mxu0 %v1405_v42 }
  0x3a   : > { %1373 = vmatmul.mubr.msk.bf16.gmra.mxu1 %vm760_vm0, %v747_v53 }
  0x3b   : > { %1376 = vmatprep.mubr.msk.bf16.mxu1 %vm760_vm0, %v748_v54 }
  0x3c   : > { %1327 = vmatmul.mubr.bf16.gmra.mxu0 %v1406_v47 }
  0x3d   : > { %1330 = vmatprep.mubr.bf16.mxu0 %v1407_v50 }
  0x42   : > { %1377 = vmatmul.mubr.msk.bf16.gmra.mxu1 %vm760_vm0, %v749_v61 }
  0x43   : > { %1380 = vmatprep.mubr.msk.bf16.mxu1 %vm760_vm0, %v750_v62 }
  0x44   : > { %1331 = vmatmul.mubr.bf16.gmra.mxu0 %v1408_v55 }
  0x45   : > { %1334 = vmatprep.mubr.bf16.mxu0 %v1409_v58 }
  0x4a   : > { %1381 = vmatmul.mubr.msk.bf16.gmra.mxu1 %vm760_vm0, %v751_v3 }
  0x4c   : > { %1335 = vmatmul.mubr.bf16.gmra.mxu0 %v1410_v63 }
  0x4d   : > { %1338 = vmatprep.mubr.bf16.mxu0 %v1411_v2 }
  0x54   : > { %1339 = vmatmul.mubr.bf16.gmra.mxu0 %v1412_v4 }
  0x55   : > { %1342 = vmatprep.mubr.bf16.mxu0 %v1413_v5 }
  0x5c   : > { %1343 = vmatmul.mubr.bf16.gmra.mxu0 %v1414_v6 }
  0x5d   : > { %1346 = vmatprep.mubr.bf16.mxu0 %v1415_v7 }
  0x64   : > { %1347 = vmatmul.mubr.bf16.gmra.mxu0 %v1416_v8 }
  0xd2   : > { %v1354_v9 = vpop.f32.mrf.mxu1 }
  0xd3   : > { %v977_v30 = vmul.f32 %v1354_v9, %v1585_v24 }
  0xd4   : > { %v843_v10 = vpop.f32.mrf.mxu1 }
  0xd5   : > { %v975_v39 = vmul.f32 %v1585_v24, %v843_v10 }
  0xd6   : > { %v1355_v11 = vpop.f32.mrf.mxu1 }
  0xd7   : > { %v978_v44 = vmul.f32 %v1355_v11, %v1585_v24 }
  0xd8   : > { %v846_v13 = vpop.f32.mrf.mxu1 }
  0xd9   : > { %v976_v51 = vmul.f32 %v1585_v24, %v846_v13 }
  0xda   : > { %v1358_v14 = vpop.f32.mrf.mxu1 }
  0xdb   : > { %v981_v58 = vmul.f32 %v1358_v14, %v1585_v24 }
  0xdc   : > { %v859_v16 = vpop.f32.mrf.mxu1 }
  0xdd   : > { %v979_v2 = vmul.f32 %v1585_v24, %v859_v16 }
  0xde   : > { %v1359_v17 = vpop.f32.mrf.mxu1 }
  0xdf   : > { %v982_v11 = vmul.f32 %v1359_v17, %v1585_v24 }
  0xe0   : > { %v1575_v19 = vpop.f32.mrf.mxu1 }
  0xe1   : > { %v980_v21 = vmul.f32 %v1585_v24, %v1575_v19 }
  0xe2   : > { %v1583_v23 = vpop.f32.mrf.mxu1 }
  0xe3   : > { %v985_v22 = vmul.f32 %v1583_v23, %v1585_v24 }
  0xe4   : > { %v1589_v26 = vpop.f32.mrf.mxu1 }
  0xe6   : > { %v1593_v28 = vpop.f32.mrf.mxu1 }
  0xe8   : > { %v1597_v32 = vpop.f32.mrf.mxu1 }
  0xea   : > { %v1603_v37 = vpop.f32.mrf.mxu1 }
  0xec   : > { %v1320_v29 = vpop.f32.mrf.mxu0  ;;  %v1608_v43 = vpop.f32.mrf.mxu1 }
  0xed   : > { %v638_v31 = vmul.f32 %v1320_v29, %v1587_v25 }
  0xee   : > { %v504_v33 = vpop.f32.mrf.mxu0  ;;  %v1614_v50 = vpop.f32.mrf.mxu1 }
  0xef   : > { %v674_v34 = vadd.f32 %v1591_v27, %v638_v31  ;;  %v636_v36 = vmul.f32 %v1587_v25, %v504_v33 }
  0xf0   : > { %v1321_v38 = vpop.f32.mrf.mxu0  ;;  %v1626_v57 = vpop.f32.mrf.mxu1 }
  0xf1   : > { %v1009_v40 = vadd.f32 %v977_v30, %v674_v34  ;;  %v672_v41 = vadd.f32 %v1591_v27, %v636_v36  ;;  %v639_v42 = vmul.f32 %v1321_v38, %v1587_v25 }
  0xf2   : > { %v507_v45 = vpop.f32.mrf.mxu0  ;;  %v1633_v1 = vpop.f32.mrf.mxu1 }
  0xf3   : > { %v1045_v46 = vadd.f32 %v1600_v35, %v1009_v40  ;;  %v1007_v47 = vadd.f32 %v975_v39, %v672_v41  ;;  %v675_v48 = vadd.f32 %v1591_v27, %v639_v42  ;;  %v637_v49 = vmul.f32 %v1587_v25, %v507_v45 }
  0xf4   : > { %v1324_v52 = vpop.f32.mrf.mxu0  ;;  %v1641_v9 = vpop.f32.mrf.mxu1 }
  0xf5   : > { %v1077_v53 = vmax.f32 %v1045_v46, 0.0  ;;  %v1043_v54 = vadd.f32 %v1600_v35, %v1007_v47  ;;  %v1010_v55 = vadd.f32 %v978_v44, %v675_v48  ;;  %v673_v56 = vadd.f32 %v1591_v27, %v637_v49 }
  0xf6   : > { %v642_v59 = vmul.f32 %v1324_v52, %v1587_v25  ;;  %v520_v60 = vpop.f32.mrf.mxu0  ;;  %v1647_v18 = vpop.f32.mrf.mxu1  ;;  %v983_v49 = vmul.f32 %v1585_v24, %v1589_v26  ;;  %v984_v26 = vmul.f32 %v1585_v24, %v1597_v32 }
  0xf7   : > { %1109 = vst [vmem:[%s1621_s11 + $0x10] sm:$0xff] %v1077_v53  ;;  %v1075_v61 = vmax.f32 %v1043_v54, 0.0  ;;  %v1046_v62 = vadd.f32 %v1600_v35, %v1010_v55  ;;  %v1008_v63 = vadd.f32 %v976_v51, %v673_v56  ;;  %v640_v0 = vmul.f32 %v1587_v25, %v520_v60 }
  0xf8   : > { %v678_v3 = vadd.f32 %v1591_v27, %v642_v59  ;;  %v1325_v4 = vpop.f32.mrf.mxu0  ;;  %v1658_v34 = vpop.f32.mrf.mxu1  ;;  %v986_v51 = vmul.f32 %v1593_v28, %v1585_v24  ;;  %v989_v28 = vmul.f32 %v1603_v37, %v1585_v24 }
  0xf9   : > { %1107 = vst [vmem:[%s1621_s11] sm:$0xff] %v1075_v61  ;;  %v1078_v5 = vmax.f32 %v1046_v62, 0.0  ;;  %v1044_v6 = vadd.f32 %v1600_v35, %v1008_v63  ;;  %v676_v7 = vadd.f32 %v1591_v27, %v640_v0  ;;  %v643_v8 = vmul.f32 %v1325_v4, %v1587_v25 }
  0xfa   : > { %v1013_v10 = vadd.f32 %v981_v58, %v678_v3  ;;  %v523_v12 = vpop.f32.mrf.mxu0  ;;  %v1662_v41 = vpop.f32.mrf.mxu1 }
  0xfb   : > { %1110 = vst [vmem:[%s1621_s11 + $0x18] sm:$0xff] %v1078_v5  ;;  %v1076_v13 = vmax.f32 %v1044_v6, 0.0  ;;  %v1011_v14 = vadd.f32 %v979_v2, %v676_v7  ;;  %v679_v15 = vadd.f32 %v1591_v27, %v643_v8  ;;  %v641_v16 = vmul.f32 %v1587_v25, %v523_v12 }
  0xfc   : > { %v1049_v20 = vadd.f32 %v1600_v35, %v1013_v10  ;;  %v1328_v17 = vpop.f32.mrf.mxu0  ;;  %v1674_v54 = vpop.f32.mrf.mxu1  ;;  %v987_v10 = vmul.f32 %v1585_v24, %v1608_v43 }
  0xfd   : > { %1108 = vst [vmem:[%s1621_s11 + $0x8] sm:$0xff] %v1076_v13  ;;  %v1047_v29 = vadd.f32 %v1600_v35, %v1011_v14  ;;  %v1014_v30 = vadd.f32 %v982_v11, %v679_v15  ;;  %v677_v31 = vadd.f32 %v1591_v27, %v641_v16  ;;  %v646_v33 = vmul.f32 %v1328_v17, %v1587_v25 }
  0xfe   : > { %v1081_v36 = vmax.f32 %v1049_v20, 0.0  ;;  %v536_v38 = vpop.f32.mrf.mxu0  ;;  %v1688_v5 = vpop.f32.mrf.mxu1 }
  0xff   : > { %v1079_v39 = vmax.f32 %v1047_v29, 0.0  ;;  %v1050_v19 = vadd.f32 %v1600_v35, %v1014_v30  ;;  %v1012_v40 = vadd.f32 %v980_v21, %v677_v31  ;;  %v682_v23 = vadd.f32 %v1591_v27, %v646_v33 }
 0x100   : > { %1113 = vst [vmem:[%s1621_s11 + $0x30] sm:$0xff] %v1081_v36  ;;  %v644_v42 = vmul.f32 %v1587_v25, %v536_v38  ;;  %v1329_v44 = vpop.f32.mrf.mxu0  ;;  %v1700_v21 = vpop.f32.mrf.mxu1  ;;  %v990_v30 = vmul.f32 %v1614_v50, %v1585_v24  ;;  %v988_v31 = vmul.f32 %v1585_v24, %v1626_v57  ;;  %v993_v36 = vmul.f32 %v1633_v1, %v1585_v24 }
 0x101   : > { %1111 = vst [vmem:[%s1621_s11 + $0x20] sm:$0xff] %v1079_v39  ;;  %v1082_v45 = vmax.f32 %v1050_v19, 0.0  ;;  %v1048_v46 = vadd.f32 %v1600_v35, %v1012_v40  ;;  %v1017_v47 = vadd.f32 %v985_v22, %v682_v23  ;;  %v647_v48 = vmul.f32 %v1329_v44, %v1587_v25 }
 0x102   : > { %v680_v52 = vadd.f32 %v1591_v27, %v644_v42  ;;  %v539_v53 = vpop.f32.mrf.mxu0  ;;  %v1716_v44 = vpop.f32.mrf.mxu1 }
 0x103   : > { %1114 = vst [vmem:[%s1621_s11 + $0x38] sm:$0xff] %v1082_v45  ;;  %v1080_v55 = vmax.f32 %v1048_v46, 0.0  ;;  %v1053_v56 = vadd.f32 %v1600_v35, %v1017_v47  ;;  %v683_v58 = vadd.f32 %v1591_v27, %v647_v48  ;;  %v645_v59 = vmul.f32 %v1587_v25, %v539_v53 }
 0x104   : > { %v1015_v60 = vadd.f32 %v983_v49, %v680_v52  ;;  %v1332_v61 = vpop.f32.mrf.mxu0  ;;  %v991_v48 = vmul.f32 %v1585_v24, %v1641_v9 }
 0x105   : > { %1112 = vst [vmem:[%s1621_s11 + $0x28] sm:$0xff] %v1080_v55  ;;  %v1085_v62 = vmax.f32 %v1053_v56, 0.0  ;;  %v1018_v63 = vadd.f32 %v986_v51, %v683_v58  ;;  %v681_v0 = vadd.f32 %v1591_v27, %v645_v59  ;;  %v650_v2 = vmul.f32 %v1332_v61, %v1587_v25 }
 0x106   : > { %v1051_v3 = vadd.f32 %v1600_v35, %v1015_v60  ;;  %v552_v4 = vpop.f32.mrf.mxu0  ;;  %v994_v58 = vmul.f32 %v1647_v18, %v1585_v24  ;;  %v939_v60 = vpop.f32.mrf.mxu1 }
 0x107   : > { %1117 = vst [vmem:[%s1621_s11 + $0x50] sm:$0xff] %v1085_v62  ;;  %v1054_v32 = vadd.f32 %v1600_v35, %v1018_v63  ;;  %v1016_v6 = vadd.f32 %v984_v26, %v681_v0  ;;  %v686_v37 = vadd.f32 %v1591_v27, %v650_v2  ;;  %v648_v7 = vmul.f32 %v1587_v25, %v552_v4 }
 0x108   : > { %v1083_v8 = vmax.f32 %v1051_v3, 0.0  ;;  %v1333_v11 = vpop.f32.mrf.mxu0  ;;  %v997_v62 = vmul.f32 %v1662_v41, %v1585_v24 }
 0x109   : > { %v1086_v12 = vmax.f32 %v1054_v32, 0.0  ;;  %v1052_v13 = vadd.f32 %v1600_v35, %v1016_v6  ;;  %v1021_v14 = vadd.f32 %v989_v28, %v686_v37  ;;  %v684_v15 = vadd.f32 %v1591_v27, %v648_v7  ;;  %v1379_v7 = vpop.f32.mrf.mxu1 }
 0x10a   : > { %1115 = vst [vmem:[%s1621_s11 + $0x40] sm:$0xff] %v1083_v8  ;;  %v651_v16 = vmul.f32 %v1333_v11, %v1587_v25  ;;  %v555_v20 = vpop.f32.mrf.mxu0  ;;  %v992_v32 = vmul.f32 %v1585_v24, %v1658_v34 }
 0x10b   : > { %1118 = vst [vmem:[%s1621_s11 + $0x58] sm:$0xff] %v1086_v12  ;;  %v1084_v22 = vmax.f32 %v1052_v13, 0.0  ;;  %v1057_v17 = vadd.f32 %v1600_v35, %v1021_v14  ;;  %v1019_v43 = vadd.f32 %v987_v10, %v684_v15  ;;  %v649_v29 = vmul.f32 %v1587_v25, %v555_v20 }
 0x10c   : > { %v687_v33 = vadd.f32 %v1591_v27, %v651_v16  ;;  %v1336_v38 = vpop.f32.mrf.mxu0  ;;  %v995_v13 = vmul.f32 %v1585_v24, %v1674_v54 }
 0x10d   : > { %1116 = vst [vmem:[%s1621_s11 + $0x48] sm:$0xff] %v1084_v22  ;;  %v1089_v39 = vmax.f32 %v1057_v17, 0.0  ;;  %v1055_v19 = vadd.f32 %v1600_v35, %v1019_v43  ;;  %v685_v40 = vadd.f32 %v1591_v27, %v649_v29  ;;  %v654_v23 = vmul.f32 %v1336_v38, %v1587_v25  ;;  %v942_v29 = vpop.f32.mrf.mxu1 }
 0x10e   : > { %v1022_v42 = vadd.f32 %v990_v30, %v687_v33  ;;  %v568_v50 = vpop.f32.mrf.mxu0  ;;  %v998_v17 = vmul.f32 %v1688_v5, %v1585_v24  ;;  %v996_v38 = vmul.f32 %v1585_v24, %v1700_v21 }
 0x10f   : > { %1121 = vst [vmem:[%s1621_s11 + $0x70] sm:$0xff] %v1089_v39  ;;  %v1087_v57 = vmax.f32 %v1055_v19, 0.0  ;;  %v1020_v45 = vadd.f32 %v988_v31, %v685_v40  ;;  %v690_v46 = vadd.f32 %v1591_v27, %v654_v23  ;;  %v652_v1 = vmul.f32 %v1587_v25, %v568_v50 }
 0x110   : > { %v1058_v47 = vadd.f32 %v1600_v35, %v1022_v42  ;;  %v1337_v49 = vpop.f32.mrf.mxu0  ;;  %v1001_v42 = vmul.f32 %v1716_v44, %v1585_v24 }
 0x111   : > { %1119 = vst [vmem:[%s1621_s11 + $0x60] sm:$0xff] %v1087_v57  ;;  %v1056_v51 = vadd.f32 %v1600_v35, %v1020_v45  ;;  %v1025_v52 = vadd.f32 %v993_v36, %v690_v46  ;;  %v688_v53 = vadd.f32 %v1591_v27, %v652_v1  ;;  %v655_v55 = vmul.f32 %v1337_v49, %v1587_v25  ;;  %v1382_v45 = vpop.f32.mrf.mxu1 }
 0x112   : > { %v1090_v56 = vmax.f32 %v1058_v47, 0.0  ;;  %v571_v59 = vpop.f32.mrf.mxu0 }
 0x113   : > { %v1088_v26 = vmax.f32 %v1056_v51, 0.0  ;;  %v1061_v28 = vadd.f32 %v1600_v35, %v1025_v52  ;;  %v1023_v9 = vadd.f32 %v991_v48, %v688_v53  ;;  %v691_v61 = vadd.f32 %v1591_v27, %v655_v55 }
 0x114   : > { %1122 = vst [vmem:[%s1621_s11 + $0x78] sm:$0xff] %v1090_v56  ;;  %v653_v63 = vmul.f32 %v1587_v25, %v571_v59  ;;  %v1340_v0 = vpop.f32.mrf.mxu0  ;;  %v999_v48 = vmul.f32 %v1585_v24, %v939_v60 }
 0x115   : > { %1120 = vst [vmem:[%s1621_s11 + $0x68] sm:$0xff] %v1088_v26  ;;  %v1093_v2 = vmax.f32 %v1061_v28, 0.0  ;;  %v1059_v18 = vadd.f32 %v1600_v35, %v1023_v9  ;;  %v1026_v3 = vadd.f32 %v994_v58, %v691_v61  ;;  %v658_v4 = vmul.f32 %v1340_v0, %v1587_v25  ;;  %v955_v26 = vpop.f32.mrf.mxu1 }
 0x116   : > { %v689_v6 = vadd.f32 %v1591_v27, %v653_v63  ;;  %v584_v37 = vpop.f32.mrf.mxu0  ;;  %v1002_v58 = vmul.f32 %v1379_v7, %v1585_v24  ;;  %v1000_v63 = vmul.f32 %v1585_v24, %v942_v29  ;;  %v1005_v0 = vmul.f32 %v1382_v45, %v1585_v24 }
 0x117   : > { %1125 = vst [vmem:[%s1621_s11 + $0x90] sm:$0xff] %v1093_v2  ;;  %v1091_v41 = vmax.f32 %v1059_v18, 0.0  ;;  %v1062_v8 = vadd.f32 %v1600_v35, %v1026_v3  ;;  %v694_v10 = vadd.f32 %v1591_v27, %v658_v4  ;;  %v656_v11 = vmul.f32 %v1587_v25, %v584_v37  ;;  %v1383_v37 = vpop.f32.mrf.mxu1 }
 0x118   : > { %v1024_v12 = vadd.f32 %v992_v32, %v689_v6  ;;  %v1341_v14 = vpop.f32.mrf.mxu0 }
 0x119   : > { %1123 = vst [vmem:[%s1621_s11 + $0x80] sm:$0xff] %v1091_v41  ;;  %v1094_v34 = vmax.f32 %v1062_v8, 0.0  ;;  %v1029_v15 = vadd.f32 %v997_v62, %v694_v10  ;;  %v692_v16 = vadd.f32 %v1591_v27, %v656_v11  ;;  %v659_v20 = vmul.f32 %v1341_v14, %v1587_v25 }
 0x11a   : > { %v1060_v22 = vadd.f32 %v1600_v35, %v1024_v12  ;;  %v587_v43 = vpop.f32.mrf.mxu0 }
 0x11b   : > { %1126 = vst [vmem:[%s1621_s11 + $0x98] sm:$0xff] %v1094_v34  ;;  %v1065_v30 = vadd.f32 %v1600_v35, %v1029_v15  ;;  %v1027_v54 = vadd.f32 %v995_v13, %v692_v16  ;;  %v695_v31 = vadd.f32 %v1591_v27, %v659_v20  ;;  %v657_v33 = vmul.f32 %v1587_v25, %v587_v43  ;;  %v958_v43 = vpop.f32.mrf.mxu1 }
 0x11c   : > { %v1092_v36 = vmax.f32 %v1060_v22, 0.0  ;;  %v1344_v39 = vpop.f32.mrf.mxu0  ;;  %v1003_v20 = vmul.f32 %v1585_v24, %v955_v26  ;;  %v1006_v22 = vmul.f32 %v1383_v37, %v1585_v24 }
 0x11d   : > { %v1097_v19 = vmax.f32 %v1065_v30, 0.0  ;;  %v1063_v40 = vadd.f32 %v1600_v35, %v1027_v54  ;;  %v1030_v5 = vadd.f32 %v998_v17, %v695_v31  ;;  %v693_v23 = vadd.f32 %v1591_v27, %v657_v33 }
 0x11e   : > { %1124 = vst [vmem:[%s1621_s11 + $0x88] sm:$0xff] %v1092_v36  ;;  %v662_v50 = vmul.f32 %v1344_v39, %v1587_v25  ;;  %v600_v57 = vpop.f32.mrf.mxu0  ;;  %v1004_v39 = vmul.f32 %v1585_v24, %v958_v43 }
 0x11f   : > { %1129 = vst [vmem:[%s1621_s11 + $0xb0] sm:$0xff] %v1097_v19  ;;  %v1095_v46 = vmax.f32 %v1063_v40, 0.0  ;;  %v1066_v21 = vadd.f32 %v1600_v35, %v1030_v5  ;;  %v1028_v1 = vadd.f32 %v996_v38, %v693_v23  ;;  %v660_v47 = vmul.f32 %v1587_v25, %v600_v57 }
 0x120   : > { %v698_v49 = vadd.f32 %v1591_v27, %v662_v50  ;;  %v1345_v51 = vpop.f32.mrf.mxu0 }
 0x121   : > { %1127 = vst [vmem:[%s1621_s11 + $0xa0] sm:$0xff] %v1095_v46  ;;  %v1098_v52 = vmax.f32 %v1066_v21, 0.0  ;;  %v1064_v44 = vadd.f32 %v1600_v35, %v1028_v1  ;;  %v696_v53 = vadd.f32 %v1591_v27, %v660_v47  ;;  %v663_v55 = vmul.f32 %v1345_v51, %v1587_v25 }
 0x122   : > { %v1033_v56 = vadd.f32 %v1001_v42, %v698_v49  ;;  %v603_v59 = vpop.f32.mrf.mxu0 }
 0x123   : > { %1130 = vst [vmem:[%s1621_s11 + $0xb8] sm:$0xff] %v1098_v52  ;;  %v1096_v28 = vmax.f32 %v1064_v44, 0.0  ;;  %v1031_v60 = vadd.f32 %v999_v48, %v696_v53  ;;  %v699_v9 = vadd.f32 %v1591_v27, %v663_v55  ;;  %v661_v61 = vmul.f32 %v1587_v25, %v603_v59 }
 0x124   : > { %v1069_v62 = vadd.f32 %v1600_v35, %v1033_v56  ;;  %v1348_v2 = vpop.f32.mrf.mxu0 }
 0x125   : > { %1128 = vst [vmem:[%s1621_s11 + $0xa8] sm:$0xff] %v1096_v28  ;;  %v1067_v18 = vadd.f32 %v1600_v35, %v1031_v60  ;;  %v1034_v3 = vadd.f32 %v1002_v58, %v699_v9  ;;  %v697_v4 = vadd.f32 %v1591_v27, %v661_v61  ;;  %v666_v32 = vmul.f32 %v1348_v2, %v1587_v25 }
 0x126   : > { %v1101_v6 = vmax.f32 %v1069_v62, 0.0  ;;  %v616_v7 = vpop.f32.mrf.mxu0 }
 0x127   : > { %v1099_v41 = vmax.f32 %v1067_v18, 0.0  ;;  %v1070_v8 = vadd.f32 %v1600_v35, %v1034_v3  ;;  %v1032_v10 = vadd.f32 %v1000_v63, %v697_v4  ;;  %v702_v11 = vadd.f32 %v1591_v27, %v666_v32 }
 0x128   : > { %1133 = vst [vmem:[%s1621_s11 + $0xd0] sm:$0xff] %v1101_v6  ;;  %v664_v12 = vmul.f32 %v1587_v25, %v616_v7  ;;  %v1349_v13 = vpop.f32.mrf.mxu0 }
 0x129   : > { %1131 = vst [vmem:[%s1621_s11 + $0xc0] sm:$0xff] %v1099_v41  ;;  %v1102_v14 = vmax.f32 %v1070_v8, 0.0  ;;  %v1068_v34 = vadd.f32 %v1600_v35, %v1032_v10  ;;  %v1037_v15 = vadd.f32 %v1005_v0, %v702_v11  ;;  %v667_v16 = vmul.f32 %v1349_v13, %v1587_v25 }
 0x12a   : > { %v700_v17 = vadd.f32 %v1591_v27, %v664_v12  ;;  %v619_v29 = vpop.f32.mrf.mxu0 }
 0x12b   : > { %1134 = vst [vmem:[%s1621_s11 + $0xd8] sm:$0xff] %v1102_v14  ;;  %v1100_v30 = vmax.f32 %v1068_v34, 0.0  ;;  %v1073_v54 = vadd.f32 %v1600_v35, %v1037_v15  ;;  %v703_v31 = vadd.f32 %v1591_v27, %v667_v16  ;;  %v665_v33 = vmul.f32 %v1587_v25, %v619_v29 }
 0x12c   : > { %v1035_v36 = vadd.f32 %v1003_v20, %v700_v17 }
 0x12d   : > { %1132 = vst [vmem:[%s1621_s11 + $0xc8] sm:$0xff] %v1100_v30  ;;  %v1105_v38 = vmax.f32 %v1073_v54, 0.0  ;;  %v1038_v19 = vadd.f32 %v1006_v22, %v703_v31  ;;  %v701_v40 = vadd.f32 %v1591_v27, %v665_v33 }
 0x12e   : > { %v1071_v5 = vadd.f32 %v1600_v35, %v1035_v36 }
 0x12f   : > { %1137 = vst [vmem:[%s1621_s11 + $0xf0] sm:$0xff] %v1105_v38  ;;  %v1074_v23 = vadd.f32 %v1600_v35, %v1038_v19  ;;  %v1036_v42 = vadd.f32 %v1004_v39, %v701_v40 }
 0x130   : > { %v1103_v50 = vmax.f32 %v1071_v5, 0.0 }
 0x131   : > { %v1106_v57 = vmax.f32 %v1074_v23, 0.0  ;;  %v1072_v45 = vadd.f32 %v1600_v35, %v1036_v42 }
 0x132   : > { %1135 = vst [vmem:[%s1621_s11 + $0xe0] sm:$0xff] %v1103_v50 }
 0x133   : > { %1138 = vst [vmem:[%s1621_s11 + $0xf8] sm:$0xff] %v1106_v57  ;;  %v1104_v25 = vmax.f32 %v1072_v45, 0.0 }
 0x135   : > { %1136 = vst [vmem:[%s1621_s11 + $0xe8] sm:$0xff] %v1104_v25 }
 0x136 PF: > { %s16_s21 = sadd.s32 1, %s1423_s21  }
 0x137   : > { %p13_p4 = scmp.ge.s32.totalorder %s16_s21, 4  }
 0x139   :  { %15 = sbr.rel (!%p13_p4) target bundleno = 1 (0x1), region = 77 }

// kernel: conv_block_forward.4
= control target key start
LH: loop header
LB: loop body
LE: loop exit
PB: predicated region body
PF: predicated region fallthrough
CT: control target
= control target key end

     0   :  { %s6986_s12 = smov 0   ;;  %s6988_s13 = smov 0   ;;  %s9703_s0 = inlined_call_operand.vmem [shape: bf16[2,18,18,128], index: 0, kind: input, shape index: {}]   ;;  %s9704_s1 = inlined_call_operand.vmem [shape: bf16[3,3,128,128], index: 1, kind: input, shape index: {}]   ;;  %s9705_s2 = inlined_call_operand.vmem [shape: f32[2,128], index: 2, kind: input, shape index: {}]   ;;  %s9706_s3 = inlined_call_operand.vmem [shape: bf16[2,256,128], index: 3, kind: output, shape index: {}]  }
   0x1   :  { %s6990_s14 = smov 0  }
   0x2 LB: > { %s25_s15 = sadd.s32 1, %s6960_s13  ;;  %p5374_p0 = scmp.ge.s32.totalorder %s6964_s14, 1  ;;  %s6964_s14 = sphi %s6990_s14, %s13_s14   ;;  %s6960_s13 = sphi %s6988_s13, %s9905_s13   ;;  %s6956_s12 = sphi %s6986_s12, %s9904_s12  }
   0x3   : > { %p27_p1 = scmp.ge.s32.totalorder %s25_s15, 2  ;;  %p151_p2 = scmp.lt.s32.totalorder %s6964_s14, 3 }
   0x5   : > { %s9907_s15 = smov (%p27_p1, %s25_s15), 0  ;;  %p152_p3 = pnand %p5374_p0, %p151_p2 }
   0x7   : > { %155 = sbr.rel (%p152_p3) target bundleno = 561 (0x231), region = 32 }
   0xc   : > { %v6813_v0 = vld [vmem:[%s9704_s1 + $0x78] sm:$0xff]   ;;  %p179_p4 = scmp.lt.s32.totalorder %s6956_s12, 1  ;;  %v6814_v1 = vld [vmem:[%s9704_s1 + $0x70] sm:$0xff]   ;;  %v6815_v2 = vld [vmem:[%s9704_s1 + $0x68] sm:$0xff]   ;;  %vm263_vm0 = vsmask.f32 3328 }
   0xd   : > { %6340 = vmatprep.subr.bf16.mxu0 %v6813_v0  ;;  %6772 = vmatprep.subr.bf16.mxu1 %v6813_v0  ;;  %v6816_v3 = vld [vmem:[%s9704_s1 + $0x60] sm:$0xff]   ;;  %vm264_vm1 = vsmask.f32 7440  ;;  %v6817_v17 = vld [vmem:[%s9704_s1 + $0x58] sm:$0xff]   ;;  %v6818_v33 = vld [vmem:[%s9704_s1 + $0x50] sm:$0xff]   ;;  %vm1293_vm3 = vcmask 1042432  }
   0xe   : > { %s9909_s12 = smov (!%p179_p4, %s6956_s12), 1  ;;  %6341 = vmatpush3.bf16.msra.mxu0 %v6813_v0  ;;  %6780 = vmatpush3.bf16.msra.mxu1 %v6813_v0  ;;  %vm7050_vm2 = vmor %vm263_vm0, %vm264_vm1  ;;  %v6819_v58 = vld [vmem:[%s9704_s1 + $0x48] sm:$0xff]   ;;  %vm1294_vm4 = vcmask 1046532  }
   0xf   : > { %6342 = vmatprep.subr.bf16.mxu0 %v6814_v1  ;;  %6773 = vmatprep.subr.bf16.mxu1 %v6814_v1  ;;  %s6788_s22 = smul.u32 216, %s9909_s12  ;;  %vm7361_vm5 = vmor %vm1293_vm3, %vm1294_vm4  ;;  %s5996_s6 = sshll.u32 %s9909_s12, 7 }
  0x10   : > { %s9574_s8 = scalar_lea.vmem %s9706_s3, %s5996_s6 }
  0x11   : > { %s7019_s25 = scalar_lea.vmem %s9703_s0, %s6788_s22 }
  0x12   : > { %6343 = vmatpush3.bf16.msra.mxu0 %v6814_v1  ;;  %6781 = vmatpush3.bf16.msra.mxu1 %v6814_v1  ;;  %v7025_v4 = vld [vmem:[%s7019_s25] sm:$0xf]  ;;  %v7028_v5 = vld [vmem:[%s7019_s25 + $0x4] sm:$0xf]  ;;  %v7031_v6 = vld [vmem:[%s7019_s25 + $0x8] sm:$0x1] }
  0x13   : > { %6344 = vmatprep.subr.bf16.mxu0 %v6815_v2  ;;  %6774 = vmatprep.subr.bf16.mxu1 %v6815_v2  ;;  %v267_v7 = vshrl.u32 %v7025_v4, 16  ;;  %v270_v8 = vshll.u32 %v7025_v4, 16  ;;  %v276_v9 = vshll.u32 %v7028_v5, 16  ;;  %v280_v10 = vshrl.u32 %v7028_v5, 16  ;;  %v215_v12 = vld [vmem:[%s7019_s25 + $0x60] sm:$0xf] }
  0x14   : > { %v286_v11 = vshll.u32 %v7031_v6, 16  ;;  %v216_v15 = vld [vmem:[%s7019_s25 + $0x64] sm:$0xf]  ;;  %v255_v16 = vld [vmem:[%s7019_s25 + $0x68] sm:$0x1]  ;;  %v459_v21 = vshrl.u32 %v215_v12, 16 }
  0x15   : > { %v269_v13 = vrot.slane %v267_v7, 4  ;;  %v272_v14 = vrot.slane %v270_v8, 5  ;;  %v278_v18 = vrot.slane %v276_v9, 5  ;;  %v282_v19 = vrot.slane %v280_v10, 4  ;;  %v7046_v26 = vld [vmem:[%s7019_s25 + $0xc] sm:$0xf] }
  0x16   : > { %6345 = vmatpush3.bf16.msra.mxu0 %v6815_v2  ;;  %6782 = vmatpush3.bf16.msra.mxu1 %v6815_v2  ;;  %v462_v23 = vshll.u32 %v215_v12, 16  ;;  %v468_v24 = vshll.u32 %v216_v15, 16  ;;  %v472_v25 = vshrl.u32 %v216_v15, 16  ;;  %v288_v29 = vrot.slane %v286_v11, 5  ;;  %v7055_v32 = vld [vmem:[%s7019_s25 + $0x10] sm:$0xf] }
  0x17   : > { %6346 = vmatprep.subr.bf16.mxu0 %v6816_v3  ;;  %6775 = vmatprep.subr.bf16.mxu1 %v6816_v3  ;;  %v273_v22 = vor.u32 %v272_v14, %v269_v13  ;;  %v283_v28 = vor.u32 %v282_v19, %v278_v18  ;;  %v461_v30 = vrot.slane %v459_v21, 4  ;;  %v478_v31 = vshll.u32 %v255_v16, 16  ;;  %v7061_v40 = vld [vmem:[%s7019_s25 + $0x14] sm:$0x1]  ;;  %v217_v47 = vld [vmem:[%s7019_s25 + $0x6c] sm:$0xf] }
  0x18   : > { %v464_v35 = vrot.slane %v462_v23, 5  ;;  %v470_v36 = vrot.slane %v468_v24, 5  ;;  %v474_v37 = vrot.slane %v472_v25, 4  ;;  %v291_v41 = vshrl.u32 %v7046_v26, 16  ;;  %v218_v52 = vld [vmem:[%s7019_s25 + $0x70] sm:$0xf] }
  0x19   : > { %v274_v34 = vrot.slane %v273_v22, 4  ;;  %v284_v38 = vrot.slane %v283_v28, 4  ;;  %v480_v39 = vrot.slane %v478_v31, 5  ;;  %v294_v42 = vshll.u32 %v7046_v26, 16  ;;  %v256_v57 = vld [vmem:[%s7019_s25 + $0x74] sm:$0x1] }
  0x1a   : > { %6347 = vmatpush3.bf16.msra.mxu0 %v6816_v3  ;;  %6783 = vmatpush3.bf16.msra.mxu1 %v6816_v3  ;;  %v465_v44 = vor.u32 %v464_v35, %v461_v30  ;;  %v475_v45 = vor.u32 %v474_v37, %v470_v36  ;;  %v300_v46 = vshll.u32 %v7055_v32, 16  ;;  %v293_v49 = vrot.slane %v291_v41, 4  ;;  %v7084_v14 = vld [vmem:[%s7019_s25 + $0x18] sm:$0xf]  ;;  %v6820_v15 = vld [vmem:[%s9704_s1 + $0x40] sm:$0xff]  }
  0x1b   : > { %6348 = vmatprep.subr.bf16.mxu0 %v6817_v17  ;;  %6776 = vmatprep.subr.bf16.mxu1 %v6817_v17  ;;  %v279_v43 = vsel %vm7050_vm2, %v274_v34, %v278_v18  ;;  %v289_v48 = vsel %vm7050_vm2, %v284_v38, %v288_v29  ;;  %v296_v50 = vrot.slane %v294_v42, 5  ;;  %v304_v51 = vshrl.u32 %v7055_v32, 16  ;;  %v7092_v19 = vld [vmem:[%s7019_s25 + $0x1c] sm:$0xf]  ;;  %v7097_v25 = vld [vmem:[%s7019_s25 + $0x20] sm:$0x1] }
  0x1c   : > { %v5394_v53 = vcombine.low %v279_v43, %v289_v48  ;;  %v466_v54 = vrot.slane %v465_v44, 4  ;;  %v476_v55 = vrot.slane %v475_v45, 4  ;;  %v302_v56 = vrot.slane %v300_v46, 5  ;;  %v219_v34 = vld [vmem:[%s7019_s25 + $0x78] sm:$0xf] }
  0x1d   : > { %v297_v59 = vor.u32 %v296_v50, %v293_v49  ;;  %v306_v60 = vrot.slane %v304_v51, 4  ;;  %v310_v61 = vshll.u32 %v7061_v40, 16  ;;  %v483_v1 = vshrl.u32 %v217_v47, 16  ;;  %v6821_v41 = vld [vmem:[%s9704_s1 + $0x38] sm:$0xff]   ;;  %v257_v49 = vld [vmem:[%s7019_s25 + $0x80] sm:$0x1] }
  0x1e   : > { %6349 = vmatpush3.bf16.msra.mxu0 %v6817_v17  ;;  %6784 = vmatpush3.bf16.msra.mxu1 %v6817_v17  ;;  %v471_v63 = vsel %vm7050_vm2, %v466_v54, %v470_v36  ;;  %v481_v0 = vsel %vm7050_vm2, %v476_v55, %v480_v39  ;;  %v486_v2 = vshll.u32 %v217_v47, 16  ;;  %v492_v12 = vshll.u32 %v218_v52, 16  ;;  %v7106_v39 = vld [vmem:[%s7019_s25 + $0x7c] sm:$0xf] }
  0x1f   : > { %6350 = vmatprep.subr.bf16.mxu0 %v6818_v33  ;;  %6777 = vmatprep.subr.bf16.mxu1 %v6818_v33  ;;  %v5402_v3 = vcombine.low %v471_v63, %v481_v0  ;;  %v298_v7 = vrot.slane %v297_v59, 4  ;;  %v307_v8 = vor.u32 %v306_v60, %v302_v56  ;;  %v312_v9 = vrot.slane %v310_v61, 5  ;;  %v6822_v42 = vld [vmem:[%s9704_s1 + $0xb8] sm:$0xff]   ;;  %v6824_v59 = vld [vmem:[%s9704_s1 + $0xb0] sm:$0xff]   ;;  %v7133_v0 = vld [vmem:[%s7019_s25 + $0x28] sm:$0xf] }
  0x20   : > { %6356 = vmatprep.mubr.bf16.mxu0 %v5394_v53  ;;  %v485_v10 = vrot.slane %v483_v1, 4  ;;  %v488_v11 = vrot.slane %v486_v2, 5  ;;  %v496_v13 = vshrl.u32 %v218_v52, 16  ;;  %v502_v18 = vshll.u32 %v256_v57, 16  ;;  %v6823_v52 = vld [vmem:[%s9704_s1 + $0x30] sm:$0xff]  }
  0x21   : > { %v303_v16 = vsel %vm7050_vm2, %v298_v7, %v302_v56  ;;  %v308_v17 = vrot.slane %v307_v8, 4  ;;  %6372 = vmatprep.mubr.bf16.mxu1 %v5402_v3  ;;  %v494_v23 = vrot.slane %v492_v12, 5  ;;  %v315_v28 = vshrl.u32 %v7084_v14, 16  ;;  %v7124_v57 = vld [vmem:[%s7019_s25 + $0x24] sm:$0xf] }
  0x22   : > { %6351 = vmatpush3.bf16.msra.mxu0 %v6818_v33  ;;  %6785 = vmatpush3.bf16.msra.mxu1 %v6818_v33  ;;  %v489_v22 = vor.u32 %v488_v11, %v485_v10  ;;  %v498_v24 = vrot.slane %v496_v13, 4  ;;  %v504_v30 = vrot.slane %v502_v18, 5  ;;  %v318_v31 = vshll.u32 %v7084_v14, 16  ;;  %v7136_v8 = vld [vmem:[%s7019_s25 + $0x2c] sm:$0x1] }
  0x23   : > { %6352 = vmatprep.subr.bf16.mxu0 %v6819_v58  ;;  %6778 = vmatprep.subr.bf16.mxu1 %v6819_v58  ;;  %v313_v29 = vsel %vm7050_vm2, %v308_v17, %v312_v9  ;;  %v324_v33 = vshll.u32 %v7092_v19, 16  ;;  %v317_v38 = vrot.slane %v315_v28, 4  ;;  %v328_v45 = vshrl.u32 %v7092_v19, 16  ;;  %v7140_v13 = vld [vmem:[%s7019_s25 + $0x84] sm:$0xf] }
  0x24   : > { %v5395_v35 = vcombine.low %v303_v16, %v313_v29  ;;  %v490_v36 = vrot.slane %v489_v22, 4  ;;  %v499_v37 = vor.u32 %v498_v24, %v494_v23  ;;  %v320_v43 = vrot.slane %v318_v31, 5  ;;  %v7147_v22 = vld [vmem:[%s7019_s25 + $0x88] sm:$0xf] }
  0x25   : > { %v326_v44 = vrot.slane %v324_v33, 5  ;;  %v334_v46 = vshll.u32 %v7097_v25, 16  ;;  %v507_v50 = vshrl.u32 %v219_v34, 16  ;;  %v510_v51 = vshll.u32 %v219_v34, 16 }
  0x26   : > { %6353 = vmatpush3.bf16.msra.mxu0 %v6819_v58  ;;  %6786 = vmatpush3.bf16.msra.mxu1 %v6819_v58  ;;  %v495_v47 = vsel %vm7050_vm2, %v490_v36, %v494_v23  ;;  %v500_v48 = vrot.slane %v499_v37, 4  ;;  %v321_v53 = vor.u32 %v320_v43, %v317_v38  ;;  %v330_v54 = vrot.slane %v328_v45, 4  ;;  %v7156_v36 = vld [vmem:[%s7019_s25 + $0x8c] sm:$0x1] }
  0x27   : > { %6354 = vmatprep.subr.bf16.mxu0 %v6820_v15  ;;  %6779 = vmatprep.subr.bf16.mxu1 %v6820_v15  ;;  %v336_v55 = vrot.slane %v334_v46, 5  ;;  %v516_v56 = vshll.u32 %v7106_v39, 16  ;;  %v509_v60 = vrot.slane %v507_v50, 4  ;;  %v512_v61 = vrot.slane %v510_v51, 5  ;;  %v6826_v37 = vld [vmem:[%s9704_s1 + $0xa8] sm:$0xff]  }
  0x28   : > { %v505_v58 = vsel %vm7050_vm2, %v500_v48, %v504_v30  ;;  %v520_v63 = vshrl.u32 %v7106_v39, 16  ;;  %v322_v2 = vrot.slane %v321_v53, 4  ;;  %v331_v3 = vor.u32 %v330_v54, %v326_v44  ;;  %v6825_v30 = vld [vmem:[%s9704_s1 + $0x28] sm:$0xff]   ;;  %v7171_v53 = vld [vmem:[%s7019_s25 + $0x30] sm:$0xf] }
  0x29   : > { %v5403_v1 = vcombine.low %v495_v47, %v505_v58  ;;  %v518_v7 = vrot.slane %v516_v56, 5  ;;  %v513_v9 = vor.u32 %v512_v61, %v509_v60  ;;  %v526_v11 = vshll.u32 %v257_v49, 16  ;;  %v7180_v60 = vld [vmem:[%s7019_s25 + $0x34] sm:$0xf] }
  0x2a   : > { %6355 = vmatpush3.bf16.msra.mxu0 %v6820_v15  ;;  %6787 = vmatpush3.bf16.msra.mxu1 %v6820_v15  ;;  %v522_v10 = vrot.slane %v520_v63, 4  ;;  %v339_v12 = vshrl.u32 %v7124_v57, 16  ;;  %v327_v15 = vsel %vm7050_vm2, %v322_v2, %v326_v44  ;;  %v332_v16 = vrot.slane %v331_v3, 4 }
  0x2b   : > { %6388 = vmatprep.subr.bf16.mxu1 %v6821_v41  ;;  %6436 = vmatprep.subr.bf16.mxu0 %v6822_v42  ;;  %v342_v17 = vshll.u32 %v7124_v57, 16  ;;  %v348_v18 = vshll.u32 %v7133_v0, 16  ;;  %v514_v23 = vrot.slane %v513_v9, 4  ;;  %v528_v28 = vrot.slane %v526_v11, 5 }
  0x2c   : > { %v523_v24 = vor.u32 %v522_v10, %v518_v7  ;;  %v341_v29 = vrot.slane %v339_v12, 4  ;;  %v337_v31 = vsel %vm7050_vm2, %v332_v16, %v336_v55  ;;  %v358_v43 = vshll.u32 %v7136_v8, 16  ;;  %v7188_v16 = vld [vmem:[%s7019_s25 + $0x38] sm:$0x1] }
  0x2d   : > { %6357 = vmatmul.mubr.bf16.vlgmr.msra.gmra.mxu0 %v5395_v35  ;;  %6373 = vmatmul.mubr.bf16.vlgmr.msra.gmra.mxu1 %v5403_v1  ;;  %v344_v33 = vrot.slane %v342_v17, 5  ;;  %v350_v34 = vrot.slane %v348_v18, 5  ;;  %v352_v35 = vshrl.u32 %v7133_v0, 16  ;;  %v5396_v38 = vcombine.low %v327_v15, %v337_v31  ;;  %v7192_v18 = vld [vmem:[%s7019_s25 + $0x90] sm:$0xf] }
  0x2e   : > { %6389 = vmatpush3.bf16.msra.mxu1 %v6821_v41  ;;  %6437 = vmatpush3.bf16.msra.mxu0 %v6822_v42  ;;  %v519_v41 = vsel %vm7050_vm2, %v514_v23, %v518_v7  ;;  %v524_v42 = vrot.slane %v523_v24, 4  ;;  %v531_v46 = vshrl.u32 %v7140_v13, 16  ;;  %v534_v47 = vshll.u32 %v7140_v13, 16  ;;  %v7198_v31 = vld [vmem:[%s7019_s25 + $0x94] sm:$0xf] }
  0x2f   : > { %6390 = vmatprep.subr.bf16.mxu1 %v6823_v52  ;;  %6438 = vmatprep.subr.bf16.mxu0 %v6824_v59  ;;  %v345_v44 = vor.u32 %v344_v33, %v341_v29  ;;  %v354_v45 = vrot.slane %v352_v35, 4  ;;  %v360_v49 = vrot.slane %v358_v43, 5  ;;  %v540_v50 = vshll.u32 %v7147_v22, 16 }
  0x30   : > { %v529_v48 = vsel %vm7050_vm2, %v524_v42, %v528_v28  ;;  %v544_v51 = vshrl.u32 %v7147_v22, 16  ;;  %6360 = vmatprep.mubr.bf16.mxu0 %v5396_v38  ;;  %v533_v58 = vrot.slane %v531_v46, 4  ;;  %v536_v61 = vrot.slane %v534_v47, 5  ;;  %v6830_v38 = vld [vmem:[%s9704_s1 + $0x98] sm:$0xff]   ;;  %v6831_v46 = vld [vmem:[%s9704_s1 + $0x10] sm:$0xff]  }
  0x31   : > { %v5404_v54 = vcombine.low %v519_v41, %v529_v48  ;;  %v346_v55 = vrot.slane %v345_v44, 4  ;;  %v355_v56 = vor.u32 %v354_v45, %v350_v34  ;;  %v542_v63 = vrot.slane %v540_v50, 5  ;;  %v7208_v44 = vld [vmem:[%s7019_s25 + $0x98] sm:$0x1] }
  0x32   : > { %6391 = vmatpush3.bf16.msra.mxu1 %v6823_v52  ;;  %6439 = vmatpush3.bf16.msra.mxu0 %v6824_v59  ;;  %v6827_v52 = vld [vmem:[%s9704_s1 + $0x20] sm:$0xff]   ;;  %v546_v1 = vrot.slane %v544_v51, 4  ;;  %v550_v2 = vshll.u32 %v7156_v36, 16  ;;  %v363_v9 = vshrl.u32 %v7171_v53, 16  ;;  %v366_v10 = vshll.u32 %v7171_v53, 16 }
  0x33   : > { %6392 = vmatprep.subr.bf16.mxu1 %v6825_v30  ;;  %v6828_v59 = vld [vmem:[%s9704_s1 + $0xa0] sm:$0xff]   ;;  %6440 = vmatprep.subr.bf16.mxu0 %v6826_v37  ;;  %v351_v3 = vsel %vm7050_vm2, %v346_v55, %v350_v34  ;;  %v356_v7 = vrot.slane %v355_v56, 4  ;;  %v537_v11 = vor.u32 %v536_v61, %v533_v58  ;;  %v372_v17 = vshll.u32 %v7180_v60, 16  ;;  %v7221_v51 = vld [vmem:[%s7019_s25 + $0x3c] sm:$0xf]  ;;  %v6832_v55 = vld [vmem:[%s9704_s1 + $0x90] sm:$0xff]  }
  0x34   : > { %6376 = vmatprep.mubr.bf16.mxu1 %v5404_v54  ;;  %v547_v12 = vor.u32 %v546_v1, %v542_v63  ;;  %v552_v15 = vrot.slane %v550_v2, 5  ;;  %v365_v24 = vrot.slane %v363_v9, 4  ;;  %v368_v28 = vrot.slane %v366_v10, 5  ;;  %v7224_v54 = vld [vmem:[%s7019_s25 + $0x40] sm:$0xf] }
  0x35   : > { %v361_v23 = vsel %vm7050_vm2, %v356_v7, %v360_v49  ;;  %v376_v29 = vshrl.u32 %v7180_v60, 16  ;;  %v538_v34 = vrot.slane %v537_v11, 4  ;;  %v382_v43 = vshll.u32 %v7188_v16, 16  ;;  %v7231_v7 = vld [vmem:[%s7019_s25 + $0x44] sm:$0x1] }
  0x36   : > { %6393 = vmatpush3.bf16.msra.mxu1 %v6825_v30  ;;  %6441 = vmatpush3.bf16.msra.mxu0 %v6826_v37  ;;  %v6829_v30 = vld [vmem:[%s9704_s1 + $0x18] sm:$0xff]   ;;  %v5397_v33 = vcombine.low %v351_v3, %v361_v23  ;;  %v548_v35 = vrot.slane %v547_v12, 4  ;;  %v374_v37 = vrot.slane %v372_v17, 5  ;;  %v369_v41 = vor.u32 %v368_v28, %v365_v24  ;;  %v7243_v28 = vld [vmem:[%s7019_s25 + $0xa0] sm:$0xf] }
  0x37   : > { %6394 = vmatprep.subr.bf16.mxu1 %v6827_v52  ;;  %6442 = vmatprep.subr.bf16.mxu0 %v6828_v59  ;;  %v378_v42 = vrot.slane %v376_v29, 4  ;;  %v555_v45 = vshrl.u32 %v7192_v18, 16  ;;  %v543_v47 = vsel %vm7050_vm2, %v538_v34, %v542_v63  ;;  %v558_v49 = vshll.u32 %v7192_v18, 16  ;;  %v7234_v9 = vld [vmem:[%s7019_s25 + $0x9c] sm:$0xf]  ;;  %v6833_v29 = vld [vmem:[%s9704_s1 + $0x8] sm:$0xff]  }
  0x38   : > { %6361 = vmatmul.mubr.bf16.gmra.mxu0 %v5397_v33  ;;  %v553_v48 = vsel %vm7050_vm2, %v548_v35, %v552_v15  ;;  %v564_v50 = vshll.u32 %v7198_v31, 16  ;;  %v370_v58 = vrot.slane %v369_v41, 4  ;;  %v384_v63 = vrot.slane %v382_v43, 5  ;;  %v6834_v41 = vld [vmem:[%s9704_s1 + $0x88] sm:$0xff]  }
  0x39   : > { %v5405_v56 = vcombine.low %v543_v47, %v553_v48  ;;  %v379_v61 = vor.u32 %v378_v42, %v374_v37  ;;  %v560_v1 = vrot.slane %v558_v49, 5  ;;  %v568_v3 = vshrl.u32 %v7198_v31, 16 }
  0x3a   : > { %6395 = vmatpush3.bf16.msra.mxu1 %v6827_v52  ;;  %6443 = vmatpush3.bf16.msra.mxu0 %v6828_v59  ;;  %v557_v52 = vrot.slane %v555_v45, 4  ;;  %v566_v2 = vrot.slane %v564_v50, 5  ;;  %v375_v10 = vsel %vm7050_vm2, %v370_v58, %v374_v37  ;;  %v574_v11 = vshll.u32 %v7208_v44, 16 }
  0x3b   : > { %6396 = vmatprep.subr.bf16.mxu1 %v6829_v30  ;;  %6444 = vmatprep.subr.bf16.mxu0 %v6830_v38  ;;  %v380_v59 = vrot.slane %v379_v61, 4  ;;  %v387_v12 = vshrl.u32 %v7221_v51, 16  ;;  %v570_v17 = vrot.slane %v568_v3, 4  ;;  %v390_v23 = vshll.u32 %v7221_v51, 16  ;;  %v7259_v61 = vld [vmem:[%s7019_s25 + $0xa4] sm:$0x1] }
  0x3c   : > { %6377 = vmatmul.mubr.bf16.gmra.mxu1 %v5405_v56  ;;  %v561_v15 = vor.u32 %v560_v1, %v557_v52  ;;  %v396_v24 = vshll.u32 %v7224_v54, 16  ;;  %v576_v34 = vrot.slane %v574_v11, 5  ;;  %v400_v37 = vshrl.u32 %v7224_v54, 16 }
  0x3d   : > { %v385_v33 = vsel %vm7050_vm2, %v380_v59, %v384_v63  ;;  %v389_v35 = vrot.slane %v387_v12, 4  ;;  %v571_v43 = vor.u32 %v570_v17, %v566_v2  ;;  %v392_v45 = vrot.slane %v390_v23, 5  ;;  %v7264_v59 = vld [vmem:[%s7019_s25 + $0x48] sm:$0xf]  ;;  %v7273_v17 = vld [vmem:[%s7019_s25 + $0x4c] sm:$0xf] }
  0x3e   : > { %6397 = vmatpush3.bf16.msra.mxu1 %v6829_v30  ;;  %6445 = vmatpush3.bf16.msra.mxu0 %v6830_v38  ;;  %v5398_v42 = vcombine.low %v375_v10, %v385_v33  ;;  %v562_v30 = vrot.slane %v561_v15, 4  ;;  %v398_v47 = vrot.slane %v396_v24, 5  ;;  %v402_v48 = vrot.slane %v400_v37, 4 }
  0x3f   : > { %6398 = vmatprep.subr.bf16.mxu1 %v6831_v46  ;;  %6446 = vmatprep.subr.bf16.mxu0 %v6832_v55  ;;  %v406_v49 = vshll.u32 %v7231_v7, 16  ;;  %v579_v50 = vshrl.u32 %v7234_v9, 16  ;;  %v572_v56 = vrot.slane %v571_v43, 4  ;;  %v393_v58 = vor.u32 %v392_v45, %v389_v35 }
  0x40   : > { %6364 = vmatprep.mubr.bf16.mxu0 %v5398_v42  ;;  %v567_v38 = vsel %vm7050_vm2, %v562_v30, %v566_v2  ;;  %v582_v63 = vshll.u32 %v7234_v9, 16  ;;  %v403_v52 = vor.u32 %v402_v48, %v398_v47  ;;  %v588_v10 = vshll.u32 %v7243_v28, 16  ;;  %v6835_v2 = vld [vmem:[%s9704_s1] sm:$0xff]   ;;  %v7282_v30 = vld [vmem:[%s7019_s25 + $0x50] sm:$0x1] }
  0x41   : > { %v408_v1 = vrot.slane %v406_v49, 5  ;;  %v581_v3 = vrot.slane %v579_v50, 4  ;;  %v577_v11 = vsel %vm7050_vm2, %v572_v56, %v576_v34  ;;  %v394_v12 = vrot.slane %v393_v58, 4 }
  0x42   : > { %6399 = vmatpush3.bf16.msra.mxu1 %v6831_v46  ;;  %6447 = vmatpush3.bf16.msra.mxu0 %v6832_v55  ;;  %v584_v15 = vrot.slane %v582_v63, 5  ;;  %v592_v46 = vshrl.u32 %v7243_v28, 16  ;;  %v6836_v55 = vld [vmem:[%s9704_s1 + $0x80] sm:$0xff]   ;;  %v5406_v23 = vcombine.low %v567_v38, %v577_v11  ;;  %v404_v24 = vrot.slane %v403_v52, 4  ;;  %v7290_v38 = vld [vmem:[%s7019_s25 + $0xa8] sm:$0xf] }
  0x43   : > { %6400 = vmatprep.subr.bf16.mxu1 %v6833_v29  ;;  %6448 = vmatprep.subr.bf16.mxu0 %v6834_v41  ;;  %v590_v33 = vrot.slane %v588_v10, 5  ;;  %v598_v35 = vshll.u32 %v7259_v61, 16  ;;  %v399_v34 = vsel %vm7050_vm2, %v394_v12, %v398_v47  ;;  %v411_v43 = vshrl.u32 %v7264_v59, 16  ;;  %9733 = vst [vmem:[#allocation2_spill] sm:$0xff] %v7290_v38  ;;  %v7295_v47 = vld [vmem:[%s9704_s1 + $0xf8] sm:$0xff]  }
  0x44   : > { %v585_v37 = vor.u32 %v584_v15, %v581_v3  ;;  %v594_v42 = vrot.slane %v592_v46, 4  ;;  %6380 = vmatprep.mubr.bf16.mxu1 %v5406_v23  ;;  %v409_v45 = vsel %vm7050_vm2, %v404_v24, %v408_v1  ;;  %v414_v49 = vshll.u32 %v7264_v59, 16  ;;  %v7298_v52 = vld [vmem:[%s7019_s25 + $0xac] sm:$0xf]  ;;  %v7303_v1 = vld [vmem:[%s9704_s1 + $0x138] sm:$0xff]  }
  0x45   : > { %v600_v48 = vrot.slane %v598_v35, 5  ;;  %v420_v50 = vshll.u32 %v7273_v17, 16  ;;  %v413_v63 = vrot.slane %v411_v43, 4  ;;  %v424_v10 = vshrl.u32 %v7273_v17, 16  ;;  %v7308_v12 = vld [vmem:[%s7019_s25 + $0xb0] sm:$0x1] }
  0x46   : > { %6401 = vmatpush3.bf16.msra.mxu1 %v6833_v29  ;;  %6449 = vmatpush3.bf16.msra.mxu0 %v6834_v41  ;;  %v5399_v29 = vcombine.low %v399_v34, %v409_v45  ;;  %v586_v56 = vrot.slane %v585_v37, 4  ;;  %v595_v58 = vor.u32 %v594_v42, %v590_v33  ;;  %v416_v41 = vrot.slane %v414_v49, 5  ;;  %9734 = vst [vmem:[#allocation3_spill] sm:$0xff] %v7308_v12  ;;  %v7311_v15 = vld [vmem:[%s7019_s25 + $0x54] sm:$0xf] }
  0x47   : > { %6402 = vmatprep.subr.bf16.mxu1 %v6835_v2  ;;  %6450 = vmatprep.subr.bf16.mxu0 %v6836_v55  ;;  %v422_v3 = vrot.slane %v420_v50, 5  ;;  %v430_v11 = vshll.u32 %v7282_v30, 16  ;;  %v603_v24 = vshrl.u32 %v7290_v38, 16  ;;  %v606_v35 = vshll.u32 %v7290_v38, 16  ;;  %v7318_v34 = vld [vmem:[%s7019_s25 + $0x58] sm:$0xf] }
  0x48   : > { %6365 = vmatmul.mubr.bf16.gmra.mxu0 %v5399_v29  ;;  %v591_v46 = vsel %vm7050_vm2, %v586_v56, %v590_v33  ;;  %v596_v23 = vrot.slane %v595_v58, 4  ;;  %v417_v37 = vor.u32 %v416_v41, %v413_v63  ;;  %v426_v42 = vrot.slane %v424_v10, 4 }
  0x49   : > { %v432_v43 = vrot.slane %v430_v11, 5  ;;  %v612_v45 = vshll.u32 %v7298_v52, 16  ;;  %v605_v49 = vrot.slane %v603_v24, 4  ;;  %v608_v50 = vrot.slane %v606_v35, 5 }
  0x4a   : > { %6403 = vmatpush3.bf16.msra.mxu1 %v6835_v2  ;;  %6451 = vmatpush3.bf16.msra.mxu0 %v6836_v55  ;;  %v601_v33 = vsel %vm7050_vm2, %v596_v23, %v600_v48  ;;  %v616_v29 = vshrl.u32 %v7298_v52, 16  ;;  %v418_v56 = vrot.slane %v417_v37, 4  ;;  %v427_v58 = vor.u32 %v426_v42, %v422_v3  ;;  %v7327_v55 = vld [vmem:[%s7019_s25 + $0x5c] sm:$0x1]  ;;  %v7332_v48 = vld [vmem:[%s7019_s25 + $0xb4] sm:$0xf] }
  0x4b   : > { %6484 = vmatprep.subr.bf16.mxu1 %v7295_v47  ;;  %6532 = vmatprep.subr.bf16.mxu0 %v7303_v1  ;;  %v5407_v2 = vcombine.low %v591_v46, %v601_v33  ;;  %v614_v63 = vrot.slane %v612_v45, 5  ;;  %v609_v41 = vor.u32 %v608_v50, %v605_v49  ;;  %v622_v11 = vshll.u32 %v7308_v12, 16  ;;  %9735 = vst [vmem:[#allocation4_spill] sm:$0xff] %v7332_v48  ;;  %v7339_v37 = vld [vmem:[%s7019_s25 + $0xb8] sm:$0xf] }
  0x4c   : > { %v618_v10 = vrot.slane %v616_v29, 4  ;;  %v435_v21 = vshrl.u32 %v7311_v15, 16  ;;  %v423_v23 = vsel %vm7050_vm2, %v418_v56, %v422_v3  ;;  %v428_v24 = vrot.slane %v427_v58, 4  ;;  %9736 = vst [vmem:[#allocation5_spill] sm:$0xff] %v7339_v37  ;;  %v7345_v3 = vld [vmem:[%s7019_s25 + $0xbc] sm:$0x1] }
  0x4d   : > { %6381 = vmatmul.mubr.bf16.gmra.mxu1 %v5407_v2  ;;  %v438_v46 = vshll.u32 %v7311_v15, 16  ;;  %v444_v35 = vshll.u32 %v7318_v34, 16  ;;  %v610_v42 = vrot.slane %v609_v41, 4  ;;  %v624_v33 = vrot.slane %v622_v11, 5  ;;  %9737 = vst [vmem:[#allocation6_spill] sm:$0xff] %v7345_v3 }
  0x4e   : > { %v619_v45 = vor.u32 %v618_v10, %v614_v63  ;;  %v437_v49 = vrot.slane %v435_v21, 4  ;;  %v433_v50 = vsel %vm7050_vm2, %v428_v24, %v432_v43  ;;  %v448_v62 = vshrl.u32 %v7318_v34, 16  ;;  %v1245_v10 = vld [vmem:[%s7019_s25] sm:$0xe] }
  0x4f   : > { %v440_v29 = vrot.slane %v438_v46, 5  ;;  %v446_v2 = vrot.slane %v444_v35, 5  ;;  %v5400_v56 = vcombine.low %v423_v23, %v433_v50  ;;  %v615_v58 = vsel %vm7050_vm2, %v610_v42, %v614_v63 }
  0x50   : > { %v620_v20 = vrot.slane %v619_v45, 4  ;;  %v454_v41 = vshll.u32 %v7327_v55, 16  ;;  %v450_v21 = vrot.slane %v448_v62, 4  ;;  %v627_v12 = vshrl.u32 %v7332_v48, 16 }
  0x51   : > { %v441_v11 = vor.u32 %v440_v29, %v437_v49  ;;  %v630_v43 = vshll.u32 %v7332_v48, 16  ;;  %6368 = vmatprep.mubr.bf16.mxu0 %v5400_v56  ;;  %v636_v46 = vshll.u32 %v7339_v37, 16  ;;  %v640_v63 = vshrl.u32 %v7339_v37, 16  ;;  %v1246_v49 = vld [vmem:[%s7019_s25 + $0xc] sm:$0xe] }
  0x52   : > { %v625_v24 = vsel %vm7050_vm2, %v620_v20, %v624_v33  ;;  %v456_v23 = vrot.slane %v454_v41, 5  ;;  %v451_v45 = vor.u32 %v450_v21, %v446_v2  ;;  %v629_v50 = vrot.slane %v627_v12, 4  ;;  %v1247_v20 = vld [vmem:[%s7019_s25 + $0x18] sm:$0xe] }
  0x53   : > { %v5408_v35 = vcombine.low %v615_v58, %v625_v24  ;;  %v442_v42 = vrot.slane %v441_v11, 4  ;;  %v632_v62 = vrot.slane %v630_v43, 5  ;;  %v638_v29 = vrot.slane %v636_v46, 5 }
  0x54   : > { %v642_v38 = vrot.slane %v640_v63, 4  ;;  %v646_v48 = vshll.u32 %v7345_v3, 16  ;;  %v452_v58 = vrot.slane %v451_v45, 4  ;;  %v5442_v41 = vrot.slane %v1245_v10, 9 }
  0x55   : > { %6384 = vmatprep.mubr.bf16.mxu1 %v5408_v35  ;;  %v447_v33 = vsel %vm7050_vm2, %v442_v42, %v446_v2  ;;  %v1298_v12 = vrot.slane %v7028_v5, 5  ;;  %v633_v11 = vor.u32 %v632_v62, %v629_v50  ;;  %v5443_v24 = vrot.slane %v1246_v49, 9 }
  0x56   : > { %v643_v21 = vor.u32 %v642_v38, %v638_v29  ;;  %v648_v43 = vrot.slane %v646_v48, 5  ;;  %v457_v46 = vsel %vm7050_vm2, %v452_v58, %v456_v23  ;;  %v1305_v35 = vrot.slane %v7055_v32, 5 }
  0x57   : > { %v1299_v63 = vsel %vm7361_vm5, %v5442_v41, %v1298_v12  ;;  %v1300_v3 = vrot.slane %v1298_v12, 4  ;;  %v5401_v37 = vcombine.low %v447_v33, %v457_v46  ;;  %v634_v2 = vrot.slane %v633_v11, 4  ;;  %v1249_v12 = vld [vmem:[%s7019_s25 + $0x30] sm:$0xe]  ;;  %v1251_v46 = vld [vmem:[%s7019_s25 + $0x48] sm:$0xe] }
  0x58   : > { %v644_v42 = vrot.slane %v643_v21, 4  ;;  %v5418_v10 = vcombine.low %v7025_v4, %v7028_v5  ;;  %v9740_v38 = vrot.slane %v7031_v6, 5  ;;  %v1307_v45 = vrot.slane %v1305_v35, 4 }
  0x59   : > { %v5444_v23 = vrot.slane %v1247_v20, 9  ;;  %6369 = vmatmul.mubr.bf16.gmra.mxu0 %v5401_v37  ;;  %v639_v50 = vsel %vm7050_vm2, %v634_v2, %v638_v29  ;;  %v1312_v33 = vrot.slane %v7092_v19, 5  ;;  %v1306_v4 = vsel %vm7361_vm5, %v5443_v24, %v1305_v35  ;;  %v1250_v24 = vld [vmem:[%s7019_s25 + $0x3c] sm:$0xe] }
  0x5a   : > { %v1302_v48 = vsel %vm7361_vm5, %v1300_v3, %v9740_v38  ;;  %v649_v49 = vsel %vm7050_vm2, %v644_v42, %v648_v43  ;;  %v9741_v5 = vrot.slane %v7061_v40, 5  ;;  %v1315_v37 = vrot.slane %v7097_v25, 5  ;;  %v1248_v3 = vld [vmem:[%s7019_s25 + $0x24] sm:$0xe]  ;;  %v6844_v25 = vld [vmem:[%s9704_s1 + $0x130] sm:$0xff]  }
  0x5b   : > { %v5474_v62 = vcombine.low %v1299_v63, %v1302_v48  ;;  %v5409_v58 = vcombine.low %v639_v50, %v649_v49  ;;  %v1313_v29 = vsel %vm7361_vm5, %v5444_v23, %v1312_v33  ;;  %v1314_v20 = vrot.slane %v1312_v33, 4  ;;  %v6843_v23 = vld [vmem:[%s9704_s1 + $0xf0] sm:$0xff]  }
  0x5c   : > { %v1309_v6 = vsel %vm7361_vm5, %v1307_v45, %v9741_v5  ;;  %v1319_v41 = vrot.slane %v7133_v0, 5  ;;  %v5445_v21 = vrot.slane %v1248_v3, 9  ;;  %v1326_v43 = vrot.slane %v7180_v60, 5  ;;  %v7436_v3 = vld [vmem:[%s7019_s25 + $0x68] sm:$0x1] }
  0x5d   : > { %6452 = vmatprep.mubr.bf16.mxu0 %v5474_v62  ;;  %6385 = vmatmul.mubr.bf16.gmra.mxu1 %v5409_v58  ;;  %v5475_v11 = vcombine.low %v1306_v4, %v1309_v6  ;;  %v1316_v40 = vsel %vm7361_vm5, %v1314_v20, %v1315_v37  ;;  %v1322_v2 = vrot.slane %v7136_v8, 5  ;;  %v5446_v42 = vrot.slane %v1249_v12, 9  ;;  %v1252_v37 = vld [vmem:[%s7019_s25 + $0x54] sm:$0xe]  ;;  %v7460_v12 = vld [vmem:[%s7019_s25 + $0x60] sm:$0xe] }
  0x5e   : > { %6404 = vmatprep.mubr.bf16.mxu1 %v5418_v10  ;;  %v5476_v63 = vcombine.low %v1313_v29, %v1316_v40  ;;  %v1321_v35 = vrot.slane %v1319_v41, 4  ;;  %v1328_v38 = vrot.slane %v1326_v43, 4  ;;  %v1329_v10 = vrot.slane %v7188_v16, 5 }
  0x5f   : > { %v1333_v48 = vrot.slane %v7224_v54, 5  ;;  %v5420_v45 = vcombine.low %v7084_v14, %v7092_v19  ;;  %v1340_v50 = vrot.slane %v7273_v17, 5  ;;  %v5447_v49 = vrot.slane %v1250_v24, 9  ;;  %v6852_v24 = vld [vmem:[%s9704_s1 + $0x120] sm:$0xff]  }
  0x60   : > { %v1336_v8 = vrot.slane %v7231_v7, 5  ;;  %v5448_v33 = vrot.slane %v1251_v46, 9  ;;  %v1320_v14 = vsel %vm7361_vm5, %v5445_v21, %v1319_v41  ;;  %v1323_v19 = vsel %vm7361_vm5, %v1321_v35, %v1322_v2  ;;  %v7472_v46 = vld [vmem:[%s7019_s25 + $0x78] sm:$0xe]  ;;  %v6851_v2 = vld [vmem:[%s9704_s1 + $0xe0] sm:$0xff]  }
  0x61   : > { %6453 = vmatmul.mubr.bf16.vlgmr.msra.gmra.mxu0 %v5475_v11  ;;  %v1335_v62 = vrot.slane %v1333_v48, 4  ;;  %v1342_v16 = vrot.slane %v1340_v50, 4  ;;  %v1343_v58 = vrot.slane %v7282_v30, 5  ;;  %v1327_v4 = vsel %vm7361_vm5, %v5446_v42, %v1326_v43  ;;  %v7463_v11 = vld [vmem:[%s7019_s25 + $0x6c] sm:$0xe] }
  0x62   : > { %6533 = vmatpush3.bf16.msra.mxu0 %v7303_v1  ;;  %6456 = vmatprep.mubr.bf16.mxu0 %v5476_v63  ;;  %v1330_v7 = vsel %vm7361_vm5, %v1328_v38, %v1329_v10  ;;  %v6848_v1 = vld [vmem:[%s9704_s1 + $0x128] sm:$0xff]   ;;  %v1347_v5 = vrot.slane %v7318_v34, 5  ;;  %v9742_v6 = vcombine.low %v7046_v26, %v7055_v32  ;;  %v5421_v30 = vcombine.low %v7124_v57, %v7133_v0  ;;  %v1256_v63 = vld [vmem:[%s7019_s25 + $0x84] sm:$0xe]  ;;  %v1257_v42 = vld [vmem:[%s7019_s25 + $0x90] sm:$0xe] }
  0x63   : > { %6534 = vmatprep.subr.bf16.mxu0 %v6844_v25  ;;  %v1357_v29 = vrot.slane %v7436_v3, 5  ;;  %v5477_v20 = vcombine.low %v1320_v14, %v1323_v19  ;;  %v7442_v41 = vsel %vm7361_vm5, %v5447_v49, %v1333_v48  ;;  %v7446_v26 = vsel %vm7361_vm5, %v1335_v62, %v1336_v8  ;;  %v6847_v32 = vld [vmem:[%s9704_s1 + $0xe8] sm:$0xff]   ;;  %v7491_v48 = vld [vmem:[%s7019_s25 + $0x64] sm:$0xf]  ;;  %v1258_v49 = vld [vmem:[%s7019_s25 + $0x9c] sm:$0xe] }
  0x64   : > { %v5478_v57 = vcombine.low %v1327_v4, %v1330_v7  ;;  %v7453_v0 = vsel %vm7361_vm5, %v5448_v33, %v1340_v50  ;;  %v5422_v40 = vcombine.low %v7171_v53, %v7180_v60  ;;  %v5449_v21 = vrot.slane %v1252_v37, 9  ;;  %v7513_v4 = vld [vmem:[%s7019_s25 + $0x74] sm:$0x1] }
  0x65   : > { %6405 = vmatmul.mubr.bf16.vlgmr.msra.gmra.mxu1 %v9742_v6  ;;  %v1350_v43 = vrot.slane %v7327_v55, 5  ;;  %v5423_v35 = vcombine.low %v7221_v51, %v7224_v54  ;;  %v5479_v53 = vcombine.low %v7442_v41, %v7446_v26  ;;  %v5424_v60 = vcombine.low %v7264_v59, %v7273_v17  ;;  %v6937_v54 = vld [vmem:[%s7019_s25 + $0x80] sm:$0x1] }
  0x66   : > { %6485 = vmatpush3.bf16.msra.mxu1 %v7295_v47  ;;  %6408 = vmatprep.mubr.bf16.mxu1 %v5420_v45  ;;  %v7457_v47 = vsel %vm7361_vm5, %v1342_v16, %v1343_v58  ;;  %v5425_v55 = vcombine.low %v7311_v15, %v7318_v34  ;;  %v5450_v10 = vrot.slane %v7460_v12, 9  ;;  %v1354_v45 = vrot.slane %v7491_v48, 5  ;;  %v7509_v16 = vld [vmem:[%s7019_s25 + $0x70] sm:$0xf]  ;;  %v6938_v17 = vld [vmem:[%s7019_s25 + $0x60] sm:$0xf] }
  0x67   : > { %6486 = vmatprep.subr.bf16.mxu1 %v6843_v23  ;;  %6535 = vmatpush3.bf16.msra.mxu0 %v6844_v25  ;;  %v1349_v25 = vrot.slane %v1347_v5, 4  ;;  %v5480_v38 = vcombine.low %v7453_v0, %v7457_v47  ;;  %v5451_v62 = vrot.slane %v7463_v11, 9  ;;  %v1375_v8 = vrot.slane %v7147_v22, 5  ;;  %v1259_v0 = vld [vmem:[%s7019_s25 + $0xa8] sm:$0xe]  ;;  %v7693_v15 = vld [vmem:[%s9704_s1 + $0x1b8] sm:$0xff]  }
  0x68   : > { %6536 = vmatprep.subr.bf16.mxu0 %v6848_v1  ;;  %v1378_v33 = vrot.slane %v7156_v36, 5  ;;  %v7502_v14 = vsel %vm7361_vm5, %v5449_v21, %v1347_v5  ;;  %v1361_v58 = vrot.slane %v7509_v16, 5  ;;  %v1364_v7 = vrot.slane %v7513_v4, 5  ;;  %v6855_v36 = vld [vmem:[%s9704_s1 + $0xd8] sm:$0xff]  }
  0x69   : > { %6457 = vmatmul.mubr.bf16.gmra.mxu0 %v5477_v20  ;;  %v7506_v19 = vsel %vm7361_vm5, %v1349_v25, %v1350_v43  ;;  %v5452_v5 = vrot.slane %v7472_v46, 9  ;;  %v1377_v37 = vrot.slane %v1375_v8, 4  ;;  %v5454_v41 = vrot.slane %v1257_v42, 9  ;;  %v5570_v42 = vld [vmem:[%s7019_s25 + $0xc] sm:$0xf] }
  0x6a   : > { %6487 = vmatpush3.bf16.msra.mxu1 %v6843_v23  ;;  %6460 = vmatprep.mubr.bf16.mxu0 %v5478_v57  ;;  %v5453_v23 = vrot.slane %v1256_v63, 9  ;;  %v1382_v26 = vrot.slane %v7198_v31, 5  ;;  %v1385_v57 = vrot.slane %v7208_v44, 5  ;;  %v1368_v47 = vrot.slane %v7106_v39, 5 }
  0x6b   : > { %6488 = vmatprep.subr.bf16.mxu1 %v6847_v32  ;;  %6537 = vmatpush3.bf16.msra.mxu0 %v6848_v1  ;;  %v6856_v1 = vld [vmem:[%s9704_s1 + $0x118] sm:$0xff]   ;;  %v7537_v21 = vsel %vm7361_vm5, %v1377_v37, %v1378_v33  ;;  %v1389_v63 = vrot.slane %v7243_v28, 5  ;;  %v5456_v33 = vrot.slane %v1259_v0, 9  ;;  %v1396_v37 = vrot.slane %v7298_v52, 5  ;;  %v6859_v0 = vld [vmem:[%s9704_s1 + $0xd0] sm:$0xff]  }
  0x6c   : > { %6538 = vmatprep.subr.bf16.mxu0 %v6852_v24  ;;  %v7525_v6 = vsel %vm7361_vm5, %v5453_v23, %v1375_v8  ;;  %v7545_v44 = vsel %vm7361_vm5, %v5454_v41, %v1382_v26  ;;  %v1384_v43 = vrot.slane %v1382_v26, 4  ;;  %v6860_v23 = vld [vmem:[%s9704_s1 + $0x110] sm:$0xff]   ;;  %v1392_v8 = vrot.slane %v7259_v61, 5  ;;  %v9744_v61 = vld [vmem:[#allocation3_spill] sm:$0xff] }
  0x6d   : > { %6409 = vmatmul.mubr.bf16.gmra.mxu1 %v5421_v30  ;;  %v1356_v30 = vrot.slane %v1354_v45, 4  ;;  %v1391_v20 = vrot.slane %v1389_v63, 4  ;;  %v1399_v50 = vrot.slane %v9744_v61, 5  ;;  %v1355_v61 = vsel %vm7361_vm5, %v5450_v10, %v1354_v45  ;;  %v5573_v45 = vld [vmem:[%s7019_s25 + $0x18] sm:$0xf] }
  0x6e   : > { %6412 = vmatprep.mubr.bf16.mxu1 %v5422_v40  ;;  %6489 = vmatpush3.bf16.msra.mxu1 %v6847_v32  ;;  %v5455_v40 = vrot.slane %v1258_v49, 9  ;;  %v7557_v32 = vld [vmem:[%s7019_s25 + $0x10] sm:$0xf]  ;;  %v7561_v41 = vsel %vm7361_vm5, %v1384_v43, %v1385_v57  ;;  %v1398_v57 = vrot.slane %v1396_v37, 4  ;;  %v2169_v12 = vshrl.u32 %v5570_v42, 16 }
  0x6f   : > { %6490 = vmatprep.subr.bf16.mxu1 %v6851_v2  ;;  %6539 = vmatpush3.bf16.msra.mxu0 %v6852_v24  ;;  %v9743_v24 = vld [vmem:[#allocation2_spill] sm:$0xff]  ;;  %v9746_v43 = vld [vmem:[#allocation4_spill] sm:$0xff]  ;;  %v2172_v10 = vshll.u32 %v5570_v42, 16  ;;  %v1363_v51 = vrot.slane %v1361_v58, 4  ;;  %v2178_v59 = vshll.u32 %v7557_v32, 16  ;;  %v1369_v4 = vsel %vm7361_vm5, %v5452_v5, %v1368_v47 }
  0x70   : > { %6540 = vmatprep.subr.bf16.mxu0 %v6856_v1  ;;  %v7565_v26 = vsel %vm7361_vm5, %v5455_v40, %v1389_v63  ;;  %v9745_v40 = vld [vmem:[#allocation5_spill] sm:$0xff]  ;;  %v7631_v42 = vld [vmem:[%s7019_s25 + $0x14] sm:$0x1]  ;;  %v2171_v63 = vrot.slane %v2169_v12, 4  ;;  %v9748_v5 = vld [vmem:[#allocation6_spill] sm:$0xff] }
  0x71   : > { %6461 = vmatmul.mubr.bf16.gmra.mxu0 %v5479_v53  ;;  %v2174_v49 = vrot.slane %v2172_v10, 5  ;;  %v5576_v53 = vld [vmem:[%s7019_s25 + $0x24] sm:$0xf]  ;;  %v1365_v11 = vsel %vm7361_vm5, %v1363_v51, %v1364_v7 }
  0x72   : > { %6491 = vmatpush3.bf16.msra.mxu1 %v6851_v2  ;;  %6464 = vmatprep.mubr.bf16.mxu0 %v5480_v38  ;;  %v7575_v2 = vsel %vm7361_vm5, %v5456_v33, %v1396_v37  ;;  %v5481_v38 = vcombine.low %v7502_v14, %v7506_v19  ;;  %v1358_v33 = vsel %vm7361_vm5, %v1356_v30, %v1357_v29  ;;  %v6864_v14 = vld [vmem:[%s9704_s1 + $0x108] sm:$0xff]   ;;  %v6868_v30 = vld [vmem:[%s9704_s1 + $0x100] sm:$0xff]   ;;  %v7650_v19 = vrot.slane %v2178_v59, 5 }
  0x73   : > { %6492 = vmatprep.subr.bf16.mxu1 %v6855_v36  ;;  %6541 = vmatpush3.bf16.msra.mxu0 %v6856_v1  ;;  %v7593_v37 = vsel %vm7361_vm5, %v1391_v20, %v1392_v8  ;;  %v7605_v29 = vsel %vm7361_vm5, %v1398_v57, %v1399_v50  ;;  %v6863_v50 = vld [vmem:[%s9704_s1 + $0xc8] sm:$0xff]   ;;  %v7620_v1 = vld [vmem:[%s7019_s25 + $0xb4] sm:$0xe]  ;;  %v5482_v20 = vcombine.low %v1355_v61, %v1358_v33  ;;  %v2182_v8 = vshrl.u32 %v7557_v32, 16  ;;  %v7648_v61 = vld [vmem:[%s7019_s25 + $0x1c] sm:$0xf] }
  0x74   : > { %6542 = vmatprep.subr.bf16.mxu0 %v6860_v23  ;;  %v7635_v57 = vld [vmem:[%s7019_s25 + $0x6c] sm:$0xf]  ;;  %v2193_v33 = vshrl.u32 %v5573_v45, 16  ;;  %v2202_v51 = vshll.u32 %v7648_v61, 16  ;;  %v2206_v39 = vshrl.u32 %v7648_v61, 16  ;;  %v2217_v59 = vshrl.u32 %v5576_v53, 16 }
  0x75   : > { %6413 = vmatmul.mubr.bf16.gmra.mxu1 %v5423_v35  ;;  %v1371_v35 = vrot.slane %v6937_v54, 5  ;;  %v5427_v54 = vcombine.low %v7635_v57, %v7509_v16  ;;  %v2184_v3 = vrot.slane %v2182_v8, 4  ;;  %v2220_v46 = vshll.u32 %v5576_v53, 16  ;;  %v6941_v8 = vld [vmem:[%s7019_s25 + $0x7c] sm:$0xf] }
  0x76   : > { %6416 = vmatprep.mubr.bf16.mxu1 %v5424_v60  ;;  %6493 = vmatpush3.bf16.msra.mxu1 %v6855_v36  ;;  %v5426_v60 = vcombine.low %v6938_v17, %v7491_v48  ;;  %v1370_v36 = vrot.slane %v1368_v47, 4  ;;  %v7645_v48 = vsel %vm7361_vm5, %v5451_v62, %v1361_v58  ;;  %v2196_v17 = vshll.u32 %v5573_v45, 16  ;;  %v6867_v58 = vld [vmem:[%s9704_s1 + $0xc0] sm:$0xff]   ;;  %v7675_v45 = vld [vmem:[%s7019_s25 + $0x28] sm:$0xf] }
  0x77   : > { %6494 = vmatprep.subr.bf16.mxu1 %v6859_v0  ;;  %6543 = vmatpush3.bf16.msra.mxu0 %v6860_v23  ;;  %v9716_v62 = vrot.slane %v9745_v40, 5  ;;  %v7662_v23 = vld [vmem:[%s7019_s25 + $0x20] sm:$0x1]  ;;  %v2195_v12 = vrot.slane %v2193_v33, 4  ;;  %9747 = vst [vmem:[#allocation2_spill] sm:$0xff] %v7675_v45  ;;  %v5483_v34 = vcombine.low %v7645_v48, %v1365_v11  ;;  %v2226_v53 = vshll.u32 %v7675_v45, 16 }
  0x78   : > { %6544 = vmatprep.subr.bf16.mxu0 %v6864_v14  ;;  %v2198_v10 = vrot.slane %v2196_v17, 5  ;;  %v1372_v7 = vsel %vm7361_vm5, %v1370_v36, %v1371_v35  ;;  %v2175_v35 = vor.u32 %v2174_v49, %v2171_v63  ;;  %v7688_v36 = vld [vmem:[%s9704_s1 + $0x178] sm:$0xff]   ;;  %v5579_v63 = vld [vmem:[%s7019_s25 + $0x30] sm:$0xf]  ;;  %v7709_v48 = vld [vmem:[%s7019_s25 + $0x34] sm:$0xf] }
  0x79   : > { %6465 = vmatmul.mubr.bf16.gmra.mxu0 %v5481_v38  ;;  %v2188_v38 = vshll.u32 %v7631_v42, 16  ;;  %v5484_v17 = vcombine.low %v1369_v4, %v1372_v7  ;;  %9750 = vst [vmem:[#allocation5_spill] sm:$0xff] %v7709_v48  ;;  %v7711_v11 = vrot.slane %v2202_v51, 5  ;;  %v2222_v47 = vrot.slane %v2220_v46, 5  ;;  %v7730_v46 = vld [vmem:[%s7019_s25 + $0x40] sm:$0xf] }
  0x7a   : > { %6495 = vmatpush3.bf16.msra.mxu1 %v6859_v0  ;;  %6468 = vmatprep.mubr.bf16.mxu0 %v5482_v20  ;;  %v2185_v20 = vor.u32 %v2184_v3, %v7650_v19  ;;  %v2199_v49 = vor.u32 %v2198_v10, %v2195_v12  ;;  %v6940_v3 = vld [vmem:[%s7019_s25 + $0x78] sm:$0xf]  ;;  %v2208_v12 = vrot.slane %v2206_v39, 4  ;;  %v2219_v10 = vrot.slane %v2217_v59, 4  ;;  %9751 = vst [vmem:[#allocation4_spill] sm:$0xff] %v7730_v46 }
  0x7b   : > { %6496 = vmatprep.subr.bf16.mxu1 %v6863_v50  ;;  %6545 = vmatpush3.bf16.msra.mxu0 %v6864_v14  ;;  %v2212_v14 = vshll.u32 %v7662_v23, 16  ;;  %v5428_v33 = vcombine.low %v6940_v3, %v6941_v8  ;;  %v7702_v25 = vrot.slane %v2188_v38, 5  ;;  %v7714_v0 = vld [vmem:[%s7019_s25 + $0x38] sm:$0x1]  ;;  %v7716_v4 = vrot.slane %v2175_v35, 4 }
  0x7c   : > { %6546 = vmatprep.subr.bf16.mxu0 %v6868_v30  ;;  %v7718_v7 = vrot.slane %v2185_v20, 4  ;;  %v2241_v3 = vshrl.u32 %v5579_v63, 16  ;;  %v5582_v8 = vld [vmem:[%s7019_s25 + $0x3c] sm:$0xf]  ;;  %v7726_v51 = vrot.slane %v2226_v53, 5  ;;  %v2244_v39 = vshll.u32 %v5579_v63, 16 }
  0x7d   : > { %6417 = vmatmul.mubr.bf16.gmra.mxu1 %v5425_v55  ;;  %v1405_v55 = vrot.slane %v9716_v62, 4  ;;  %v7720_v38 = vrot.slane %v2212_v14, 5  ;;  %v2250_v59 = vshll.u32 %v7709_v48, 16  ;;  %v2254_v20 = vshrl.u32 %v7709_v48, 16 }
  0x7e   : > { %6420 = vmatprep.mubr.bf16.mxu1 %v5426_v60  ;;  %6497 = vmatpush3.bf16.msra.mxu1 %v6863_v50  ;;  %v7705_v60 = vld [vmem:[%s7019_s25 + $0x2c] sm:$0x1]  ;;  %v2230_v50 = vshrl.u32 %v7675_v45, 16  ;;  %v2209_v14 = vor.u32 %v2208_v12, %v7711_v11  ;;  %v2243_v53 = vrot.slane %v2241_v3, 4  ;;  %v2246_v63 = vrot.slane %v2244_v39, 5 }
  0x7f   : > { %6498 = vmatprep.subr.bf16.mxu1 %v6867_v58  ;;  %9749 = vst [vmem:[#allocation3_spill] sm:$0xff] %v7705_v60  ;;  %6547 = vmatpush3.bf16.msra.mxu0 %v6868_v30  ;;  %v7724_v30 = vrot.slane %v2199_v49, 4  ;;  %v2265_v49 = vshrl.u32 %v5582_v8, 16  ;;  %v2268_v62 = vshll.u32 %v5582_v8, 16  ;;  %v2256_v48 = vrot.slane %v2254_v20, 4 }
  0x80   : > { %6628 = vmatprep.subr.bf16.mxu0 %v7693_v15  ;;  %v2232_v35 = vrot.slane %v2230_v50, 4  ;;  %v7740_v50 = vrot.slane %v2250_v59, 5  ;;  %v7743_v45 = vld [vmem:[%s7019_s25 + $0x44] sm:$0x1]  ;;  %v2278_v12 = vshrl.u32 %v7730_v46, 16  ;;  %v9752_v16 = vrot.slane %v9745_v40, 5 }
  0x81   : > { %6469 = vmatmul.mubr.bf16.gmra.mxu0 %v5483_v34  ;;  %v2236_v34 = vshll.u32 %v7705_v60, 16  ;;  %v9753_v57 = vrot.slane %v7620_v1, 9  ;;  %v7764_v39 = vld [vmem:[%s7019_s25 + $0x4c] sm:$0xf]  ;;  %v2267_v59 = vrot.slane %v2265_v49, 4  ;;  %v2270_v20 = vrot.slane %v2268_v62, 5 }
  0x82   : > { %6499 = vmatpush3.bf16.msra.mxu1 %v6867_v58  ;;  %6472 = vmatprep.mubr.bf16.mxu0 %v5484_v17  ;;  %v2223_v58 = vor.u32 %v2222_v47, %v2219_v10  ;;  %v2260_v17 = vshll.u32 %v7714_v0, 16  ;;  %v2274_v47 = vshll.u32 %v7730_v46, 16  ;;  %v5585_v10 = vld [vmem:[%s7019_s25 + $0x48] sm:$0xf]  ;;  %v2233_v8 = vor.u32 %v2232_v35, %v7726_v51 }
  0x83   : > { %6580 = vmatprep.subr.bf16.mxu1 %v7688_v36  ;;  %v2280_v1 = vrot.slane %v2278_v12, 4  ;;  %v7768_v46 = vrot.slane %v2209_v14, 4  ;;  %v2181_v62 = vsel %vm7050_vm2, %v7716_v4, %v7650_v19  ;;  %v2191_v35 = vsel %vm7050_vm2, %v7718_v7, %v7702_v25  ;;  %v5588_v4 = vld [vmem:[%s7019_s25 + $0x54] sm:$0xf] }
  0x84   : > { %v7766_v60 = vrot.slane %v2274_v47, 5  ;;  %v2292_v14 = vshll.u32 %v5585_v10, 16  ;;  %v2284_v49 = vshll.u32 %v7743_v45, 16  ;;  %v2302_v19 = vshrl.u32 %v7764_v39, 16 }
  0x85   : > { %6421 = vmatmul.mubr.bf16.gmra.mxu1 %v5427_v54  ;;  %v7754_v54 = vsel %vm7361_vm5, %v9753_v57, %v9752_v16  ;;  %v7770_v16 = vrot.slane %v2223_v58, 4  ;;  %v7772_v57 = vrot.slane %v2236_v34, 5  ;;  %v2298_v58 = vshll.u32 %v7764_v39, 16 }
  0x86   : > { %6424 = vmatprep.mubr.bf16.mxu1 %v5428_v33  ;;  %v9754_v33 = vrot.slane %v9748_v5, 5  ;;  %v2289_v5 = vshrl.u32 %v5585_v10, 16  ;;  %v9756_v34 = vcombine.low %v7545_v44, %v7561_v41  ;;  %v7793_v47 = vrot.slane %v2233_v8, 4  ;;  %v7799_v10 = vld [vmem:[%s7019_s25 + $0x58] sm:$0xf] }
  0x87   : > { %v7795_v12 = vrot.slane %v2260_v17, 5  ;;  %v2271_v25 = vor.u32 %v2270_v20, %v2267_v59  ;;  %v2281_v7 = vor.u32 %v2280_v1, %v7766_v60  ;;  %v9757_v44 = vcombine.low %v7140_v13, %v7147_v22  ;;  %v7805_v41 = vld [vmem:[%s7019_s25 + $0x50] sm:$0x1] }
  0x88   : > { %v7760_v3 = vsel %vm7361_vm5, %v1405_v55, %v9754_v33  ;;  %v9755_v55 = vcombine.low %v7525_v6, %v7537_v21  ;;  %v2247_v6 = vor.u32 %v2246_v63, %v2243_v53  ;;  %v2257_v21 = vor.u32 %v2256_v48, %v7740_v50 }
  0x89   : > { %v2291_v48 = vrot.slane %v2289_v5, 4  ;;  %v2294_v53 = vrot.slane %v2292_v14, 5  ;;  %v7807_v63 = vrot.slane %v2298_v58, 5  ;;  %v2304_v17 = vrot.slane %v2302_v19, 4  ;;  %v5591_v5 = vld [vmem:[%s7019_s25 + $0x60] sm:$0xf] }
  0x8a   : > { %6473 = vmatmul.mubr.bf16.gmra.mxu0 %v9755_v55  ;;  %v9758_v33 = vcombine.low %v7192_v18, %v7198_v31  ;;  %v2313_v8 = vshrl.u32 %v5588_v4, 16  ;;  %v2316_v59 = vshll.u32 %v5588_v4, 16  ;;  %v7812_v20 = vrot.slane %v2247_v6, 4  ;;  %v7829_v31 = vld [vmem:[%s7019_s25 + $0x64] sm:$0xf] }
  0x8b   : > { %6476 = vmatprep.mubr.bf16.mxu0 %v9756_v34  ;;  %v7814_v1 = vrot.slane %v2257_v21, 4  ;;  %v7816_v13 = vrot.slane %v2284_v49, 5  ;;  %v2322_v22 = vshll.u32 %v7799_v10, 16  ;;  %v5489_v55 = vcombine.low %v7754_v54, %v7760_v3  ;;  %v7825_v34 = vld [vmem:[%s7019_s25 + $0x5c] sm:$0x1] }
  0x8c   : > { %v5634_v14 = vcombine.low %v2181_v62, %v2191_v35  ;;  %v7822_v58 = vrot.slane %v2271_v25, 4  ;;  %v2326_v18 = vshrl.u32 %v7799_v10, 16  ;;  %v7831_v6 = vrot.slane %v2281_v7, 4 }
  0x8d   : > { %6425 = vmatmul.mubr.bf16.gmra.mxu1 %v9757_v44  ;;  %v2308_v21 = vshll.u32 %v7805_v41, 16  ;;  %v2337_v49 = vshrl.u32 %v5591_v5, 16  ;;  %v2340_v19 = vshll.u32 %v5591_v5, 16  ;;  %v9759_v4 = vcombine.low %v7565_v26, %v7593_v37 }
  0x8e   : > { %6428 = vmatprep.mubr.bf16.mxu1 %v9758_v33  ;;  %v2295_v54 = vor.u32 %v2294_v53, %v2291_v48  ;;  %v2305_v3 = vor.u32 %v2304_v17, %v7807_v63  ;;  %v2315_v62 = vrot.slane %v2313_v8, 4  ;;  %v2318_v35 = vrot.slane %v2316_v59, 5  ;;  %v7869_v8 = vld [vmem:[%s7019_s25 + $0x70] sm:$0xf] }
  0x8f   : > { %v9760_v25 = vcombine.low %v7575_v2, %v7605_v29  ;;  %v7841_v7 = vrot.slane %v2322_v22, 5  ;;  %v2328_v44 = vrot.slane %v2326_v18, 4  ;;  %v2332_v33 = vshll.u32 %v7825_v34, 16 }
  0x90   : > { %v2346_v26 = vshll.u32 %v7829_v31, 16  ;;  %v2205_v37 = vsel %vm7050_vm2, %v7724_v30, %v7711_v11  ;;  %v2215_v2 = vsel %vm7050_vm2, %v7768_v46, %v7720_v38  ;;  %v2339_v29 = vrot.slane %v2337_v49, 4  ;;  %v5594_v46 = vld [vmem:[%s7019_s25 + $0x6c] sm:$0xf] }
  0x91   : > { %v2342_v48 = vrot.slane %v2340_v19, 5  ;;  %v9761_v53 = vcombine.low %v7234_v9, %v7243_v28  ;;  %v2229_v17 = vsel %vm7050_vm2, %v7770_v16, %v7726_v51  ;;  %v2239_v11 = vsel %vm7050_vm2, %v7793_v47, %v7772_v57  ;;  %v7877_v16 = vld [vmem:[%s7019_s25 + $0x68] sm:$0x1] }
  0x92   : > { %6477 = vmatmul.mubr.bf16.gmra.mxu0 %v9759_v4  ;;  %v7864_v30 = vrot.slane %v2308_v21, 5  ;;  %v2350_v38 = vshrl.u32 %v7829_v31, 16  ;;  %v9762_v9 = vcombine.low %v9743_v24, %v7298_v52  ;;  %v7874_v28 = vrot.slane %v2295_v54, 4  ;;  %v6869_v52 = vld [vmem:[%s7019_s25 + $0xc] sm:$0xff]  }
  0x93   : > { %6480 = vmatprep.mubr.bf16.mxu0 %v9760_v25  ;;  %v2319_v51 = vor.u32 %v2318_v35, %v2315_v62  ;;  %v2361_v59 = vshrl.u32 %v5594_v46, 16  ;;  %v2364_v57 = vshll.u32 %v5594_v46, 16  ;;  %v7879_v47 = vrot.slane %v2305_v3, 4  ;;  %v7890_v62 = vld [vmem:[%s7019_s25 + $0x74] sm:$0x1] }
  0x94   : > { %v2329_v22 = vor.u32 %v2328_v44, %v7841_v7  ;;  %v7882_v5 = vrot.slane %v2332_v33, 5  ;;  %v2370_v18 = vshll.u32 %v7869_v8, 16  ;;  %v2343_v24 = vor.u32 %v2342_v48, %v2339_v29  ;;  %v5597_v25 = vld [vmem:[%s7019_s25 + $0x78] sm:$0xf]  ;;  %v7894_v44 = vld [vmem:[%s7019_s25 + $0x7c] sm:$0xf] }
  0x95   : > { %6429 = vmatmul.mubr.bf16.gmra.mxu1 %v9761_v53  ;;  %v7886_v21 = vrot.slane %v2346_v26, 5  ;;  %v2352_v49 = vrot.slane %v2350_v38, 4  ;;  %v2374_v19 = vshrl.u32 %v7869_v8, 16  ;;  %v5635_v4 = vcombine.low %v2205_v37, %v2215_v2  ;;  %v7901_v26 = vld [vmem:[%s7019_s25 + $0x80] sm:$0x1] }
  0x96   : > { %6432 = vmatprep.mubr.bf16.mxu1 %v9762_v9  ;;  %v5636_v54 = vcombine.low %v2229_v17, %v2239_v11  ;;  %v2363_v3 = vrot.slane %v2361_v59, 4  ;;  %v2366_v35 = vrot.slane %v2364_v57, 5  ;;  %v7896_v33 = vrot.slane %v2319_v51, 4 }
  0x97   : > { %v7898_v53 = vrot.slane %v2370_v18, 5  ;;  %v2376_v29 = vrot.slane %v2374_v19, 4  ;;  %v2385_v48 = vshrl.u32 %v5597_v25, 16  ;;  %v2356_v37 = vshll.u32 %v7877_v16, 16  ;;  %v5600_v19 = vld [vmem:[%s7019_s25 + $0x84] sm:$0xf] }
  0x98   : > { %v2388_v2 = vshll.u32 %v5597_v25, 16  ;;  %v2394_v17 = vshll.u32 %v7894_v44, 16  ;;  %v2398_v11 = vshrl.u32 %v7894_v44, 16  ;;  %v7906_v38 = vrot.slane %v2329_v22, 4  ;;  %v6873_v25 = vld [vmem:[%s7019_s25 + $0x24] sm:$0xff]  }
  0x99   : > { %v7908_v46 = vrot.slane %v2343_v24, 4  ;;  %v2387_v9 = vrot.slane %v2385_v48, 4  ;;  %v9763_v51 = vcombine.low %v9746_v43, %v9745_v40  ;;  %v2253_v22 = vsel %vm7050_vm2, %v7812_v20, %v7740_v50 }
  0x9a   : > { %6481 = vmatmul.mubr.bf16.gmra.mxu0 %v5489_v55  ;;  %v2353_v55 = vor.u32 %v2352_v49, %v7886_v21  ;;  %v2390_v59 = vrot.slane %v2388_v2, 5  ;;  %v7914_v57 = vrot.slane %v2394_v17, 5  ;;  %v2400_v18 = vrot.slane %v2398_v11, 4  ;;  %v7963_v17 = vld [vmem:[%s7019_s25 + $0x8c] sm:$0x1] }
  0x9b   : > { %6548 = vmatprep.mubr.bf16.mxu0 %v5634_v14  ;;  %v2367_v14 = vor.u32 %v2366_v35, %v2363_v3  ;;  %v2377_v24 = vor.u32 %v2376_v29, %v7898_v53  ;;  %v2380_v49 = vshll.u32 %v7890_v62, 16  ;;  %v2404_v40 = vshll.u32 %v7901_v26, 16  ;;  %v7937_v3 = vld [vmem:[%s7019_s25 + $0x88] sm:$0xf]  ;;  %v6870_v35 = vld [vmem:[%s7019_s25 + $0x18] sm:$0xff]  }
  0x9c   : > { %v2263_v43 = vsel %vm7050_vm2, %v7814_v1, %v7795_v12  ;;  %v2287_v50 = vsel %vm7050_vm2, %v7831_v6, %v7816_v13  ;;  %v2391_v20 = vor.u32 %v2390_v59, %v2387_v9  ;;  %v6876_v12 = vld [vmem:[%s9704_s1 + $0x1b0] sm:$0xff]   ;;  %v7944_v1 = vrot.slane %v2356_v37, 5  ;;  %v7968_v11 = vld [vmem:[%s9704_s1 + $0x1a8] sm:$0xff]  }
  0x9d   : > { %6433 = vmatmul.mubr.bf16.gmra.mxu1 %v9763_v51  ;;  %v2412_v29 = vshll.u32 %v5600_v19, 16  ;;  %v6875_v13 = vld [vmem:[%s9704_s1 + $0x170] sm:$0xff]   ;;  %v2301_v6 = vsel %vm7050_vm2, %v7874_v28, %v7807_v63  ;;  %v2311_v48 = vsel %vm7050_vm2, %v7879_v47, %v7864_v30  ;;  %v7958_v37 = vrot.slane %v2353_v55, 4 }
  0x9e   : > { %6500 = vmatprep.mubr.bf16.mxu1 %v6869_v52  ;;  %v2277_v52 = vsel %vm7050_vm2, %v7822_v58, %v7766_v60  ;;  %v2401_v60 = vor.u32 %v2400_v18, %v7914_v57  ;;  %v2409_v58 = vshrl.u32 %v5600_v19, 16  ;;  %v7960_v2 = vrot.slane %v2367_v14, 4  ;;  %v5603_v14 = vld [vmem:[%s7019_s25 + $0x90] sm:$0xf]  ;;  %v7991_v59 = vld [vmem:[%s7019_s25 + $0x94] sm:$0xf] }
  0x9f   : > { %v7970_v63 = vrot.slane %v2377_v24, 4  ;;  %v7972_v28 = vrot.slane %v2380_v49, 5  ;;  %v2418_v30 = vshll.u32 %v7937_v3, 16  ;;  %v2422_v47 = vshrl.u32 %v7937_v3, 16  ;;  %9764 = vst [vmem:[#allocation6_spill] sm:$0xff] %v7991_v59 }
  0xa0   : > { %v2335_v55 = vsel %vm7050_vm2, %v7906_v38, %v7882_v5  ;;  %v7985_v9 = vrot.slane %v2391_v20, 4  ;;  %v7987_v51 = vrot.slane %v2404_v40, 5  ;;  %v2414_v18 = vrot.slane %v2412_v29, 5  ;;  %v6879_v5 = vld [vmem:[%s9704_s1 + $0x168] sm:$0xff]  }
  0xa1   : > { %v2436_v38 = vshll.u32 %v5603_v14, 16  ;;  %v2442_v24 = vshll.u32 %v7991_v59, 16  ;;  %v2446_v49 = vshrl.u32 %v7991_v59, 16  ;;  %v5637_v40 = vcombine.low %v2253_v22, %v2263_v43 }
  0xa2   : > { %6549 = vmatmul.mubr.bf16.vlgmr.msra.gmra.mxu0 %v5635_v4  ;;  %v2325_v4 = vsel %vm7050_vm2, %v7896_v33, %v7841_v7  ;;  %v2428_v7 = vshll.u32 %v7963_v17, 16  ;;  %v2433_v33 = vshrl.u32 %v5603_v14, 16  ;;  %v5638_v20 = vcombine.low %v2277_v52, %v2287_v50 }
  0xa3   : > { %6629 = vmatpush3.bf16.msra.mxu0 %v7693_v15  ;;  %6552 = vmatprep.mubr.bf16.mxu0 %v5636_v54  ;;  %v7993_v15 = vrot.slane %v2401_v60, 4  ;;  %v2411_v54 = vrot.slane %v2409_v58, 4  ;;  %v8002_v19 = vrot.slane %v2418_v30, 5  ;;  %v6874_v60 = vld [vmem:[%s7019_s25 + $0x30] sm:$0xff]   ;;  %v6884_v58 = vld [vmem:[%s9704_s1 + $0x1a0] sm:$0xff]   ;;  %v2438_v14 = vrot.slane %v2436_v38, 5 }
  0xa4   : > { %6630 = vmatprep.subr.bf16.mxu0 %v6876_v12  ;;  %v2435_v29 = vrot.slane %v2433_v33, 4  ;;  %v2448_v22 = vrot.slane %v2446_v49, 4  ;;  %v8010_v43 = vcombine.low %v2301_v6, %v2311_v48  ;;  %v8013_v52 = vcombine.low %v2325_v4, %v2335_v55  ;;  %v5606_v30 = vld [vmem:[%s7019_s25 + $0x9c] sm:$0xf]  ;;  %v8035_v4 = vld [vmem:[%s7019_s25 + $0xa4] sm:$0x1] }
  0xa5   : > { %6501 = vmatmul.mubr.bf16.vlgmr.msra.gmra.mxu1 %v6870_v35  ;;  %v2424_v35 = vrot.slane %v2422_v47, 4  ;;  %v2415_v48 = vor.u32 %v2414_v18, %v2411_v54  ;;  %v8032_v47 = vld [vmem:[%s7019_s25 + $0xa0] sm:$0xf]  ;;  %9767 = vst [vmem:[#allocation9_spill] sm:$0xff] %v8035_v4  ;;  %v2457_v55 = vshrl.u32 %v5606_v30, 16  ;;  %v2460_v33 = vshll.u32 %v5606_v30, 16 }
  0xa6   : > { %6581 = vmatpush3.bf16.msra.mxu1 %v7688_v36  ;;  %6504 = vmatprep.mubr.bf16.mxu1 %v6873_v25  ;;  %v8008_v36 = vrot.slane %v2442_v24, 5  ;;  %v2359_v25 = vsel %vm7050_vm2, %v7958_v37, %v7944_v1  ;;  %9766 = vst [vmem:[#allocation8_spill] sm:$0xff] %v8032_v47  ;;  %v6877_v38 = vld [vmem:[%s7019_s25 + $0x3c] sm:$0xff]   ;;  %v2466_v37 = vshll.u32 %v8032_v47, 16  ;;  %v2470_v24 = vshrl.u32 %v8032_v47, 16 }
  0xa7   : > { %6582 = vmatprep.subr.bf16.mxu1 %v6875_v13  ;;  %6631 = vmatpush3.bf16.msra.mxu0 %v6876_v12  ;;  %v8024_v12 = vld [vmem:[%s7019_s25 + $0x98] sm:$0x1]  ;;  %v2425_v1 = vor.u32 %v2424_v35, %v8002_v19  ;;  %v6883_v54 = vld [vmem:[%s9704_s1 + $0x160] sm:$0xff]   ;;  %v2439_v18 = vor.u32 %v2438_v14, %v2435_v29  ;;  %v2459_v30 = vrot.slane %v2457_v55, 4  ;;  %v2462_v49 = vrot.slane %v2460_v33, 5 }
  0xa8   : > { %6632 = vmatprep.subr.bf16.mxu0 %v7968_v11  ;;  %9765 = vst [vmem:[#allocation7_spill] sm:$0xff] %v8024_v12  ;;  %v2452_v35 = vshll.u32 %v8024_v12, 16  ;;  %v2472_v6 = vrot.slane %v2470_v24, 4  ;;  %v2476_v50 = vshll.u32 %v8035_v4, 16  ;;  %v5609_v47 = vld [vmem:[%s7019_s25 + $0xa8] sm:$0xf] }
  0xa9   : > { %v6887_v29 = vld [vmem:[%s9704_s1 + $0x158] sm:$0xff]   ;;  %v8058_v14 = vrot.slane %v2415_v48, 4  ;;  %v2481_v55 = vshrl.u32 %v5609_v47, 16  ;;  %v2484_v33 = vshll.u32 %v5609_v47, 16  ;;  %v8071_v4 = vld [vmem:[%s7019_s25 + $0xb0] sm:$0x1] }
  0xaa   : > { %6553 = vmatmul.mubr.bf16.gmra.mxu0 %v5637_v40  ;;  %6583 = vmatpush3.bf16.msra.mxu1 %v6875_v13  ;;  %v6888_v13 = vld [vmem:[%s9704_s1 + $0x198] sm:$0xff]   ;;  %v2449_v40 = vor.u32 %v2448_v22, %v8008_v36  ;;  %v8060_v22 = vrot.slane %v2428_v7, 5  ;;  %v6878_v48 = vld [vmem:[%s7019_s25 + $0x48] sm:$0xff]   ;;  %v8074_v7 = vrot.slane %v2425_v1, 4  ;;  %v8076_v12 = vrot.slane %v2439_v18, 4 }
  0xab   : > { %6556 = vmatprep.mubr.bf16.mxu0 %v5638_v20  ;;  %6584 = vmatprep.subr.bf16.mxu1 %v6879_v5  ;;  %v8051_v20 = vrot.slane %v2466_v37, 5  ;;  %v2463_v37 = vor.u32 %v2462_v49, %v2459_v30  ;;  %v8078_v59 = vrot.slane %v2452_v35, 5  ;;  %v6891_v49 = vld [vmem:[%s9704_s1 + $0x150] sm:$0xff]   ;;  %v8095_v18 = vrot.slane %v2484_v33, 5 }
  0xac   : > { %6633 = vmatpush3.bf16.msra.mxu0 %v7968_v11  ;;  %v8063_v11 = vld [vmem:[%s7019_s25 + $0xac] sm:$0xf]  ;;  %v2500_v35 = vshll.u32 %v8071_v4, 16 }
  0xad   : > { %6505 = vmatmul.mubr.bf16.gmra.mxu1 %v6874_v60  ;;  %6634 = vmatprep.subr.bf16.mxu0 %v6884_v58  ;;  %9768 = vst [vmem:[#allocation10_spill] sm:$0xff] %v8063_v11  ;;  %v2383_v60 = vsel %vm7050_vm2, %v7970_v63, %v7972_v28  ;;  %v2473_v24 = vor.u32 %v2472_v6, %v8051_v20  ;;  %v2490_v47 = vshll.u32 %v8063_v11, 16  ;;  %v6881_v63 = vld [vmem:[%s7019_s25 + $0x54] sm:$0xff]   ;;  %v8085_v28 = vrot.slane %v2449_v40, 4 }
  0xae   : > { %6508 = vmatprep.mubr.bf16.mxu1 %v6877_v38  ;;  %6585 = vmatpush3.bf16.msra.mxu1 %v6879_v5  ;;  %v6892_v5 = vld [vmem:[%s9704_s1 + $0x190] sm:$0xff]   ;;  %v8087_v6 = vrot.slane %v2476_v50, 5  ;;  %v8089_v38 = vrot.slane %v2481_v55, 4  ;;  %v2494_v1 = vshrl.u32 %v8063_v11, 16  ;;  %v8104_v40 = vrot.slane %v2463_v37, 4 }
  0xaf   : > { %6586 = vmatprep.subr.bf16.mxu1 %v6883_v54  ;;  %v8106_v30 = vrot.slane %v2473_v24, 4  ;;  %v5612_v55 = vld [vmem:[%s7019_s25 + $0xb4] sm:$0xf]  ;;  %v8110_v11 = vld [vmem:[%s7019_s25 + $0xb8] sm:$0xf]  ;;  %v6895_v24 = vld [vmem:[%s9704_s1 + $0x148] sm:$0xff]  }
  0xb0   : > { %6635 = vmatpush3.bf16.msra.mxu0 %v6884_v58  ;;  %v9769_v58 = vsel %vm7050_vm2, %v7908_v46, %v7886_v21  ;;  %9770 = vst [vmem:[#allocation11_spill] sm:$0xff] %v8110_v11  ;;  %v2397_v21 = vsel %vm7050_vm2, %v7985_v9, %v7914_v57  ;;  %v8122_v46 = vrot.slane %v2490_v47, 5  ;;  %v5615_v37 = vld [vmem:[%s7019_s25 + $0xc0] sm:$0xf]  ;;  %v2407_v57 = vsel %vm7050_vm2, %v7993_v15, %v7987_v51  ;;  %v8149_v47 = vld [vmem:[%s7019_s25 + $0xc4] sm:$0xf] }
  0xb1   : > { %6636 = vmatprep.subr.bf16.mxu0 %v6888_v13  ;;  %v5641_v50 = vcombine.low %v9769_v58, %v2359_v25  ;;  %v2505_v25 = vshrl.u32 %v5612_v55, 16  ;;  %v2421_v9 = vsel %vm7050_vm2, %v8058_v14, %v8002_v19  ;;  %9773 = vst [vmem:[#allocation13_spill] sm:$0xff] %v8149_v47  ;;  %v8152_v51 = vld [vmem:[%s7019_s25 + $0xc8] sm:$0x1]  ;;  %v2538_v58 = vshll.u32 %v8149_v47, 16 }
  0xb2   : > { %6557 = vmatmul.mubr.bf16.gmra.mxu0 %v8010_v43  ;;  %6587 = vmatpush3.bf16.msra.mxu1 %v6883_v54  ;;  %v9771_v43 = vsel %vm7050_vm2, %v7960_v2, %v7898_v53  ;;  %v2496_v54 = vrot.slane %v2494_v1, 4  ;;  %v2508_v53 = vshll.u32 %v5612_v55, 16  ;;  %v2514_v2 = vshll.u32 %v8110_v11, 16 }
  0xb3   : > { %6560 = vmatprep.mubr.bf16.mxu0 %v8013_v52  ;;  %v5642_v33 = vcombine.low %v9771_v43, %v2383_v60  ;;  %6588 = vmatprep.subr.bf16.mxu1 %v6887_v29  ;;  %v6896_v52 = vld [vmem:[%s9704_s1 + $0x188] sm:$0xff]   ;;  %v2518_v60 = vshrl.u32 %v8110_v11, 16  ;;  %v2507_v15 = vrot.slane %v2505_v25, 4  ;;  %v9774_v55 = vrot.slane %v7557_v32, 5 }
  0xb4   : > { %6637 = vmatpush3.bf16.msra.mxu0 %v6888_v13  ;;  %v2431_v13 = vsel %vm7050_vm2, %v8074_v7, %v8060_v22  ;;  %v2510_v19 = vrot.slane %v2508_v53, 5  ;;  %v8154_v14 = vrot.slane %v2514_v2, 5  ;;  %v2529_v22 = vshrl.u32 %v5615_v37, 16  ;;  %v6882_v2 = vld [vmem:[%s7019_s25 + $0x60] sm:$0xff]  }
  0xb5   : > { %6509 = vmatmul.mubr.bf16.gmra.mxu1 %v6878_v48  ;;  %6638 = vmatprep.subr.bf16.mxu0 %v6892_v5  ;;  %v8146_v48 = vld [vmem:[%s7019_s25 + $0xbc] sm:$0x1]  ;;  %v2520_v1 = vrot.slane %v2518_v60, 4  ;;  %v2532_v7 = vshll.u32 %v5615_v37, 16  ;;  %v8159_v43 = vrot.slane %v9774_v55, 4  ;;  %v8164_v25 = vrot.slane %v2500_v35, 5 }
  0xb6   : > { %9772 = vst [vmem:[#allocation12_spill] sm:$0xff] %v8146_v48  ;;  %6512 = vmatprep.mubr.bf16.mxu1 %v6881_v63  ;;  %6589 = vmatpush3.bf16.msra.mxu1 %v6887_v29  ;;  %v2487_v63 = vor.u32 %v8095_v18, %v8089_v38  ;;  %v2497_v29 = vor.u32 %v2496_v54, %v8122_v46  ;;  %v2542_v53 = vshrl.u32 %v8149_v47, 16  ;;  %v2524_v60 = vshll.u32 %v8146_v48, 16  ;;  %v6885_v38 = vld [vmem:[%s7019_s25 + $0x6c] sm:$0xff]   ;;  %v8184_v48 = vld [vmem:[%s7019_s25 + $0x18] sm:$0xe] }
  0xb7   : > { %6590 = vmatprep.subr.bf16.mxu1 %v6891_v49  ;;  %v2531_v37 = vrot.slane %v2529_v22, 4  ;;  %v2534_v11 = vrot.slane %v2532_v7, 5  ;;  %v8169_v55 = vrot.slane %v2538_v58, 5  ;;  %v2511_v18 = vor.u32 %v2510_v19, %v2507_v15  ;;  %v6899_v22 = vld [vmem:[%s9704_s1 + $0x140] sm:$0xff]   ;;  %v8181_v58 = vld [vmem:[%s7019_s25 + $0xc] sm:$0xe] }
  0xb8   : > { %6639 = vmatpush3.bf16.msra.mxu0 %v6892_v5  ;;  %v6900_v5 = vld [vmem:[%s9704_s1 + $0x180] sm:$0xff]   ;;  %v2521_v35 = vor.u32 %v2520_v1, %v8154_v14  ;;  %v2544_v54 = vrot.slane %v2542_v53, 4  ;;  %v2548_v47 = vshll.u32 %v8152_v51, 16  ;;  %v5643_v15 = vcombine.low %v2397_v21, %v2407_v57 }
  0xb9   : > { %6640 = vmatprep.subr.bf16.mxu0 %v6896_v52  ;;  %v2535_v7 = vor.u32 %v2534_v11, %v2531_v37  ;;  %v5644_v19 = vcombine.low %v2421_v9, %v2431_v13  ;;  %v8192_v1 = vrot.slane %v2487_v63, 4  ;;  %v8194_v11 = vrot.slane %v2497_v29, 4  ;;  %v6886_v9 = vld [vmem:[%s7019_s25 + $0x78] sm:$0xff]   ;;  %v6889_v37 = vld [vmem:[%s7019_s25 + $0x84] sm:$0xff]  }
  0xba   : > { %6561 = vmatmul.mubr.bf16.gmra.mxu0 %v5641_v50  ;;  %6591 = vmatpush3.bf16.msra.mxu1 %v6891_v49  ;;  %v8189_v49 = vld [vmem:[%s9704_s1 + $0x238] sm:$0xff]   ;;  %v2545_v50 = vor.u32 %v2544_v54, %v8169_v55  ;;  %v8203_v53 = vrot.slane %v2521_v35, 4  ;;  %v8205_v21 = vrot.slane %v2524_v60, 5  ;;  %v8211_v63 = vrot.slane %v2548_v47, 5  ;;  %v5661_v60 = vld [vmem:[%s7019_s25 + $0x30] sm:$0xe] }
  0xbb   : > { %6564 = vmatprep.mubr.bf16.mxu0 %v5642_v33  ;;  %6592 = vmatprep.subr.bf16.mxu1 %v6895_v24  ;;  %v8199_v33 = vld [vmem:[%s9704_s1 + $0x1f8] sm:$0xff]   ;;  %v8209_v13 = vrot.slane %v2535_v7, 4  ;;  %v2943_v29 = vrot.slane %v7631_v42, 5  ;;  %v9775_v35 = vld [vmem:[#allocation2_spill] sm:$0xff]  ;;  %v5677_v47 = vrot.slane %v5661_v60, 9  ;;  %v9778_v60 = vld [vmem:[#allocation3_spill] sm:$0xff] }
  0xbc   : > { %6641 = vmatpush3.bf16.msra.mxu0 %v6896_v52  ;;  %v8201_v52 = vrot.slane %v2511_v18, 4  ;;  %v9776_v7 = vld [vmem:[#allocation5_spill] sm:$0xff]  ;;  %v2964_v18 = vrot.slane %v7714_v0, 5  ;;  %v2479_v0 = vsel %vm7050_vm2, %v8106_v30, %v8087_v6  ;;  %v2978_v30 = vrot.slane %v7805_v41, 5 }
  0xbd   : > { %6513 = vmatmul.mubr.bf16.gmra.mxu1 %v6882_v2  ;;  %6642 = vmatprep.subr.bf16.mxu0 %v6900_v5  ;;  %v2961_v57 = vrot.slane %v9776_v7, 5  ;;  %v9777_v2 = vld [vmem:[#allocation4_spill] sm:$0xff] }
  0xbe   : > { %6516 = vmatprep.mubr.bf16.mxu1 %v6885_v38  ;;  %6593 = vmatpush3.bf16.msra.mxu1 %v6895_v24  ;;  %v8216_v24 = vrot.slane %v2545_v50, 4  ;;  %v2947_v38 = vrot.slane %v7648_v61, 5  ;;  %v2445_v50 = vsel %vm7050_vm2, %v8076_v12, %v8008_v36  ;;  %v2968_v54 = vrot.slane %v9777_v2, 5  ;;  %v5662_v12 = vld [vmem:[%s7019_s25 + $0x3c] sm:$0xe] }
  0xbf   : > { %6594 = vmatprep.subr.bf16.mxu1 %v6899_v22  ;;  %v8238_v7 = vsel %vm7361_vm5, %v5677_v47, %v2961_v57  ;;  %v2963_v36 = vrot.slane %v2961_v57, 4  ;;  %v5678_v2 = vrot.slane %v5662_v12, 9  ;;  %v6890_v47 = vld [vmem:[%s7019_s25 + $0x90] sm:$0xff]   ;;  %v2985_v12 = vrot.slane %v7825_v34, 5 }
  0xc0   : > { %6643 = vmatpush3.bf16.msra.mxu0 %v6900_v5  ;;  %v2455_v5 = vsel %vm7050_vm2, %v8085_v28, %v8078_v59  ;;  %v2469_v59 = vsel %vm7050_vm2, %v8104_v40, %v8051_v20  ;;  %v2970_v28 = vrot.slane %v2968_v54, 4  ;;  %v2975_v20 = vrot.slane %v7764_v39, 5 }
  0xc1   : > { %6724 = vmatprep.subr.bf16.mxu0 %v8189_v49  ;;  %v8252_v57 = vsel %vm7361_vm5, %v2963_v36, %v2964_v18  ;;  %v5646_v18 = vcombine.low %v2469_v59, %v2479_v0  ;;  %v8267_v39 = vsel %vm7361_vm5, %v5678_v2, %v2968_v54  ;;  %v2493_v36 = vsel %vm7050_vm2, %v8192_v1, %v8122_v46  ;;  %v5664_v54 = vld [vmem:[%s7019_s25 + $0x54] sm:$0xe] }
  0xc2   : > { %6565 = vmatmul.mubr.bf16.gmra.mxu0 %v5643_v15  ;;  %6595 = vmatpush3.bf16.msra.mxu1 %v6899_v22  ;;  %v2957_v15 = vrot.slane %v9778_v60, 5  ;;  %v2971_v22 = vrot.slane %v7743_v45, 5  ;;  %v5709_v40 = vcombine.low %v8238_v7, %v8252_v57  ;;  %v5663_v45 = vld [vmem:[%s7019_s25 + $0x48] sm:$0xe]  ;;  %v2503_v46 = vsel %vm7050_vm2, %v8194_v11, %v8164_v25  ;;  %v6910_v7 = vld [vmem:[%s7019_s25 + $0x54] sm:$0xff]  }
  0xc3   : > { %6568 = vmatprep.mubr.bf16.mxu0 %v5644_v19  ;;  %6676 = vmatprep.subr.bf16.mxu1 %v8199_v33  ;;  %v5645_v19 = vcombine.low %v2445_v50, %v2455_v5  ;;  %v2977_v50 = vrot.slane %v2975_v20, 4  ;;  %v6893_v5 = vld [vmem:[%s7019_s25 + $0x9c] sm:$0xff]   ;;  %v2989_v2 = vrot.slane %v7829_v31, 5  ;;  %v2517_v34 = vsel %vm7050_vm2, %v8201_v52, %v8154_v14 }
  0xc4   : > { %v8259_v6 = vsel %vm7361_vm5, %v2970_v28, %v2971_v22  ;;  %v5680_v28 = vrot.slane %v5664_v54, 9  ;;  %v5665_v22 = vld [vmem:[%s7019_s25 + $0x60] sm:$0xe]  ;;  %v2992_v25 = vrot.slane %v7877_v16, 5  ;;  %v2527_v11 = vsel %vm7050_vm2, %v8203_v53, %v8205_v21 }
  0xc5   : > { %6517 = vmatmul.mubr.bf16.gmra.mxu1 %v6886_v9  ;;  %v2982_v9 = vrot.slane %v7799_v10, 5  ;;  %v5710_v41 = vcombine.low %v8267_v39, %v8259_v6  ;;  %v8282_v59 = vsel %vm7361_vm5, %v2977_v50, %v2978_v30  ;;  %v2996_v14 = vrot.slane %v7869_v8, 5  ;;  %v5891_v6 = vld [vmem:[%s7019_s25 + $0x24] sm:$0xe] }
  0xc6   : > { %6520 = vmatprep.mubr.bf16.mxu1 %v6889_v37  ;;  %v5679_v37 = vrot.slane %v5663_v45, 9  ;;  %v2991_v45 = vrot.slane %v2989_v2, 4  ;;  %v5647_v52 = vcombine.low %v2493_v36, %v2503_v46  ;;  %v2999_v8 = vrot.slane %v7890_v62, 5  ;;  %v5667_v36 = vld [vmem:[%s7019_s25 + $0x78] sm:$0xe] }
  0xc7   : > { %v2984_v0 = vrot.slane %v2982_v9, 4  ;;  %v8309_v31 = vsel %vm7361_vm5, %v5680_v28, %v2982_v9  ;;  %v2998_v9 = vrot.slane %v2996_v14, 4  ;;  %v3003_v54 = vrot.slane %v7894_v44, 5 }
  0xc8   : > { %v8278_v10 = vsel %vm7361_vm5, %v5679_v37, %v2975_v20  ;;  %v5681_v20 = vrot.slane %v5665_v22, 9  ;;  %v8321_v53 = vsel %vm7361_vm5, %v2991_v45, %v2992_v25  ;;  %v5648_v37 = vcombine.low %v2517_v34, %v2527_v11 }
  0xc9   : > { %v8337_v46 = vsel %vm7361_vm5, %v2998_v9, %v2999_v8  ;;  %v5683_v62 = vrot.slane %v5667_v36, 9  ;;  %v3010_v28 = vrot.slane %v7937_v3, 5  ;;  %v3005_v44 = vrot.slane %v3003_v54, 4  ;;  %v6901_v8 = vld [vmem:[%s7019_s25 + $0x18] sm:$0xff]   ;;  %v9783_v36 = vld [vmem:[#allocation8_spill] sm:$0xff] }
  0xca   : > { %6569 = vmatmul.mubr.bf16.gmra.mxu0 %v5645_v19  ;;  %v8300_v19 = vsel %vm7361_vm5, %v2984_v0, %v2985_v12  ;;  %v8316_v16 = vsel %vm7361_vm5, %v5681_v20, %v2989_v2  ;;  %v3006_v0 = vrot.slane %v7901_v26, 5  ;;  %v3013_v26 = vrot.slane %v7963_v17, 5  ;;  %v5668_v20 = vld [vmem:[%s7019_s25 + $0x84] sm:$0xe] }
  0xcb   : > { %6572 = vmatprep.mubr.bf16.mxu0 %v5646_v18  ;;  %v5666_v18 = vld [vmem:[%s7019_s25 + $0x6c] sm:$0xe]  ;;  %v2541_v2 = vsel %vm7050_vm2, %v8209_v13, %v8169_v55  ;;  %v8349_v34 = vsel %vm7361_vm5, %v5683_v62, %v3003_v54  ;;  %v2551_v3 = vsel %vm7050_vm2, %v8216_v24, %v8211_v63  ;;  %v5684_v25 = vrot.slane %v5668_v20, 9  ;;  %v9781_v63 = vld [vmem:[#allocation6_spill] sm:$0xff] }
  0xcc   : > { %v5682_v21 = vrot.slane %v5666_v18, 9  ;;  %v8358_v17 = vsel %vm7361_vm5, %v3005_v44, %v3006_v0  ;;  %v3012_v11 = vrot.slane %v3010_v28, 4  ;;  %v9779_v45 = vrot.slane %v7557_v32, 5  ;;  %v5669_v18 = vld [vmem:[%s7019_s25 + $0x90] sm:$0xe]  ;;  %v6913_v62 = vld [vmem:[%s7019_s25 + $0x60] sm:$0xff]  }
  0xcd   : > { %6521 = vmatmul.mubr.bf16.gmra.mxu1 %v6890_v47  ;;  %v6894_v47 = vld [vmem:[%s7019_s25 + $0xa8] sm:$0xff]   ;;  %v9780_v55 = vrot.slane %v8181_v58, 9  ;;  %v3017_v24 = vrot.slane %v9781_v63, 5  ;;  %v8375_v32 = vsel %vm7361_vm5, %v5684_v25, %v3010_v28  ;;  %v3024_v54 = vrot.slane %v9783_v36, 5 }
  0xce   : > { %6524 = vmatprep.mubr.bf16.mxu1 %v6893_v5  ;;  %v6897_v5 = vld [vmem:[%s7019_s25 + $0xb4] sm:$0xff]   ;;  %v8333_v12 = vsel %vm7361_vm5, %v5682_v21, %v2996_v14  ;;  %v5660_v14 = vld [vmem:[%s7019_s25 + $0x24] sm:$0xe]  ;;  %v9782_v21 = vld [vmem:[#allocation7_spill] sm:$0xff]  ;;  %v8379_v58 = vsel %vm7361_vm5, %v3012_v11, %v3013_v26  ;;  %v5649_v0 = vcombine.low %v2541_v2, %v2551_v3  ;;  %v2944_v28 = vsel %vm7361_vm5, %v8159_v43, %v2943_v29 }
  0xcf   : > { %v2941_v13 = vsel %vm7361_vm5, %v9780_v55, %v9779_v45  ;;  %v3020_v9 = vrot.slane %v9782_v21, 5  ;;  %v3019_v44 = vrot.slane %v3017_v24, 4  ;;  %v6898_v45 = vld [vmem:[%s7019_s25 + $0xc0] sm:$0xff]   ;;  %v2949_v26 = vrot.slane %v2947_v38, 4  ;;  %v5670_v2 = vld [vmem:[%s7019_s25 + $0x9c] sm:$0xe] }
  0xd0   : > { %v3026_v3 = vrot.slane %v3024_v54, 4  ;;  %v5686_v11 = vrot.slane %v5670_v2, 9  ;;  %v9785_v55 = vld [vmem:[#allocation10_spill] sm:$0xff]  ;;  %v5671_v63 = vld [vmem:[%s7019_s25 + $0xa8] sm:$0xe]  ;;  %v5706_v21 = vcombine.low %v2941_v13, %v2944_v28  ;;  %v9789_v28 = vrot.slane %v8184_v48, 9 }
  0xd1   : > { %v8400_v25 = vsel %vm7361_vm5, %v3019_v44, %v3020_v9  ;;  %v3031_v42 = vrot.slane %v9785_v55, 5  ;;  %v8523_v43 = vld [vmem:[%s7019_s25 + $0x34] sm:$0xf] }
  0xd2   : > { %6573 = vmatmul.mubr.bf16.gmra.mxu0 %v5647_v52  ;;  %v8413_v9 = vsel %vm7361_vm5, %v5686_v11, %v3024_v54  ;;  %v5672_v54 = vld [vmem:[%s7019_s25 + $0xb4] sm:$0xe]  ;;  %v3868_v39 = vshll.u32 %v8523_v43, 16 }
  0xd3   : > { %6576 = vmatprep.mubr.bf16.mxu0 %v5648_v37  ;;  %v5685_v37 = vrot.slane %v5669_v18, 9  ;;  %v5676_v18 = vrot.slane %v5660_v14, 9  ;;  %v3033_v36 = vrot.slane %v3031_v42, 4  ;;  %v9786_v14 = vrot.slane %v9775_v35, 5 }
  0xd4   : > { %v5688_v55 = vrot.slane %v5672_v54, 9 }
  0xd5   : > { %6525 = vmatmul.mubr.bf16.gmra.mxu1 %v6894_v47  ;;  %v9784_v47 = vld [vmem:[#allocation9_spill] sm:$0xff]  ;;  %v2956_v44 = vrot.slane %v9786_v14, 4  ;;  %v9791_v61 = vmov %v9786_v14  ;;  %v3048_v14 = vrot.slane %v8152_v51, 5  ;;  %v5808_v51 = vld [vmem:[%s7019_s25 + $0x30] sm:$0xf] }
  0xd6   : > { %6528 = vmatprep.mubr.bf16.mxu1 %v6897_v5  ;;  %v3027_v20 = vrot.slane %v9784_v47, 5  ;;  %v8395_v5 = vsel %vm7361_vm5, %v5685_v37, %v3017_v24  ;;  %v3034_v24 = vrot.slane %v8071_v4, 5  ;;  %v5687_v37 = vrot.slane %v5671_v63, 9 }
  0xd7   : > { %v9790_v63 = vrot.slane %v7662_v23, 5  ;;  %v2955_v48 = vsel %vm7361_vm5, %v5676_v18, %v9791_v61  ;;  %v2958_v23 = vsel %vm7361_vm5, %v2956_v44, %v2957_v15  ;;  %v8493_v61 = vld [vmem:[%s7019_s25 + $0x28] sm:$0xf] }
  0xd8   : > { %v8407_v29 = vsel %vm7361_vm5, %v3026_v3, %v3027_v20  ;;  %v9787_v20 = vld [vmem:[#allocation11_spill] sm:$0xff]  ;;  %v8422_v4 = vsel %vm7361_vm5, %v5687_v37, %v3031_v42  ;;  %v8426_v13 = vsel %vm7361_vm5, %v3033_v36, %v3034_v24  ;;  %v2948_v3 = vsel %vm7361_vm5, %v9789_v28, %v2947_v38  ;;  %v5673_v37 = vld [vmem:[%s7019_s25 + $0xc0] sm:$0xe]  ;;  %v9792_v38 = vld [vmem:[#allocation13_spill] sm:$0xff] }
  0xd9   : > { %v3038_v2 = vrot.slane %v9787_v20, 5  ;;  %v2951_v24 = vsel %vm7361_vm5, %v2949_v26, %v9790_v63  ;;  %v3045_v36 = vrot.slane %v9792_v38, 5  ;;  %v5689_v18 = vrot.slane %v5673_v37, 9  ;;  %v6908_v20 = vld [vmem:[%s9704_s1 + $0x230] sm:$0xff]   ;;  %v5805_v63 = vld [vmem:[%s7019_s25 + $0x24] sm:$0xf] }
  0xda   : > { %6577 = vmatmul.mubr.bf16.gmra.mxu0 %v5649_v0  ;;  %v5707_v15 = vcombine.low %v2948_v3, %v2951_v24  ;;  %v5708_v54 = vcombine.low %v2955_v48, %v2958_v23  ;;  %v6907_v28 = vld [vmem:[%s9704_s1 + $0x1f0] sm:$0xff]   ;;  %v6906_v48 = vld [vmem:[%s7019_s25 + $0x3c] sm:$0xff]   ;;  %v3835_v37 = vshrl.u32 %v5805_v63, 16  ;;  %v6909_v38 = vld [vmem:[%s7019_s25 + $0x48] sm:$0xff]   ;;  %v3844_v23 = vshll.u32 %v8493_v61, 16 }
  0xdb   : > { %6644 = vmatprep.mubr.bf16.mxu0 %v6901_v8  ;;  %v9788_v8 = vld [vmem:[#allocation12_spill] sm:$0xff]  ;;  %v3040_v42 = vrot.slane %v3038_v2, 4  ;;  %v8457_v26 = vsel %vm7361_vm5, %v5688_v55, %v3038_v2  ;;  %v3047_v60 = vrot.slane %v3045_v36, 4  ;;  %v8470_v44 = vsel %vm7361_vm5, %v5689_v18, %v3045_v36  ;;  %v5802_v2 = vld [vmem:[%s7019_s25 + $0x18] sm:$0xf]  ;;  %v6912_v55 = vld [vmem:[%s9704_s1 + $0x228] sm:$0xff]  }
  0xdc   : > { %v3041_v0 = vrot.slane %v9788_v8, 5  ;;  %v3814_v24 = vshll.u32 %v5802_v2, 16  ;;  %v6911_v36 = vld [vmem:[%s9704_s1 + $0x1e8] sm:$0xff]   ;;  %v5804_v18 = vld [vmem:[%s7019_s25 + $0x20] sm:$0x1]  ;;  %v3837_v11 = vrot.slane %v3835_v37, 4 }
  0xdd   : > { %6529 = vmatmul.mubr.bf16.gmra.mxu1 %v6898_v45  ;;  %v6902_v45 = vld [vmem:[%s7019_s25 + $0x24] sm:$0xff]   ;;  %v8475_v8 = vsel %vm7361_vm5, %v3047_v60, %v3048_v14  ;;  %v3838_v14 = vshll.u32 %v5805_v63, 16  ;;  %v8513_v63 = vld [vmem:[%s7019_s25 + $0x2c] sm:$0x1]  ;;  %v3859_v37 = vshrl.u32 %v5808_v51, 16 }
  0xde   : > { %6596 = vmatprep.mubr.bf16.mxu1 %v5706_v21  ;;  %v6905_v21 = vld [vmem:[%s7019_s25 + $0x30] sm:$0xff]   ;;  %v8461_v35 = vsel %vm7361_vm5, %v3040_v42, %v3041_v0  ;;  %v8478_v0 = vld [vmem:[%s7019_s25 + $0x1c] sm:$0xf]  ;;  %v3811_v42 = vshrl.u32 %v5802_v2, 16 }
  0xdf   : > { %v4582_v3 = vrot.slane %v8478_v0, 5  ;;  %v3840_v47 = vrot.slane %v3838_v14, 5 }
  0xe0   : > { %v3813_v60 = vrot.slane %v3811_v42, 4  ;;  %v6915_v42 = vld [vmem:[%s9704_s1 + $0x1e0] sm:$0xff]  }
  0xe2   : > { %6645 = vmatmul.mubr.bf16.vlgmr.msra.gmra.mxu0 %v6902_v45  ;;  %v3824_v45 = vshrl.u32 %v8478_v0, 16 }
  0xe3   : > { %6725 = vmatpush3.bf16.msra.mxu0 %v8189_v49  ;;  %6648 = vmatprep.mubr.bf16.mxu0 %v6905_v21  ;;  %v3820_v49 = vshll.u32 %v8478_v0, 16  ;;  %v3848_v21 = vshrl.u32 %v8493_v61, 16 }
  0xe4   : > { %6726 = vmatprep.subr.bf16.mxu0 %v6908_v20 }
  0xe5   : > { %6597 = vmatmul.mubr.bf16.vlgmr.msra.gmra.mxu1 %v5707_v15  ;;  %v5890_v15 = vld [vmem:[%s7019_s25 + $0x18] sm:$0xe]  ;;  %v8508_v2 = vrot.slane %v3820_v49, 5  ;;  %v3830_v49 = vshll.u32 %v5804_v18, 16  ;;  %v3850_v0 = vrot.slane %v3848_v21, 4 }
  0xe6   : > { %6677 = vmatpush3.bf16.msra.mxu1 %v8199_v33  ;;  %6600 = vmatprep.mubr.bf16.mxu1 %v5708_v54  ;;  %v6916_v33 = vld [vmem:[%s9704_s1 + $0x220] sm:$0xff]   ;;  %v3826_v54 = vrot.slane %v3824_v45, 4  ;;  %v8520_v45 = vrot.slane %v3844_v23, 5  ;;  %v6920_v23 = vld [vmem:[%s9704_s1 + $0x218] sm:$0xff]  }
  0xe7   : > { %6678 = vmatprep.subr.bf16.mxu1 %v6907_v28  ;;  %6727 = vmatpush3.bf16.msra.mxu0 %v6908_v20  ;;  %v3816_v20 = vrot.slane %v3814_v24, 5 }
  0xe8   : > { %6728 = vmatprep.subr.bf16.mxu0 %v6912_v55  ;;  %v3827_v21 = vor.u32 %v3826_v54, %v8508_v2  ;;  %v3851_v54 = vor.u32 %v3850_v0, %v8520_v45 }
  0xea   : > { %6649 = vmatmul.mubr.bf16.gmra.mxu0 %v6906_v48  ;;  %6679 = vmatpush3.bf16.msra.mxu1 %v6907_v28  ;;  %v5906_v48 = vrot.slane %v5890_v15, 9  ;;  %v4585_v28 = vrot.slane %v5804_v18, 5  ;;  %v4584_v18 = vrot.slane %v4582_v3, 4  ;;  %v3854_v15 = vshll.u32 %v8513_v63, 16 }
  0xeb   : > { %6652 = vmatprep.mubr.bf16.mxu0 %v6909_v38  ;;  %6680 = vmatprep.subr.bf16.mxu1 %v6911_v36  ;;  %v3862_v38 = vshll.u32 %v5808_v51, 16  ;;  %v4589_v51 = vrot.slane %v8493_v61, 5  ;;  %v3872_v61 = vshrl.u32 %v8523_v43, 16 }
  0xec   : > { %6729 = vmatpush3.bf16.msra.mxu0 %v6912_v55  ;;  %v3817_v55 = vor.u32 %v3816_v20, %v3813_v60  ;;  %v6919_v60 = vld [vmem:[%s9704_s1 + $0x1d8] sm:$0xff]   ;;  %v8546_v20 = vrot.slane %v3830_v49, 5  ;;  %v6924_v49 = vld [vmem:[%s9704_s1 + $0x210] sm:$0xff]  }
  0xed   : > { %v8518_v24 = vpop.f32.mrf.mxu0  ;;  %6601 = vmatmul.mubr.bf16.gmra.mxu1 %v5709_v40  ;;  %6730 = vmatprep.subr.bf16.mxu0 %v6916_v33  ;;  %v8528_v14 = vpop.f32.mrf.mxu1  ;;  %v3841_v40 = vor.u32 %v3840_v47, %v3837_v11  ;;  %v3861_v47 = vrot.slane %v3859_v37, 4  ;;  %v3864_v11 = vrot.slane %v3862_v38, 5  ;;  %v8573_v37 = vld [vmem:[%s7019_s25 + $0x40] sm:$0xf]  ;;  %v4591_v50 = vrot.slane %v4589_v51, 4 }
  0xee   : > { %9793 = vst [vmem:[#allocation2_spill] sm:$0xff] %v8528_v14  ;;  %6604 = vmatprep.mubr.bf16.mxu1 %v5710_v41  ;;  %6681 = vmatpush3.bf16.msra.mxu1 %v6911_v36  ;;  %v8553_v41 = vsel %vm7361_vm5, %v5906_v48, %v4582_v3  ;;  %v5811_v36 = vld [vmem:[%s7019_s25 + $0x3c] sm:$0xf]  ;;  %v8562_v0 = vrot.slane %v3817_v55, 4  ;;  %v8568_v3 = vsel %vm7361_vm5, %v4584_v18, %v4585_v28  ;;  %v8570_v48 = vrot.slane %v3854_v15, 5  ;;  %v6923_v55 = vld [vmem:[%s9704_s1 + $0x1d0] sm:$0xff]  }
  0xef   : > { %v8539_v57 = vpop.f32.mrf.mxu0  ;;  %6682 = vmatprep.subr.bf16.mxu1 %v6915_v42  ;;  %v8557_v52 = vpop.f32.mrf.mxu1  ;;  %v8580_v22 = vrot.slane %v3841_v40, 4  ;;  %v4592_v28 = vrot.slane %v8513_v63, 5  ;;  %v3852_v18 = vrot.slane %v3851_v54, 4  ;;  %v8584_v15 = vld [vmem:[%s7019_s25 + $0x38] sm:$0x1]  ;;  %v3886_v30 = vshll.u32 %v5811_v36, 16 }
  0xf0   : > { %6731 = vmatpush3.bf16.msra.mxu0 %v6916_v33  ;;  %9794 = vst [vmem:[#allocation5_spill] sm:$0xff] %v8557_v52  ;;  %v8564_v33 = vrot.slane %v3827_v21, 4  ;;  %v5907_v21 = vrot.slane %v5891_v6, 9  ;;  %v3865_v1 = vor.u32 %v3864_v11, %v3861_v47  ;;  %v8588_v52 = vrot.slane %v3872_v61, 4  ;;  %v5892_v40 = vld [vmem:[%s7019_s25 + $0x30] sm:$0xe] }
  0xf1   : > { %6732 = vmatprep.subr.bf16.mxu0 %v6920_v23  ;;  %v8575_v38 = vpop.f32.mrf.mxu0  ;;  %v3892_v6 = vshll.u32 %v8573_v37, 16  ;;  %v3896_v63 = vshrl.u32 %v8573_v37, 16  ;;  %v8596_v54 = vpop.f32.mrf.mxu1  ;;  %v9797_v11 = vcombine.low %v8309_v31, %v8300_v19  ;;  %v6914_v61 = vld [vmem:[%s7019_s25 + $0x6c] sm:$0xff]   ;;  %v8629_v19 = vsel %vm7361_vm5, %v4591_v50, %v4592_v28  ;;  %v8647_v28 = vld [vmem:[%s7019_s25 + $0x44] sm:$0x1] }
  0xf2   : > { %6653 = vmatmul.mubr.bf16.gmra.mxu0 %v6910_v7  ;;  %6683 = vmatpush3.bf16.msra.mxu1 %v6915_v42  ;;  %v8586_v7 = vrot.slane %v3868_v39, 5  ;;  %v3883_v42 = vshrl.u32 %v5811_v36, 16  ;;  %9796 = vst [vmem:[#allocation4_spill] sm:$0xff] %v8596_v54  ;;  %v3823_v39 = vsel %vm7050_vm2, %v8562_v0, %v8508_v2  ;;  %v3833_v47 = vsel %vm7050_vm2, %v8564_v33, %v8546_v20  ;;  %v6917_v36 = vld [vmem:[%s7019_s25 + $0x78] sm:$0xff]   ;;  %v8640_v33 = vld [vmem:[%s7019_s25 + $0x4c] sm:$0xf] }
  0xf3   : > { %6656 = vmatprep.mubr.bf16.mxu0 %v6913_v62  ;;  %6684 = vmatprep.subr.bf16.mxu1 %v6919_v60  ;;  %v9795_v62 = vcombine.low %v8278_v10, %v8282_v59  ;;  %v4596_v59 = vrot.slane %v8523_v43, 5  ;;  %v3847_v2 = vsel %vm7050_vm2, %v8580_v22, %v8520_v45  ;;  %v8625_v20 = vsel %vm7361_vm5, %v5907_v21, %v4589_v51  ;;  %v5814_v43 = vld [vmem:[%s7019_s25 + $0x48] sm:$0xf]  ;;  %v8651_v54 = vpop.f32.mrf.mxu1  ;;  %v5893_v14 = vld [vmem:[%s7019_s25 + $0x3c] sm:$0xe] }
  0xf4   : > { %6733 = vmatpush3.bf16.msra.mxu0 %v6920_v23  ;;  %v6928_v23 = vld [vmem:[%s9704_s1 + $0x208] sm:$0xff]   ;;  %v3878_v31 = vshll.u32 %v8584_v15, 16  ;;  %v3857_v22 = vsel %vm7050_vm2, %v3852_v18, %v8570_v48  ;;  %v5908_v45 = vrot.slane %v5892_v40, 9  ;;  %v3885_v0 = vrot.slane %v3883_v42, 4  ;;  %9799 = vst [vmem:[#allocation6_spill] sm:$0xff] %v8651_v54  ;;  %v6931_v42 = vld [vmem:[%s9704_s1 + $0x1c0] sm:$0xff]  }
  0xf5   : > { %6605 = vmatmul.mubr.bf16.gmra.mxu1 %v9795_v62  ;;  %6734 = vmatprep.subr.bf16.mxu0 %v6924_v49  ;;  %v8617_v62 = vpop.f32.mrf.mxu0  ;;  %v3888_v51 = vrot.slane %v3886_v30, 5  ;;  %v8642_v50 = vrot.slane %v3865_v1, 4  ;;  %v3875_v21 = vor.u32 %v8588_v52, %v8586_v7  ;;  %v3898_v10 = vrot.slane %v3896_v63, 4  ;;  %v6932_v30 = vld [vmem:[%s9704_s1 + $0x200] sm:$0xff]  }
  0xf6   : > { %6608 = vmatprep.mubr.bf16.mxu1 %v9797_v11  ;;  %6685 = vmatpush3.bf16.msra.mxu1 %v6919_v60  ;;  %9798 = vst [vmem:[#allocation3_spill] sm:$0xff] %v8617_v62  ;;  %v6927_v60 = vld [vmem:[%s9704_s1 + $0x1c8] sm:$0xff]   ;;  %v8649_v11 = vrot.slane %v3892_v6, 5  ;;  %v4598_v48 = vrot.slane %v4596_v59, 4  ;;  %v3907_v1 = vshrl.u32 %v5814_v43, 16  ;;  %v3910_v18 = vshll.u32 %v5814_v43, 16 }
  0xf7   : > { %6686 = vmatprep.subr.bf16.mxu1 %v6923_v55  ;;  %v8662_v40 = vcombine.low %v3823_v39, %v3833_v47  ;;  %v3920_v63 = vshrl.u32 %v8640_v33, 16  ;;  %v8670_v43 = vrot.slane %v3878_v31, 5  ;;  %v3902_v54 = vshll.u32 %v8647_v28, 16  ;;  %v5817_v39 = vld [vmem:[%s7019_s25 + $0x54] sm:$0xf]  ;;  %v6918_v6 = vld [vmem:[%s7019_s25 + $0x84] sm:$0xff]  }
  0xf8   : > { %6735 = vmatpush3.bf16.msra.mxu0 %v6924_v49  ;;  %v4599_v49 = vrot.slane %v8584_v15, 5  ;;  %v8657_v52 = vpop.f32.mrf.mxu0  ;;  %v3916_v15 = vshll.u32 %v8640_v33, 16  ;;  %v4603_v31 = vrot.slane %v8573_v37, 5  ;;  %v9803_v37 = vcombine.low %v8333_v12, %v8337_v46  ;;  %v6921_v47 = vld [vmem:[%s7019_s25 + $0x90] sm:$0xff]  }
  0xf9   : > { %6736 = vmatprep.subr.bf16.mxu0 %v6928_v23  ;;  %9800 = vst [vmem:[#allocation7_spill] sm:$0xff] %v8657_v52 }
  0xfa   : > { %6657 = vmatmul.mubr.bf16.gmra.mxu0 %v6914_v61  ;;  %6687 = vmatpush3.bf16.msra.mxu1 %v6923_v55  ;;  %v8668_v61 = vcombine.low %v3847_v2, %v3857_v22  ;;  %v3889_v55 = vor.u32 %v3888_v51, %v3885_v0  ;;  %v3899_v2 = vor.u32 %v3898_v10, %v8649_v11  ;;  %v8686_v22 = vld [vmem:[%s7019_s25 + $0x58] sm:$0xf]  ;;  %v8693_v51 = vrot.slane %v3875_v21, 4 }
  0xfb   : > { %6660 = vmatprep.mubr.bf16.mxu0 %v6917_v36  ;;  %6688 = vmatprep.subr.bf16.mxu1 %v6927_v60  ;;  %v8681_v36 = vsel %vm7361_vm5, %v5908_v45, %v4596_v59  ;;  %v9801_v0 = vcombine.low %v8316_v16, %v8321_v53  ;;  %v8697_v59 = vsel %vm7361_vm5, %v4598_v48, %v4599_v49  ;;  %v3909_v45 = vrot.slane %v3907_v1, 4  ;;  %v8704_v16 = vpop.f32.mrf.mxu0  ;;  %v5816_v1 = vld [vmem:[%s7019_s25 + $0x50] sm:$0x1] }
  0xfc   : > { %6737 = vmatpush3.bf16.msra.mxu0 %v6928_v23  ;;  %v8691_v23 = vpop.f32.mrf.mxu1  ;;  %v3912_v10 = vrot.slane %v3910_v18, 5  ;;  %9804 = vst [vmem:[#allocation9_spill] sm:$0xff] %v8704_v16  ;;  %v5909_v53 = vrot.slane %v5893_v14, 9  ;;  %v3922_v21 = vrot.slane %v3920_v63, 4  ;;  %v3890_v48 = vrot.slane %v3889_v55, 4 }
  0xfd   : > { %6609 = vmatmul.mubr.bf16.gmra.mxu1 %v9801_v0  ;;  %9802 = vst [vmem:[#allocation8_spill] sm:$0xff] %v8691_v23  ;;  %6738 = vmatprep.subr.bf16.mxu0 %v6932_v30  ;;  %v8706_v0 = vrot.slane %v3916_v15, 5  ;;  %v3931_v23 = vshrl.u32 %v5817_v39, 16  ;;  %v3904_v49 = vrot.slane %v3902_v54, 5  ;;  %v3934_v18 = vshll.u32 %v5817_v39, 16  ;;  %v8722_v39 = vpop.f32.mrf.mxu0 }
  0xfe   : > { %6612 = vmatprep.mubr.bf16.mxu1 %v9803_v37  ;;  %6689 = vmatpush3.bf16.msra.mxu1 %v6927_v60  ;;  %v3940_v52 = vshll.u32 %v8686_v22, 16  ;;  %v3900_v12 = vrot.slane %v3899_v2, 4  ;;  %v4605_v46 = vrot.slane %v4603_v31, 4  ;;  %v4606_v37 = vrot.slane %v8647_v28, 5  ;;  %v8712_v60 = vpop.f32.mrf.mxu1  ;;  %v5820_v55 = vld [vmem:[%s7019_s25 + $0x60] sm:$0xf] }
  0xff   : > { %6690 = vmatprep.subr.bf16.mxu1 %v6931_v42  ;;  %v3944_v14 = vshrl.u32 %v8686_v22, 16  ;;  %9805 = vst [vmem:[#allocation10_spill] sm:$0xff] %v8712_v60  ;;  %v3881_v15 = vsel %vm7050_vm2, %v8693_v51, %v8670_v43  ;;  %v3913_v63 = vor.u32 %v3912_v10, %v3909_v45  ;;  %v3923_v28 = vor.u32 %v3922_v21, %v8706_v0  ;;  %v5894_v60 = vld [vmem:[%s7019_s25 + $0x48] sm:$0xe] }
 0x100   : > { %6739 = vmatpush3.bf16.msra.mxu0 %v6932_v30  ;;  %v4610_v30 = vrot.slane %v8640_v33, 5  ;;  %v3926_v2 = vshll.u32 %v5816_v1, 16  ;;  %v3933_v16 = vrot.slane %v3931_v23, 4  ;;  %v3936_v62 = vrot.slane %v3934_v18, 5  ;;  %v8747_v10 = vpop.f32.mrf.mxu1 }
 0x101   : > { %v3895_v43 = vsel %vm7050_vm2, %v3890_v48, %v8649_v11  ;;  %v8731_v33 = vsel %vm7361_vm5, %v5909_v53, %v4603_v31  ;;  %v3905_v51 = vsel %vm7050_vm2, %v3900_v12, %v3904_v49  ;;  %v8739_v23 = vsel %vm7361_vm5, %v4605_v46, %v4606_v37  ;;  %9807 = vst [vmem:[#allocation11_spill] sm:$0xff] %v8747_v10  ;;  %v8750_v49 = vld [vmem:[%s7019_s25 + $0x64] sm:$0xf]  ;;  %v6922_v12 = vld [vmem:[%s7019_s25 + $0x9c] sm:$0xff]   ;;  %v8756_v46 = vpop.f32.mrf.mxu0 }
 0x102   : > { %6661 = vmatmul.mubr.bf16.gmra.mxu0 %v6918_v6  ;;  %6691 = vmatpush3.bf16.msra.mxu1 %v6931_v42  ;;  %v8733_v6 = vrot.slane %v3940_v52, 5  ;;  %v3946_v42 = vrot.slane %v3944_v14, 4  ;;  %v3955_v45 = vshrl.u32 %v5820_v55, 16  ;;  %v3958_v11 = vshll.u32 %v5820_v55, 16  ;;  %v6925_v55 = vld [vmem:[%s7019_s25 + $0xa8] sm:$0xff]  }
 0x103   : > { %6664 = vmatprep.mubr.bf16.mxu0 %v6921_v47  ;;  %v8742_v47 = vld [vmem:[%s7019_s25 + $0x5c] sm:$0x1]  ;;  %v9806_v31 = vcombine.low %v8349_v34, %v8358_v17  ;;  %v3914_v52 = vrot.slane %v3913_v63, 4  ;;  %v5910_v53 = vrot.slane %v5894_v60, 9  ;;  %v4612_v21 = vrot.slane %v4610_v30, 4 }
 0x104   : > { %v4613_v48 = vrot.slane %v5816_v1, 5  ;;  %v9808_v18 = vcombine.low %v8375_v32, %v8379_v58  ;;  %v3924_v37 = vrot.slane %v3923_v28, 4  ;;  %v3928_v14 = vrot.slane %v3926_v2, 5  ;;  %v5895_v63 = vld [vmem:[%s7019_s25 + $0x54] sm:$0xe]  ;;  %v8774_v28 = vpop.f32.mrf.mxu1 }
 0x105   : > { %6613 = vmatmul.mubr.bf16.gmra.mxu1 %v9806_v31  ;;  %v3937_v34 = vor.u32 %v3936_v62, %v3933_v16  ;;  %v4617_v17 = vrot.slane %v8686_v22, 5  ;;  %v3947_v60 = vor.u32 %v3946_v42, %v8733_v6  ;;  %v3950_v1 = vshll.u32 %v8742_v47, 16  ;;  %9810 = vst [vmem:[#allocation12_spill] sm:$0xff] %v8774_v28  ;;  %v5896_v62 = vld [vmem:[%s7019_s25 + $0x60] sm:$0xe] }
 0x106   : > { %6616 = vmatprep.mubr.bf16.mxu1 %v9808_v18  ;;  %v3957_v31 = vrot.slane %v3955_v45, 4  ;;  %v3960_v54 = vrot.slane %v3958_v11, 5  ;;  %v9809_v32 = vsel %vm7050_vm2, %v8642_v50, %v8586_v7  ;;  %v3964_v22 = vshll.u32 %v8750_v49, 16 }
 0x107   : > { %v8768_v58 = vcombine.low %v9809_v32, %v3881_v15  ;;  %v3968_v16 = vshrl.u32 %v8750_v49, 16  ;;  %v8776_v2 = vcombine.low %v3895_v43, %v3905_v51  ;;  %v3919_v42 = vsel %vm7050_vm2, %v3914_v52, %v8706_v0  ;;  %v5823_v15 = vld [vmem:[%s7019_s25 + $0x6c] sm:$0xf]  ;;  %v8794_v32 = vld [vmem:[%s7019_s25 + $0x70] sm:$0xf] }
 0x108   : > { %v8783_v7 = vsel %vm7361_vm5, %v5910_v53, %v4610_v30  ;;  %v8787_v50 = vsel %vm7361_vm5, %v4612_v21, %v4613_v48  ;;  %v8790_v45 = vpop.f32.mrf.mxu0  ;;  %v3938_v43 = vrot.slane %v3937_v34, 4  ;;  %v5911_v51 = vrot.slane %v5895_v63, 9  ;;  %v5822_v53 = vld [vmem:[%s7019_s25 + $0x68] sm:$0x1] }
 0x109   : > { %9811 = vst [vmem:[#allocation13_spill] sm:$0xff] %v8790_v45  ;;  %v4619_v11 = vrot.slane %v4617_v17, 4  ;;  %v4620_v18 = vrot.slane %v8742_v47, 5  ;;  %v3929_v0 = vsel %vm7050_vm2, %v3924_v37, %v3928_v14  ;;  %v3948_v30 = vrot.slane %v3947_v60, 4  ;;  %v5898_v45 = vld [vmem:[%s7019_s25 + $0x78] sm:$0xe] }
 0x10a   : > { %6665 = vmatmul.mubr.bf16.gmra.mxu0 %v6922_v12  ;;  %v3952_v52 = vrot.slane %v3950_v1, 5  ;;  %v3961_v21 = vor.u32 %v3960_v54, %v3957_v31  ;;  %v8799_v48 = vrot.slane %v3964_v22, 5  ;;  %v3970_v12 = vrot.slane %v3968_v16, 4  ;;  %v6926_v31 = vld [vmem:[%s7019_s25 + $0xb4] sm:$0xff]  }
 0x10b   : > { %6668 = vmatprep.mubr.bf16.mxu0 %v6925_v55  ;;  %v3979_v34 = vshrl.u32 %v5823_v15, 16  ;;  %v3982_v63 = vshll.u32 %v5823_v15, 16  ;;  %v9812_v47 = vcombine.low %v8395_v5, %v8400_v25  ;;  %v4624_v14 = vrot.slane %v8750_v49, 5  ;;  %v8816_v5 = vpop.f32.mrf.mxu0 }
 0x10c   : > { %v3988_v54 = vshll.u32 %v8794_v32, 16  ;;  %v3992_v60 = vshrl.u32 %v8794_v32, 16  ;;  %v9814_v1 = vcombine.low %v8413_v9, %v8407_v29  ;;  %9815 = vst [vmem:[#allocation15_spill] sm:$0xff] %v8816_v5  ;;  %v8818_v25 = vcombine.low %v3919_v42, %v3929_v0  ;;  %v5826_v29 = vld [vmem:[%s7019_s25 + $0x78] sm:$0xf]  ;;  %v6929_v9 = vld [vmem:[%s7019_s25 + $0xc0] sm:$0xff]  }
 0x10d   : > { %6617 = vmatmul.mubr.bf16.gmra.mxu1 %v9812_v47  ;;  %v8805_v55 = vpop.f32.mrf.mxu1  ;;  %v3943_v22 = vsel %vm7050_vm2, %v3938_v43, %v8733_v6  ;;  %v8825_v49 = vsel %vm7361_vm5, %v5911_v51, %v4617_v17  ;;  %v8829_v16 = vsel %vm7361_vm5, %v4619_v11, %v4620_v18  ;;  %v3953_v15 = vsel %vm7050_vm2, %v3948_v30, %v3952_v52  ;;  %v8842_v43 = vld [vmem:[%s7019_s25 + $0x74] sm:$0x1]  ;;  %v8899_v5 = vld [vmem:[%s7019_s25 + $0x8c] sm:$0x1] }
 0x10e   : > { %9813 = vst [vmem:[#allocation14_spill] sm:$0xff] %v8805_v55  ;;  %6620 = vmatprep.mubr.bf16.mxu1 %v9814_v1  ;;  %v8835_v47 = vrot.slane %v3961_v21, 4  ;;  %v3974_v42 = vshll.u32 %v5822_v53, 16  ;;  %v5912_v0 = vrot.slane %v5896_v62, 9  ;;  %v8838_v1 = vld [vmem:[%s7019_s25 + $0x7c] sm:$0xf]  ;;  %v3971_v6 = vor.u32 %v3970_v12, %v8799_v48  ;;  %v8848_v21 = vpop.f32.mrf.mxu0 }
 0x10f   : > { %v4627_v17 = vrot.slane %v5822_v53, 5  ;;  %v3981_v51 = vrot.slane %v3979_v34, 4  ;;  %v3984_v11 = vrot.slane %v3982_v63, 5  ;;  %v8844_v18 = vpop.f32.mrf.mxu1  ;;  %v4626_v37 = vrot.slane %v4624_v14, 4  ;;  %9817 = vst [vmem:[#allocation17_spill] sm:$0xff] %v8848_v21 }
 0x110   : > { %9816 = vst [vmem:[#allocation16_spill] sm:$0xff] %v8844_v18  ;;  %v8846_v55 = vrot.slane %v3988_v54, 5  ;;  %v3994_v30 = vrot.slane %v3992_v60, 4  ;;  %v4003_v52 = vshrl.u32 %v5826_v29, 16  ;;  %v5897_v53 = vld [vmem:[%s7019_s25 + $0x6c] sm:$0xe]  ;;  %v8855_v18 = vcombine.low %v3943_v22, %v3953_v15 }
 0x111   : > { %v4006_v12 = vshll.u32 %v5826_v29, 16  ;;  %v4012_v34 = vshll.u32 %v8838_v1, 16  ;;  %v4016_v63 = vshrl.u32 %v8838_v1, 16  ;;  %v8857_v54 = vrot.slane %v3974_v42, 5  ;;  %v5829_v62 = vld [vmem:[%s7019_s25 + $0x84] sm:$0xf]  ;;  %v8878_v42 = vpop.f32.mrf.mxu1 }
 0x112   : > { %6669 = vmatmul.mubr.bf16.gmra.mxu0 %v6926_v31  ;;  %9818 = vst [vmem:[#allocation18_spill] sm:$0xff] %v8855_v18  ;;  %v8861_v60 = vsel %vm7361_vm5, %v5912_v0, %v4624_v14  ;;  %v3998_v31 = vshll.u32 %v8842_v43, 16  ;;  %v8869_v28 = vrot.slane %v3971_v6, 4  ;;  %v4631_v22 = vrot.slane %v8794_v32, 5  ;;  %v8873_v15 = vld [vmem:[%s7019_s25 + $0x88] sm:$0xf] }
 0x113   : > { %6672 = vmatprep.mubr.bf16.mxu0 %v6929_v9  ;;  %v3985_v9 = vor.u32 %v3984_v11, %v3981_v51  ;;  %v9819_v14 = vcombine.low %v8422_v4, %v8426_v13  ;;  %9820 = vst [vmem:[#allocation19_spill] sm:$0xff] %v8878_v42  ;;  %v6930_v0 = vld [vmem:[%s7019_s25 + $0xcc] sm:$0xff]   ;;  %v8883_v10 = vsel %vm7361_vm5, %v4626_v37, %v4627_v17  ;;  %v5913_v6 = vrot.slane %v5897_v53, 9  ;;  %v8886_v11 = vpop.f32.mrf.mxu0  ;;  %v8892_v4 = vld [vmem:[%s7019_s25 + $0x80] sm:$0x1] }
 0x114   : > { %v3995_v29 = vor.u32 %v3994_v30, %v8846_v55  ;;  %v4005_v51 = vrot.slane %v4003_v52, 4  ;;  %9821 = vst [vmem:[#allocation20_spill] sm:$0xff] %v8886_v11  ;;  %v9822_v32 = vcombine.low %v8457_v26, %v8461_v35  ;;  %v4008_v13 = vrot.slane %v4006_v12, 5 }
 0x115   : > { %6621 = vmatmul.mubr.bf16.gmra.mxu1 %v9819_v14  ;;  %v8894_v14 = vrot.slane %v4012_v34, 5  ;;  %v4018_v42 = vrot.slane %v4016_v63, 4  ;;  %v4027_v21 = vshrl.u32 %v5829_v62, 16  ;;  %v4000_v37 = vrot.slane %v3998_v31, 5 }
 0x116   : > { %6624 = vmatprep.mubr.bf16.mxu1 %v9822_v32  ;;  %v4634_v17 = vrot.slane %v8842_v43, 5  ;;  %v4030_v30 = vshll.u32 %v5829_v62, 16  ;;  %v4036_v52 = vshll.u32 %v8873_v15, 16  ;;  %v3986_v53 = vrot.slane %v3985_v9, 4  ;;  %v8902_v32 = vpop.f32.mrf.mxu1 }
 0x117   : > { %v4633_v11 = vrot.slane %v4631_v22, 4  ;;  %v4029_v26 = vrot.slane %v4027_v21, 4  ;;  %v4040_v35 = vshrl.u32 %v8873_v15, 16  ;;  %v3996_v12 = vrot.slane %v3995_v29, 4 }
 0x118   : > { %v4022_v34 = vshll.u32 %v8892_v4, 16  ;;  %v4032_v63 = vrot.slane %v4030_v30, 5  ;;  %v8905_v31 = vrot.slane %v4036_v52, 5  ;;  %v4009_v62 = vor.u32 %v4008_v13, %v4005_v51  ;;  %v5899_v52 = vld [vmem:[%s7019_s25 + $0x84] sm:$0xe] }
 0x119   : > { %v8907_v43 = vpop.f32.mrf.mxu0  ;;  %v4019_v9 = vor.u32 %v4018_v42, %v8894_v14  ;;  %v4638_v21 = vrot.slane %v8838_v1, 5  ;;  %v4042_v18 = vrot.slane %v4040_v35, 4  ;;  %v9823_v29 = vcombine.low %v8553_v41, %v8568_v3 }
 0x11a   : > { %6673 = vmatmul.mubr.bf16.gmra.mxu0 %v6930_v0  ;;  %v3977_v30 = vsel %vm7050_vm2, %v8869_v28, %v8857_v54  ;;  %v8923_v51 = vsel %vm7361_vm5, %v5913_v6, %v4631_v22  ;;  %v4046_v42 = vshll.u32 %v8899_v5, 16  ;;  %v3991_v41 = vsel %vm7050_vm2, %v3986_v53, %v8846_v55  ;;  %v5832_v54 = vld [vmem:[%s7019_s25 + $0x90] sm:$0xf] }
 0x11b   : > { %6740 = vmatprep.mubr.bf16.mxu0 %v9823_v29  ;;  %v8926_v1 = vpop.f32.mrf.mxu0  ;;  %v4033_v3 = vor.u32 %v4032_v63, %v4029_v26  ;;  %v4043_v13 = vor.u32 %v4042_v18, %v8905_v31  ;;  %v4645_v28 = vrot.slane %v8873_v15, 5  ;;  %v9825_v22 = vcombine.low %v8470_v44, %v8475_v8 }
 0x11c   : > { %v4001_v6 = vsel %vm7050_vm2, %v3996_v12, %v4000_v37  ;;  %v8944_v55 = vsel %vm7361_vm5, %v4633_v11, %v4634_v17  ;;  %v4024_v53 = vrot.slane %v4022_v34, 5  ;;  %v5914_v18 = vrot.slane %v5898_v45, 9  ;;  %v8953_v12 = vld [vmem:[%s7019_s25 + $0x94] sm:$0xf] }
 0x11d   : > { %v8935_v35 = vpop.f32.mrf.mxu1  ;;  %6625 = vmatmul.mubr.bf16.gmra.mxu1 %v9825_v22  ;;  %v8946_v26 = vpop.f32.mrf.mxu0  ;;  %v4010_v15 = vrot.slane %v4009_v62, 4  ;;  %v4020_v63 = vrot.slane %v4019_v9, 4  ;;  %v4640_v29 = vrot.slane %v4638_v21, 4  ;;  %v4641_v0 = vrot.slane %v8892_v4, 5 }
 0x11e   : > { %9824 = vst [vmem:[#allocation21_spill] sm:$0xff] %v8935_v35  ;;  %6692 = vmatprep.mubr.bf16.mxu1 %v8662_v40  ;;  %v4048_v8 = vrot.slane %v4046_v42, 5  ;;  %v5915_v37 = vrot.slane %v5899_v52, 9  ;;  %v4051_v11 = vshrl.u32 %v5832_v54, 16  ;;  %v4054_v17 = vshll.u32 %v5832_v54, 16 }
 0x11f   : > { %v8950_v44 = vpop.f32.mrf.mxu1  ;;  %v8955_v34 = vpop.f32.mrf.mxu0  ;;  %v4034_v45 = vrot.slane %v4033_v3, 4  ;;  %v4044_v22 = vrot.slane %v4043_v13, 4  ;;  %v4647_v40 = vrot.slane %v4645_v28, 4  ;;  %v4648_v62 = vrot.slane %v8899_v5, 5  ;;  %v8976_v54 = vld [vmem:[%s7019_s25 + $0x98] sm:$0x1] }
 0x120   : > { %9826 = vst [vmem:[#allocation22_spill] sm:$0xff] %v8950_v44  ;;  %v9828_v4 = vsel %vm7050_vm2, %v8835_v47, %v8799_v48  ;;  %v8967_v52 = vcombine.low %v3991_v41, %v4001_v6  ;;  %v8973_v13 = vsel %vm7361_vm5, %v5914_v18, %v4638_v21  ;;  %v4015_v48 = vsel %vm7050_vm2, %v4010_v15, %v8894_v14  ;;  %v5835_v41 = vld [vmem:[%s7019_s25 + $0x9c] sm:$0xf]  ;;  %v8993_v6 = vld [vmem:[%s7019_s25 + $0xa0] sm:$0xf] }
 0x121   : > { %v8958_v9 = vpop.f32.mrf.mxu1  ;;  %v8965_v42 = vcombine.low %v9828_v4, %v3977_v30  ;;  %v6454_v5 = vpop.f32.mrf.mxu0  ;;  %v4025_v47 = vsel %vm7050_vm2, %v4020_v63, %v4024_v53  ;;  %v8988_v30 = vsel %vm7361_vm5, %v4640_v29, %v4641_v0  ;;  %v4060_v21 = vshll.u32 %v8953_v12, 16  ;;  %v9080_v35 = vld [vmem:[%s7019_s25 + $0xb0] sm:$0x1] }
 0x122   : > { %9827 = vst [vmem:[#allocation23_spill] sm:$0xff] %v8958_v9  ;;  %v9829_v9 = vcombine.low %v8625_v20, %v8629_v19  ;;  %v9831_v20 = vcombine.low %v8681_v36, %v8697_v59  ;;  %v9002_v19 = vsel %vm7361_vm5, %v5915_v37, %v4645_v28  ;;  %v4053_v14 = vrot.slane %v4051_v11, 4  ;;  %v9017_v37 = vld [vmem:[%s7019_s25 + $0x90] sm:$0xe] }
 0x123   : > { %v8995_v18 = vpop.f32.mrf.mxu1  ;;  %v4056_v53 = vrot.slane %v4054_v17, 5  ;;  %v4064_v0 = vshrl.u32 %v8953_v12, 16  ;;  %v1571_v15 = vpop.f32.mrf.mxu0  ;;  %v4039_v63 = vsel %vm7050_vm2, %v4034_v45, %v8905_v31  ;;  %v4049_v29 = vsel %vm7050_vm2, %v4044_v22, %v4048_v8 }
 0x124   : > { %6741 = vmatmul.mubr.bf16.vlgmr.msra.gmra.mxu0 %v9829_v9  ;;  %9830 = vst [vmem:[#allocation24_spill] sm:$0xff] %v8995_v18  ;;  %v9012_v36 = vsel %vm7361_vm5, %v4647_v40, %v4648_v62  ;;  %v4070_v59 = vshll.u32 %v8976_v54, 16  ;;  %v4075_v11 = vshrl.u32 %v5835_v41, 16  ;;  %v4078_v17 = vshll.u32 %v5835_v41, 16 }
 0x125   : > { %6744 = vmatprep.mubr.bf16.mxu0 %v9831_v20  ;;  %v6406_v28 = vpop.f32.mrf.mxu1  ;;  %6693 = vmatmul.mubr.bf16.vlgmr.msra.gmra.mxu1 %v8668_v61  ;;  %v4084_v9 = vshll.u32 %v8993_v6, 16  ;;  %v4088_v31 = vshrl.u32 %v8993_v6, 16  ;;  %v6455_v45 = vpop.f32.mrf.mxu0  ;;  %v9023_v22 = vcombine.low %v4015_v48, %v4025_v47  ;;  %v9027_v40 = vrot.slane %v4060_v21, 5  ;;  %v9041_v61 = vld [vmem:[%s7019_s25 + $0xa4] sm:$0x1] }
 0x126   : > { %v1127_v8 = vadd.f32 %v6406_v28, %v8518_v24  ;;  %6696 = vmatprep.mubr.bf16.mxu1 %v8768_v58  ;;  %v9029_v4 = vcombine.low %v4039_v63, %v4049_v29  ;;  %v4057_v20 = vor.u32 %v4056_v53, %v4053_v14  ;;  %v4066_v24 = vrot.slane %v4064_v0, 4  ;;  %v5838_v28 = vld [vmem:[%s7019_s25 + $0xa8] sm:$0xf]  ;;  %v9046_v14 = vld [vmem:[%s7019_s25 + $0xac] sm:$0xf] }
 0x127   : > { %v1118_v62 = vpop.f32.mrf.mxu1  ;;  %v1574_v48 = vpop.f32.mrf.mxu0  ;;  %v9037_v47 = vrot.slane %v4070_v59, 5  ;;  %v5916_v21 = vrot.slane %v9017_v37, 9  ;;  %v4077_v29 = vrot.slane %v4075_v11, 4  ;;  %v4080_v18 = vrot.slane %v4078_v17, 5 }
 0x128   : > { %v9034_v3 = vadd.f32 %v6454_v5, %v1127_v8  ;;  %v1119_v58 = vadd.f32 %v1118_v62, %v8539_v57  ;;  %v9043_v44 = vrot.slane %v4084_v9, 5  ;;  %v4090_v41 = vrot.slane %v4088_v31, 4  ;;  %v9837_v62 = vld [vmem:[#allocation3_spill] sm:$0xff] }
 0x129   : > { %v6407_v63 = vpop.f32.mrf.mxu1  ;;  %v6458_v5 = vpop.f32.mrf.mxu0  ;;  %v9834_v0 = vcombine.low %v8731_v33, %v8739_v23  ;;  %v4099_v59 = vshrl.u32 %v5838_v28, 16  ;;  %v4102_v37 = vshll.u32 %v5838_v28, 16  ;;  %v9835_v11 = vcombine.low %v8783_v7, %v8787_v50 }
 0x12a   : > { %9832 = vst [vmem:[#allocation25_spill] sm:$0xff] %v9034_v3  ;;  %v9048_v53 = vadd.f32 %v1571_v15, %v1119_v58  ;;  %v1130_v57 = vadd.f32 %v6407_v63, %v8575_v38  ;;  %v9057_v17 = vrot.slane %v4057_v20, 4  ;;  %v4067_v15 = vor.u32 %v4066_v24, %v9027_v40  ;;  %v5901_v58 = vld [vmem:[%s7019_s25 + $0x9c] sm:$0xe] }
 0x12b   : > { %v1121_v8 = vpop.f32.mrf.mxu1  ;;  %v4652_v9 = vrot.slane %v8953_v12, 5  ;;  %v4094_v38 = vshll.u32 %v9041_v61, 16  ;;  %v1587_v23 = vpop.f32.mrf.mxu0  ;;  %v4655_v28 = vrot.slane %v8976_v54, 5  ;;  %v4108_v63 = vshll.u32 %v9046_v14, 16 }
 0x12c   : > { %9833 = vst [vmem:[#allocation26_spill] sm:$0xff] %v9048_v53  ;;  %6745 = vmatmul.mubr.bf16.gmra.mxu0 %v9834_v0  ;;  %v9062_v31 = vadd.f32 %v6455_v45, %v1130_v57  ;;  %v1122_v33 = vadd.f32 %v1121_v8, %v9837_v62  ;;  %v4081_v50 = vor.u32 %v4080_v18, %v4077_v29  ;;  %v4659_v12 = vrot.slane %v8993_v6, 5  ;;  %v9838_v57 = vld [vmem:[#allocation7_spill] sm:$0xff]  ;;  %v9839_v6 = vld [vmem:[#allocation9_spill] sm:$0xff] }
 0x12d   : > { %6748 = vmatprep.mubr.bf16.mxu0 %v9835_v11  ;;  %v6410_v7 = vpop.f32.mrf.mxu1  ;;  %6697 = vmatmul.mubr.bf16.gmra.mxu1 %v8776_v2  ;;  %v4091_v20 = vor.u32 %v4090_v41, %v9043_v44  ;;  %v4112_v45 = vshrl.u32 %v9046_v14, 16  ;;  %v6459_v8 = vpop.f32.mrf.mxu0  ;;  %v4101_v54 = vrot.slane %v4099_v59, 4  ;;  %v4104_v11 = vrot.slane %v4102_v37, 5 }
 0x12e   : > { %9836 = vst [vmem:[#allocation27_spill] sm:$0xff] %v9062_v31  ;;  %v9072_v24 = vadd.f32 %v1574_v48, %v1122_v33  ;;  %v1143_v0 = vadd.f32 %v6410_v7, %v9838_v57  ;;  %6700 = vmatprep.mubr.bf16.mxu1 %v8818_v25  ;;  %v4068_v31 = vrot.slane %v4067_v15, 4  ;;  %v4654_v2 = vrot.slane %v4652_v9, 4 }
 0x12f   : > { %v1134_v62 = vpop.f32.mrf.mxu1  ;;  %v4096_v18 = vrot.slane %v4094_v38, 5  ;;  %v5917_v29 = vrot.slane %v5901_v58, 9  ;;  %v1590_v3 = vpop.f32.mrf.mxu0  ;;  %v9082_v48 = vrot.slane %v4108_v63, 5  ;;  %v4114_v33 = vrot.slane %v4112_v45, 4 }
 0x130   : > { %v9076_v41 = vadd.f32 %v6458_v5, %v1143_v0  ;;  %v1135_v53 = vadd.f32 %v1134_v62, %v9839_v6  ;;  %v4082_v57 = vrot.slane %v4081_v50, 4  ;;  %v4092_v25 = vrot.slane %v4091_v20, 4 }
 0x131   : > { %v6411_v7 = vpop.f32.mrf.mxu1  ;;  %v4661_v59 = vrot.slane %v4659_v12, 4  ;;  %v4662_v37 = vrot.slane %v9041_v61, 5  ;;  %v6462_v38 = vpop.f32.mrf.mxu0  ;;  %v9840_v58 = vcombine.low %v8825_v49, %v8829_v16  ;;  %v9093_v63 = vsel %vm7361_vm5, %v5916_v21, %v4652_v9  ;;  %v5902_v21 = vld [vmem:[%s7019_s25 + $0xa8] sm:$0xe] }
 0x132   : > { %v9085_v15 = vadd.f32 %v1587_v23, %v1135_v53  ;;  %v1146_v5 = vadd.f32 %v6411_v7, %v8722_v39  ;;  %v4105_v50 = vor.u32 %v4104_v11, %v4101_v54  ;;  %v9841_v20 = vcombine.low %v8861_v60, %v8883_v10 }
 0x133   : > { %v1137_v45 = vpop.f32.mrf.mxu1  ;;  %v4063_v39 = vsel %vm7050_vm2, %v9057_v17, %v9027_v40  ;;  %v4073_v49 = vsel %vm7050_vm2, %v4068_v31, %v9037_v47  ;;  %v9107_v16 = vsel %vm7361_vm5, %v4654_v2, %v4655_v28  ;;  %v4118_v61 = vshll.u32 %v9080_v35, 16  ;;  %v1603_v60 = vpop.f32.mrf.mxu0  ;;  %v5841_v17 = vld [vmem:[%s7019_s25 + $0xb4] sm:$0xf]  ;;  %v9842_v47 = vld [vmem:[#allocation18_spill] sm:$0xff]  ;;  %v9136_v2 = vld [vmem:[%s7019_s25 + $0xb8] sm:$0xf] }
 0x134   : > { %6749 = vmatmul.mubr.bf16.gmra.mxu0 %v9840_v58  ;;  %v9111_v53 = vadd.f32 %v6459_v8, %v1146_v5  ;;  %v1138_v10 = vadd.f32 %v1137_v45, %v8756_v46  ;;  %v4115_v9 = vor.u32 %v4114_v33, %v9082_v48  ;;  %v4666_v40 = vrot.slane %v9046_v14, 5  ;;  %v9843_v8 = vld [vmem:[#allocation13_spill] sm:$0xff] }
 0x135   : > { %6752 = vmatprep.mubr.bf16.mxu0 %v9841_v20  ;;  %v6414_v23 = vpop.f32.mrf.mxu1  ;;  %6701 = vmatmul.mubr.bf16.gmra.mxu1 %v9842_v47  ;;  %v4087_v31 = vsel %vm7050_vm2, %v4082_v57, %v9043_v44  ;;  %v4097_v28 = vsel %vm7050_vm2, %v4092_v25, %v4096_v18  ;;  %v9125_v46 = vsel %vm7361_vm5, %v5917_v29, %v4659_v12  ;;  %v6463_v11 = vpop.f32.mrf.mxu0  ;;  %v4106_v62 = vrot.slane %v4105_v50, 4  ;;  %v9844_v57 = vld [vmem:[#allocation15_spill] sm:$0xff]  ;;  %v9848_v47 = vld [vmem:[#allocation20_spill] sm:$0xff] }
 0x136   : > { %v9129_v0 = vsel %vm7361_vm5, %v4661_v59, %v4662_v37  ;;  %v9131_v14 = vadd.f32 %v1590_v3, %v1138_v10  ;;  %v1159_v54 = vadd.f32 %v6414_v23, %v9843_v8  ;;  %6704 = vmatprep.mubr.bf16.mxu1 %v8965_v42  ;;  %v5918_v44 = vrot.slane %v5902_v21, 9 }
 0x137   : > { %v1150_v18 = vpop.f32.mrf.mxu1  ;;  %v4120_v6 = vrot.slane %v4118_v61, 5  ;;  %v4669_v12 = vrot.slane %v9080_v35, 5  ;;  %v4123_v29 = vshrl.u32 %v5841_v17, 16  ;;  %v4126_v33 = vshll.u32 %v5841_v17, 16  ;;  %v1606_v25 = vpop.f32.mrf.mxu0 }
 0x138   : > { %v9139_v7 = vadd.f32 %v6462_v38, %v1159_v54  ;;  %v1151_v3 = vadd.f32 %v1150_v18, %v9844_v57  ;;  %v4116_v59 = vrot.slane %v4115_v9, 4  ;;  %v4668_v37 = vrot.slane %v4666_v40, 4  ;;  %v9845_v38 = vld [vmem:[#allocation17_spill] sm:$0xff] }
 0x139   : > { %v6415_v42 = vpop.f32.mrf.mxu1  ;;  %v9142_v5 = vcombine.low %v4063_v39, %v4073_v49  ;;  %v5948_v58 = vcombine.low %v9093_v63, %v9107_v16  ;;  %v9146_v50 = vcombine.low %v4087_v31, %v4097_v28  ;;  %v4132_v35 = vshll.u32 %v9136_v2, 16  ;;  %v6466_v61 = vpop.f32.mrf.mxu0  ;;  %v5844_v49 = vld [vmem:[%s7019_s25 + $0xc0] sm:$0xf]  ;;  %v9160_v16 = vld [vmem:[%s7019_s25 + $0xc4] sm:$0xf] }
 0x13a   : > { %v9149_v45 = vadd.f32 %v1603_v60, %v1151_v3  ;;  %v1162_v20 = vadd.f32 %v6415_v42, %v9845_v38  ;;  %v9846_v21 = vcombine.low %v8923_v51, %v8944_v55  ;;  %v5949_v39 = vcombine.low %v9125_v46, %v9129_v0  ;;  %v9853_v46 = vld [vmem:[#allocation6_spill] sm:$0xff] }
 0x13b   : > { %v4136_v63 = vshrl.u32 %v9136_v2, 16  ;;  %v1153_v10 = vpop.f32.mrf.mxu1  ;;  %v9847_v60 = vcombine.low %v8973_v13, %v8988_v30  ;;  %v4111_v51 = vsel %vm7050_vm2, %v4106_v62, %v9082_v48  ;;  %v9170_v55 = vsel %vm7361_vm5, %v5918_v44, %v4666_v40  ;;  %v1619_v28 = vpop.f32.mrf.mxu0  ;;  %v9182_v30 = vld [vmem:[%s7019_s25 + $0xbc] sm:$0x1]  ;;  %v5903_v48 = vld [vmem:[%s7019_s25 + $0xb4] sm:$0xe] }
 0x13c   : > { %6753 = vmatmul.mubr.bf16.gmra.mxu0 %v9846_v21  ;;  %v4125_v9 = vrot.slane %v4123_v29, 4  ;;  %v4128_v17 = vrot.slane %v4126_v33, 5  ;;  %v9172_v23 = vadd.f32 %v6463_v11, %v1162_v20  ;;  %v1154_v31 = vadd.f32 %v1153_v10, %v9848_v47  ;;  %v9204_v20 = vld [vmem:[%s7019_s25 + $0xc8] sm:$0x1] }
 0x13d   : > { %6756 = vmatprep.mubr.bf16.mxu0 %v9847_v60  ;;  %v4121_v8 = vsel %vm7050_vm2, %v4116_v59, %v4120_v6  ;;  %v9179_v13 = vsel %vm7361_vm5, %v4668_v37, %v4669_v12  ;;  %v6418_v54 = vpop.f32.mrf.mxu1  ;;  %6705 = vmatmul.mubr.bf16.gmra.mxu1 %v8967_v52  ;;  %v9186_v40 = vrot.slane %v4132_v35, 5  ;;  %v4147_v11 = vshrl.u32 %v5844_v49, 16  ;;  %v6467_v29 = vpop.f32.mrf.mxu0 }
 0x13e   : > { %v4150_v62 = vshll.u32 %v5844_v49, 16  ;;  %v4156_v44 = vshll.u32 %v9160_v16, 16  ;;  %v9189_v18 = vadd.f32 %v1606_v25, %v1154_v31  ;;  %v1175_v6 = vadd.f32 %v6418_v54, %v8907_v43  ;;  %6708 = vmatprep.mubr.bf16.mxu1 %v9023_v22 }
 0x13f   : > { %v4138_v12 = vrot.slane %v4136_v63, 4  ;;  %v4160_v33 = vshrl.u32 %v9160_v16, 16  ;;  %v1166_v57 = vpop.f32.mrf.mxu1  ;;  %v4129_v3 = vor.u32 %v4128_v17, %v4125_v9  ;;  %v4142_v52 = vshll.u32 %v9182_v30, 16  ;;  %v1622_v43 = vpop.f32.mrf.mxu0  ;;  %v5847_v9 = vld [vmem:[%s7019_s25 + $0xcc] sm:$0xf] }
 0x140   : > { %v5919_v59 = vrot.slane %v5903_v48, 9  ;;  %v4673_v37 = vrot.slane %v9136_v2, 5  ;;  %v9196_v42 = vadd.f32 %v6466_v61, %v1175_v6  ;;  %v1167_v25 = vadd.f32 %v1166_v57, %v8926_v1  ;;  %v5904_v48 = vld [vmem:[%s7019_s25 + $0xc0] sm:$0xe] }
 0x141   : > { %v9199_v35 = vcombine.low %v4111_v51, %v4121_v8  ;;  %v5950_v22 = vcombine.low %v9170_v55, %v9179_v13  ;;  %v6419_v38 = vpop.f32.mrf.mxu1  ;;  %v4149_v21 = vrot.slane %v4147_v11, 4  ;;  %v4152_v63 = vrot.slane %v4150_v62, 5  ;;  %v6470_v10 = vpop.f32.mrf.mxu0  ;;  %v9226_v8 = vld [vmem:[%s7019_s25 + $0xd0] sm:$0xf] }
 0x142   : > { %v9206_v49 = vrot.slane %v4156_v44, 5  ;;  %v4162_v2 = vrot.slane %v4160_v33, 4  ;;  %v9208_v61 = vadd.f32 %v1619_v28, %v1167_v25  ;;  %v1178_v1 = vadd.f32 %v6419_v38, %v8946_v26 }
 0x143   : > { %v9849_v60 = vcombine.low %v9002_v19, %v9012_v36  ;;  %v4139_v51 = vor.u32 %v4138_v12, %v9186_v40  ;;  %v4676_v55 = vrot.slane %v9182_v30, 5  ;;  %v1169_v17 = vpop.f32.mrf.mxu1  ;;  %v9217_v47 = vrot.slane %v4129_v3, 4  ;;  %v1635_v13 = vpop.f32.mrf.mxu0 }
 0x144   : > { %v9219_v31 = vrot.slane %v4142_v52, 5  ;;  %v9223_v26 = vsel %vm7361_vm5, %v5919_v59, %v4673_v37  ;;  %v4675_v28 = vrot.slane %v4673_v37, 4  ;;  %v9228_v19 = vadd.f32 %v6467_v29, %v1178_v1  ;;  %v9850_v29 = vld [vmem:[#allocation2_spill] sm:$0xff] }
 0x145   : > { %6757 = vmatmul.mubr.bf16.gmra.mxu0 %v9849_v60  ;;  %v1170_v36 = vadd.f32 %v1169_v17, %v8955_v34  ;;  %v4166_v30 = vshll.u32 %v9204_v20, 16  ;;  %v6422_v54 = vpop.f32.mrf.mxu1  ;;  %6709 = vmatmul.mubr.bf16.gmra.mxu1 %v9029_v4  ;;  %v4153_v11 = vor.u32 %v4152_v63, %v4149_v21  ;;  %v4163_v62 = vor.u32 %v4162_v2, %v9206_v49  ;;  %v6471_v57 = vpop.f32.mrf.mxu0 }
 0x146   : > { %6760 = vmatprep.mubr.bf16.mxu0 %v5948_v58  ;;  %v4680_v58 = vrot.slane %v9160_v16, 5  ;;  %v4171_v44 = vshrl.u32 %v5847_v9, 16  ;;  %v4174_v6 = vshll.u32 %v5847_v9, 16  ;;  %v1191_v33 = vadd.f32 %v6422_v54, %v9850_v29  ;;  %6712 = vmatprep.mubr.bf16.mxu1 %v9142_v5 }
 0x147   : > { %v9236_v12 = vadd.f32 %v1622_v43, %v1170_v36  ;;  %v4180_v34 = vshll.u32 %v9226_v8, 16  ;;  %v4184_v3 = vshrl.u32 %v9226_v8, 16  ;;  %v1182_v16 = vpop.f32.mrf.mxu1  ;;  %v4140_v52 = vrot.slane %v4139_v51, 4  ;;  %v9851_v43 = vld [vmem:[#allocation5_spill] sm:$0xff]  ;;  %v1638_v21 = vpop.f32.mrf.mxu0  ;;  %v9852_v36 = vld [vmem:[#allocation4_spill] sm:$0xff] }
 0x148   : > { %v4677_v4 = vsel %vm7361_vm5, %v4675_v28, %v4676_v55  ;;  %v5920_v59 = vrot.slane %v5904_v48, 9  ;;  %v4683_v37 = vrot.slane %v9204_v20, 5  ;;  %v9245_v25 = vadd.f32 %v6470_v10, %v1191_v33  ;;  %v5849_v20 = vld [vmem:[%s7019_s25 + $0xd4] sm:$0x1] }
 0x149   : > { %v1183_v38 = vadd.f32 %v1182_v16, %v9851_v43  ;;  %v4168_v63 = vrot.slane %v4166_v30, 5  ;;  %v4682_v5 = vrot.slane %v4680_v58, 4  ;;  %v6423_v2 = vpop.f32.mrf.mxu1  ;;  %v4154_v1 = vrot.slane %v4153_v11, 4 }
 0x14a   : > { %v4164_v60 = vrot.slane %v4163_v62, 4  ;;  %v4173_v9 = vrot.slane %v4171_v44, 4  ;;  %v4176_v17 = vrot.slane %v4174_v6, 5  ;;  %v1194_v55 = vadd.f32 %v6423_v2, %v9852_v36  ;;  %v6474_v28 = vpop.f32.mrf.mxu0  ;;  %v5905_v6 = vld [vmem:[%s7019_s25 + $0xcc] sm:$0xe] }
 0x14b   : > { %v9248_v51 = vadd.f32 %v1635_v13, %v1183_v38  ;;  %v9255_v10 = vrot.slane %v4180_v34, 5  ;;  %v4186_v30 = vrot.slane %v4184_v3, 4  ;;  %v1185_v48 = vpop.f32.mrf.mxu1  ;;  %v4135_v13 = vsel %vm7050_vm2, %v9217_v47, %v9186_v40 }
 0x14c   : > { %v4145_v54 = vsel %vm7050_vm2, %v4140_v52, %v9219_v31  ;;  %v4687_v11 = vrot.slane %v9226_v8, 5  ;;  %v9265_v62 = vadd.f32 %v6471_v57, %v1194_v55  ;;  %v1186_v0 = vadd.f32 %v1185_v48, %v9853_v46  ;;  %v9854_v57 = vld [vmem:[#allocation8_spill] sm:$0xff] }
 0x14d   : > { %6761 = vmatmul.mubr.bf16.gmra.mxu0 %v5949_v39  ;;  %v1651_v39 = vpop.f32.mrf.mxu0  ;;  %v4681_v44 = vsel %vm7361_vm5, %v5920_v59, %v4680_v58  ;;  %v6426_v29 = vpop.f32.mrf.mxu1  ;;  %6713 = vmatmul.mubr.bf16.gmra.mxu1 %v9146_v50  ;;  %v5951_v40 = vcombine.low %v9223_v26, %v4677_v4  ;;  %v4159_v47 = vsel %vm7050_vm2, %v4154_v1, %v9206_v49  ;;  %v4190_v8 = vshll.u32 %v5849_v20, 16  ;;  %v9857_v48 = vld [vmem:[#allocation12_spill] sm:$0xff] }
 0x14e   : > { %6764 = vmatprep.mubr.bf16.mxu0 %v5950_v22  ;;  %v4684_v22 = vsel %vm7361_vm5, %v4682_v5, %v4683_v37  ;;  %v4177_v31 = vor.u32 %v4176_v17, %v4173_v9  ;;  %v9278_v33 = vadd.f32 %v1638_v21, %v1186_v0  ;;  %v1207_v34 = vadd.f32 %v6426_v29, %v9854_v57  ;;  %v9855_v37 = vld [vmem:[#allocation10_spill] sm:$0xff]  ;;  %v9856_v9 = vld [vmem:[#allocation11_spill] sm:$0xff] }
 0x14f   : > { %v6475_v58 = vpop.f32.mrf.mxu0  ;;  %6716 = vmatprep.mubr.bf16.mxu1 %v9199_v35  ;;  %v4169_v3 = vsel %vm7050_vm2, %v4164_v60, %v4168_v63  ;;  %v4187_v50 = vor.u32 %v4186_v30, %v9255_v10  ;;  %v1198_v16 = vpop.f32.mrf.mxu1  ;;  %v5952_v26 = vcombine.low %v4681_v44, %v4684_v22  ;;  %v5921_v52 = vrot.slane %v5905_v6, 9  ;;  %v9858_v44 = vld [vmem:[#allocation14_spill] sm:$0xff] }
 0x150   : > { %v4689_v4 = vrot.slane %v4687_v11, 4  ;;  %v4690_v59 = vrot.slane %v5849_v20, 5  ;;  %v9285_v49 = vadd.f32 %v6474_v28, %v1207_v34  ;;  %v1199_v43 = vadd.f32 %v1198_v16, %v9855_v37  ;;  %v9861_v37 = vld [vmem:[#allocation21_spill] sm:$0xff] }
 0x151   : > { %v1654_v38 = vpop.f32.mrf.mxu0  ;;  %v6427_v21 = vpop.f32.mrf.mxu1  ;;  %v5879_v5 = vcombine.low %v4135_v13, %v4145_v54  ;;  %v5880_v2 = vcombine.low %v4159_v47, %v4169_v3  ;;  %v4178_v1 = vrot.slane %v4177_v31, 4  ;;  %v4188_v17 = vrot.slane %v4187_v50, 4  ;;  %v9859_v47 = vld [vmem:[#allocation16_spill] sm:$0xff] }
 0x152   : > { %v9288_v35 = vadd.f32 %v1651_v39, %v1199_v43  ;;  %v1210_v63 = vadd.f32 %v6427_v21, %v9856_v9  ;;  %v4192_v36 = vrot.slane %v4190_v8, 5  ;;  %v4688_v28 = vsel %vm7361_vm5, %v5921_v52, %v4687_v11 }
 0x153   : > { %v6478_v60 = vpop.f32.mrf.mxu0  ;;  %v1201_v55 = vpop.f32.mrf.mxu1  ;;  %v4691_v20 = vsel %vm7361_vm5, %v4689_v4, %v4690_v59  ;;  %v4183_v0 = vsel %vm7050_vm2, %v4178_v1, %v9255_v10  ;;  %v9860_v10 = vld [vmem:[#allocation19_spill] sm:$0xff] }
 0x154   : > { %v9295_v30 = vadd.f32 %v6475_v58, %v1210_v63  ;;  %v1202_v13 = vadd.f32 %v1201_v55, %v9857_v48  ;;  %v4193_v56 = vsel %vm7050_vm2, %v4188_v17, %v4192_v36  ;;  %v5953_v11 = vcombine.low %v4688_v28, %v4691_v20  ;;  %v9863_v17 = vld [vmem:[#allocation23_spill] sm:$0xff]  ;;  %v9864_v20 = vld [vmem:[#allocation24_spill] sm:$0xff] }
 0x155   : > { %6765 = vmatmul.mubr.bf16.gmra.mxu0 %v5951_v40  ;;  %v1667_v54 = vpop.f32.mrf.mxu0  ;;  %v6430_v46 = vpop.f32.mrf.mxu1  ;;  %6717 = vmatmul.mubr.bf16.gmra.mxu1 %v5879_v5  ;;  %v5881_v34 = vcombine.low %v4183_v0, %v4193_v56  ;;  %v9865_v0 = vld [vmem:[#allocation25_spill] sm:$0xff] }
 0x156   : > { %6768 = vmatprep.mubr.bf16.mxu0 %v5952_v26  ;;  %v9301_v39 = vadd.f32 %v1654_v38, %v1202_v13  ;;  %v1223_v22 = vadd.f32 %v6430_v46, %v9858_v44  ;;  %6720 = vmatprep.mubr.bf16.mxu1 %v5880_v2  ;;  %v9862_v2 = vld [vmem:[#allocation22_spill] sm:$0xff] }
 0x157   : > { %v6479_v6 = vpop.f32.mrf.mxu0  ;;  %v1214_v29 = vpop.f32.mrf.mxu1 }
 0x158   : > { %v9306_v40 = vadd.f32 %v6478_v60, %v1223_v22  ;;  %v1215_v31 = vadd.f32 %v1214_v29, %v9859_v47 }
 0x159   : > { %v1670_v8 = vpop.f32.mrf.mxu0  ;;  %v6431_v57 = vpop.f32.mrf.mxu1 }
 0x15a   : > { %v9309_v58 = vadd.f32 %v1667_v54, %v1215_v31  ;;  %v1226_v3 = vadd.f32 %v6431_v57, %v9860_v10  ;;  %v9867_v57 = vld [vmem:[#allocation27_spill] sm:$0xff] }
 0x15b   : > { %v6482_v50 = vpop.f32.mrf.mxu0  ;;  %v1217_v16 = vpop.f32.mrf.mxu1 }
 0x15c   : > { %v9312_v26 = vadd.f32 %v6479_v6, %v1226_v3  ;;  %v1218_v27 = vadd.f32 %v1217_v16, %v8902_v32 }
 0x15d   : > { %6769 = vmatmul.mubr.bf16.gmra.mxu0 %v5953_v11  ;;  %v1683_v52 = vpop.f32.mrf.mxu0  ;;  %v6434_v4 = vpop.f32.mrf.mxu1  ;;  %6721 = vmatmul.mubr.bf16.gmra.mxu1 %v5881_v34  ;;  %v9866_v11 = vld [vmem:[#allocation26_spill] sm:$0xff] }
 0x15e   : > { %v9315_v59 = vadd.f32 %v1670_v8, %v1218_v27  ;;  %v1239_v43 = vadd.f32 %v6434_v4, %v9861_v37 }
 0x15f   : > { %v6483_v38 = vpop.f32.mrf.mxu0  ;;  %v1230_v21 = vpop.f32.mrf.mxu1 }
 0x160   : > { %v9318_v5 = vadd.f32 %v6482_v50, %v1239_v43  ;;  %v1231_v1 = vadd.f32 %v1230_v21, %v9862_v2 }
 0x161   : > { %v1686_v9 = vpop.f32.mrf.mxu0  ;;  %v6435_v63 = vpop.f32.mrf.mxu1 }
 0x162   : > { %v9321_v60 = vadd.f32 %v1683_v52, %v1231_v1  ;;  %v1242_v36 = vadd.f32 %v6435_v63, %v9863_v17 }
 0x163   : > { %v6550_v32 = vpop.f32.mrf.mxu0  ;;  %v1233_v55 = vpop.f32.mrf.mxu1 }
 0x164   : > { %v9324_v28 = vadd.f32 %v6483_v38, %v1242_v36  ;;  %v1234_v48 = vadd.f32 %v1233_v55, %v9864_v20 }
 0x165   : > { %v2715_v13 = vpop.f32.mrf.mxu0  ;;  %v6502_v54 = vpop.f32.mrf.mxu1 }
 0x166   : > { %v9327_v46 = vadd.f32 %v1686_v9, %v1234_v48  ;;  %v2090_v44 = vadd.f32 %v6502_v54, %v9865_v0 }
 0x167   : > { %v6551_v22 = vpop.f32.mrf.mxu0  ;;  %v1961_v6 = vpop.f32.mrf.mxu1 }
 0x168   : > { %v9330_v56 = vadd.f32 %v6550_v32, %v2090_v44  ;;  %v2088_v29 = vadd.f32 %v1961_v6, %v9866_v11 }
 0x169   : > { %v2718_v47 = vpop.f32.mrf.mxu0  ;;  %v6503_v31 = vpop.f32.mrf.mxu1 }
 0x16a   : > { %v9333_v8 = vadd.f32 %v2715_v13, %v2088_v29  ;;  %v2091_v34 = vadd.f32 %v6503_v31, %v9867_v57 }
 0x16b   : > { %v6554_v10 = vpop.f32.mrf.mxu0  ;;  %v1964_v3 = vpop.f32.mrf.mxu1 }
 0x16c   : > { %v9336_v50 = vadd.f32 %v6551_v22, %v2091_v34  ;;  %v2089_v16 = vadd.f32 %v1964_v3, %v9072_v24 }
 0x16d   : > { %v2731_v27 = vpop.f32.mrf.mxu0  ;;  %v6506_v52 = vpop.f32.mrf.mxu1 }
 0x16e   : > { %v9339_v4 = vadd.f32 %v2718_v47, %v2089_v16  ;;  %v2094_v37 = vadd.f32 %v6506_v52, %v9076_v41 }
 0x16f   : > { %v6555_v43 = vpop.f32.mrf.mxu0  ;;  %v1977_v38 = vpop.f32.mrf.mxu1 }
 0x170   : > { %v9342_v21 = vadd.f32 %v6554_v10, %v2094_v37  ;;  %v2092_v2 = vadd.f32 %v1977_v38, %v9085_v15 }
 0x171   : > { %v2734_v1 = vpop.f32.mrf.mxu0  ;;  %v6507_v9 = vpop.f32.mrf.mxu1 }
 0x172   : > { %v9345_v63 = vadd.f32 %v2731_v27, %v2092_v2  ;;  %v2095_v17 = vadd.f32 %v6507_v9, %v9111_v53 }
 0x173   : > { %v6558_v36 = vpop.f32.mrf.mxu0  ;;  %v1980_v24 = vpop.f32.mrf.mxu1 }
 0x174   : > { %v9348_v32 = vadd.f32 %v6555_v43, %v2095_v17  ;;  %v2093_v55 = vadd.f32 %v1980_v24, %v9131_v14 }
 0x175   : > { %v2747_v20 = vpop.f32.mrf.mxu0  ;;  %v6510_v41 = vpop.f32.mrf.mxu1 }
 0x176   : > { %v9351_v48 = vadd.f32 %v2734_v1, %v2093_v55  ;;  %v2098_v13 = vadd.f32 %v6510_v41, %v9139_v7 }
 0x177   : > { %v6559_v54 = vpop.f32.mrf.mxu0  ;;  %v1993_v15 = vpop.f32.mrf.mxu1 }
 0x178   : > { %v9354_v0 = vadd.f32 %v6558_v36, %v2098_v13  ;;  %v2096_v44 = vadd.f32 %v1993_v15, %v9149_v45 }
 0x179   : > { %v2750_v22 = vpop.f32.mrf.mxu0  ;;  %v6511_v53 = vpop.f32.mrf.mxu1 }
 0x17a   : > { %v9357_v6 = vadd.f32 %v2747_v20, %v2096_v44  ;;  %v2099_v11 = vadd.f32 %v6511_v53, %v9172_v23 }
 0x17b   : > { %v6562_v29 = vpop.f32.mrf.mxu0  ;;  %v1996_v14 = vpop.f32.mrf.mxu1 }
 0x17c   : > { %v9360_v47 = vadd.f32 %v6559_v54, %v2099_v11  ;;  %v2097_v31 = vadd.f32 %v1996_v14, %v9189_v18 }
 0x17d   : > { %v2763_v57 = vpop.f32.mrf.mxu0  ;;  %v6514_v7 = vpop.f32.mrf.mxu1 }
 0x17e   : > { %v9363_v34 = vadd.f32 %v2750_v22, %v2097_v31  ;;  %v2102_v10 = vadd.f32 %v6514_v7, %v9196_v42 }
 0x17f   : > { %v6563_v3 = vpop.f32.mrf.mxu0  ;;  %v2009_v45 = vpop.f32.mrf.mxu1 }
 0x180   : > { %v9366_v16 = vadd.f32 %v6562_v29, %v2102_v10  ;;  %v2100_v27 = vadd.f32 %v2009_v45, %v9208_v61 }
 0x181   : > { %v2766_v52 = vpop.f32.mrf.mxu0  ;;  %v6515_v23 = vpop.f32.mrf.mxu1 }
 0x182   : > { %v9369_v37 = vadd.f32 %v2763_v57, %v2100_v27  ;;  %v2103_v43 = vadd.f32 %v6515_v23, %v9228_v19 }
 0x183   : > { %v6566_v38 = vpop.f32.mrf.mxu0  ;;  %v2012_v18 = vpop.f32.mrf.mxu1 }
 0x184   : > { %v9372_v2 = vadd.f32 %v6563_v3, %v2103_v43  ;;  %v2101_v1 = vadd.f32 %v2012_v18, %v9236_v12 }
 0x185   : > { %v2779_v9 = vpop.f32.mrf.mxu0  ;;  %v6518_v42 = vpop.f32.mrf.mxu1 }
 0x186   : > { %v9375_v17 = vadd.f32 %v2766_v52, %v2101_v1  ;;  %v2106_v36 = vadd.f32 %v6518_v42, %v9245_v25 }
 0x187   : > { %v6567_v24 = vpop.f32.mrf.mxu0  ;;  %v2025_v61 = vpop.f32.mrf.mxu1 }
 0x188   : > { %v9378_v55 = vadd.f32 %v6566_v38, %v2106_v36  ;;  %v2104_v20 = vadd.f32 %v2025_v61, %v9248_v51 }
 0x189   : > { %v2782_v41 = vpop.f32.mrf.mxu0  ;;  %v6519_v19 = vpop.f32.mrf.mxu1 }
 0x18a   : > { %v9381_v13 = vadd.f32 %v2779_v9, %v2104_v20  ;;  %v2107_v54 = vadd.f32 %v6519_v19, %v9265_v62 }
 0x18b   : > { %v6570_v15 = vpop.f32.mrf.mxu0  ;;  %v2028_v12 = vpop.f32.mrf.mxu1 }
 0x18c   : > { %v9384_v44 = vadd.f32 %v6567_v24, %v2107_v54  ;;  %v2105_v22 = vadd.f32 %v2028_v12, %v9278_v33 }
 0x18d   : > { %v2795_v53 = vpop.f32.mrf.mxu0  ;;  %v6522_v25 = vpop.f32.mrf.mxu1 }
 0x18e   : > { %v9387_v11 = vadd.f32 %v2782_v41, %v2105_v22  ;;  %v2110_v29 = vadd.f32 %v6522_v25, %v9285_v49 }
 0x18f   : > { %v6571_v14 = vpop.f32.mrf.mxu0  ;;  %v2041_v51 = vpop.f32.mrf.mxu1 }
 0x190   : > { %v9390_v31 = vadd.f32 %v6570_v15, %v2110_v29  ;;  %v2108_v57 = vadd.f32 %v2041_v51, %v9288_v35 }
 0x191   : > { %v2798_v7 = vpop.f32.mrf.mxu0  ;;  %v6523_v62 = vpop.f32.mrf.mxu1 }
 0x192   : > { %v9393_v10 = vadd.f32 %v2795_v53, %v2108_v57  ;;  %v2111_v3 = vadd.f32 %v6523_v62, %v9295_v30 }
 0x193   : > { %v6574_v45 = vpop.f32.mrf.mxu0  ;;  %v2044_v33 = vpop.f32.mrf.mxu1 }
 0x194   : > { %v9396_v27 = vadd.f32 %v6571_v14, %v2111_v3  ;;  %v2109_v52 = vadd.f32 %v2044_v33, %v9301_v39 }
 0x195   : > { %v2811_v23 = vpop.f32.mrf.mxu0  ;;  %v6526_v49 = vpop.f32.mrf.mxu1 }
 0x196   : > { %v9399_v43 = vadd.f32 %v2798_v7, %v2109_v52  ;;  %v2114_v38 = vadd.f32 %v6526_v49, %v9306_v40 }
 0x197   : > { %v6575_v18 = vpop.f32.mrf.mxu0  ;;  %v2057_v35 = vpop.f32.mrf.mxu1 }
 0x198   : > { %v9402_v1 = vadd.f32 %v6574_v45, %v2114_v38  ;;  %v2112_v9 = vadd.f32 %v2057_v35, %v9309_v58 }
 0x199   : > { %v2814_v42 = vpop.f32.mrf.mxu0  ;;  %v6527_v30 = vpop.f32.mrf.mxu1 }
 0x19a   : > { %v9405_v36 = vadd.f32 %v2811_v23, %v2112_v9  ;;  %v2115_v24 = vadd.f32 %v6527_v30, %v9312_v26 }
 0x19b   : > { %v6578_v61 = vpop.f32.mrf.mxu0  ;;  %v2060_v39 = vpop.f32.mrf.mxu1 }
 0x19c   : > { %v9408_v20 = vadd.f32 %v6575_v18, %v2115_v24  ;;  %v2113_v41 = vadd.f32 %v2060_v39, %v9315_v59 }
 0x19d   : > { %v2827_v19 = vpop.f32.mrf.mxu0  ;;  %v6530_v40 = vpop.f32.mrf.mxu1 }
 0x19e   : > { %9868 = vst [vmem:[#allocation3_spill] sm:$0xff] %v9408_v20  ;;  %v9411_v54 = vadd.f32 %v2814_v42, %v2113_v41  ;;  %v2118_v15 = vadd.f32 %v6530_v40, %v9318_v5 }
 0x19f   : > { %v6579_v12 = vpop.f32.mrf.mxu0  ;;  %v2073_v58 = vpop.f32.mrf.mxu1 }
 0x1a0   : > { %9869 = vst [vmem:[#allocation7_spill] sm:$0xff] %v9411_v54  ;;  %v9414_v22 = vadd.f32 %v6578_v61, %v2118_v15  ;;  %v2116_v53 = vadd.f32 %v2073_v58, %v9321_v60 }
 0x1a1   : > { %v2830_v25 = vpop.f32.mrf.mxu0  ;;  %v6531_v26 = vpop.f32.mrf.mxu1 }
 0x1a2   : > { %v9417_v29 = vadd.f32 %v2827_v19, %v2116_v53  ;;  %v2119_v14 = vadd.f32 %v6531_v26, %v9324_v28 }
 0x1a3   : > { %v6646_v51 = vpop.f32.mrf.mxu0  ;;  %v2076_v59 = vpop.f32.mrf.mxu1 }
 0x1a4   : > { %v9420_v57 = vadd.f32 %v6579_v12, %v2119_v14  ;;  %v2117_v7 = vadd.f32 %v2076_v59, %v9327_v46 }
 0x1a5   : > { %v3603_v62 = vpop.f32.mrf.mxu0  ;;  %v6598_v5 = vpop.f32.mrf.mxu1 }
 0x1a6   : > { %9870 = vst [vmem:[#allocation9_spill] sm:$0xff] %v9420_v57  ;;  %v9423_v3 = vadd.f32 %v2830_v25, %v2117_v7  ;;  %v3342_v45 = vadd.f32 %v6598_v5, %v9330_v56 }
 0x1a7   : > { %v9426_v33 = vpop.f32.mrf.mxu0  ;;  %v3213_v60 = vpop.f32.mrf.mxu1 }
 0x1a8   : > { %9871 = vst [vmem:[#allocation18_spill] sm:$0xff] %v9423_v3  ;;  %v9428_v52 = vadd.f32 %v6646_v51, %v3342_v45  ;;  %v3340_v23 = vadd.f32 %v3213_v60, %v9333_v8 }
 0x1a9   : > { %v9431_v28 = vpop.f32.mrf.mxu0  ;;  %v9433_v49 = vpop.f32.mrf.mxu1 }
 0x1aa   : > { %v9435_v38 = vadd.f32 %v3603_v62, %v3340_v23 }
 0x1ab   : > { %v6650_v46 = vpop.f32.mrf.mxu0  ;;  %v9437_v18 = vpop.f32.mrf.mxu1 }
 0x1ad   : > { %v3619_v35 = vpop.f32.mrf.mxu0  ;;  %v6602_v9 = vpop.f32.mrf.mxu1 }
 0x1ae   : > { %v3346_v56 = vadd.f32 %v6602_v9, %v9342_v21 }
 0x1af   : > { %v9440_v42 = vpop.f32.mrf.mxu0  ;;  %v3229_v30 = vpop.f32.mrf.mxu1 }
 0x1b0   : > { %v9442_v24 = vadd.f32 %v6650_v46, %v3346_v56  ;;  %v3344_v8 = vadd.f32 %v3229_v30, %v9345_v63 }
 0x1b1   : > { %v9445_v61 = vpop.f32.mrf.mxu0  ;;  %v9447_v39 = vpop.f32.mrf.mxu1 }
 0x1b2   : > { %v9449_v41 = vadd.f32 %v3619_v35, %v3344_v8 }
 0x1b3   : > { %v6654_v19 = vpop.f32.mrf.mxu0  ;;  %v9451_v40 = vpop.f32.mrf.mxu1 }
 0x1b5   : > { %v3635_v15 = vpop.f32.mrf.mxu0  ;;  %v6606_v12 = vpop.f32.mrf.mxu1 }
 0x1b6   : > { %v3350_v21 = vadd.f32 %v6606_v12, %v9354_v0 }
 0x1b7   : > { %v9454_v58 = vpop.f32.mrf.mxu0  ;;  %v3245_v53 = vpop.f32.mrf.mxu1 }
 0x1b8   : > { %v9456_v25 = vadd.f32 %v6654_v19, %v3350_v21  ;;  %v3348_v63 = vadd.f32 %v3245_v53, %v9357_v6 }
 0x1b9   : > { %v9459_v26 = vpop.f32.mrf.mxu0  ;;  %v9461_v14 = vpop.f32.mrf.mxu1 }
 0x1ba   : > { %v9463_v51 = vadd.f32 %v3635_v15, %v3348_v63 }
 0x1bb   : > { %v6658_v59 = vpop.f32.mrf.mxu0  ;;  %v9465_v7 = vpop.f32.mrf.mxu1 }
 0x1bd   : > { %v3651_v62 = vpop.f32.mrf.mxu0  ;;  %v6610_v5 = vpop.f32.mrf.mxu1 }
 0x1be   : > { %v3354_v0 = vadd.f32 %v6610_v5, %v9366_v16 }
 0x1bf   : > { %v9468_v45 = vpop.f32.mrf.mxu0  ;;  %v3261_v60 = vpop.f32.mrf.mxu1 }
 0x1c0   : > { %v9470_v23 = vadd.f32 %v6658_v59, %v3354_v0  ;;  %v3352_v6 = vadd.f32 %v3261_v60, %v9369_v37 }
 0x1c1   : > { %v9473_v46 = vpop.f32.mrf.mxu0  ;;  %v9475_v35 = vpop.f32.mrf.mxu1 }
 0x1c2   : > { %v9477_v9 = vadd.f32 %v3651_v62, %v3352_v6 }
 0x1c3   : > { %v6662_v56 = vpop.f32.mrf.mxu0  ;;  %v9479_v30 = vpop.f32.mrf.mxu1 }
 0x1c5   : > { %v3667_v8 = vpop.f32.mrf.mxu0  ;;  %v6614_v19 = vpop.f32.mrf.mxu1 }
 0x1c6   : > { %v3358_v16 = vadd.f32 %v6614_v19, %v9378_v55 }
 0x1c7   : > { %v9482_v15 = vpop.f32.mrf.mxu0  ;;  %v3277_v12 = vpop.f32.mrf.mxu1 }
 0x1c8   : > { %v9484_v21 = vadd.f32 %v6662_v56, %v3358_v16  ;;  %v3356_v37 = vadd.f32 %v3277_v12, %v9381_v13 }
 0x1c9   : > { %v9487_v53 = vpop.f32.mrf.mxu0  ;;  %v9489_v63 = vpop.f32.mrf.mxu1 }
 0x1ca   : > { %v9491_v59 = vadd.f32 %v3667_v8, %v3356_v37 }
 0x1cb   : > { %v6666_v62 = vpop.f32.mrf.mxu0  ;;  %v9493_v5 = vpop.f32.mrf.mxu1 }
 0x1cd   : > { %v3683_v0 = vpop.f32.mrf.mxu0  ;;  %v6618_v60 = vpop.f32.mrf.mxu1 }
 0x1ce   : > { %v3362_v55 = vadd.f32 %v6618_v60, %v9390_v31 }
 0x1cf   : > { %v9496_v6 = vpop.f32.mrf.mxu0  ;;  %v3293_v19 = vpop.f32.mrf.mxu1 }
 0x1d0   : > { %9872 = vst [vmem:[#allocation13_spill] sm:$0xff] %v9496_v6  ;;  %v9498_v56 = vadd.f32 %v6666_v62, %v3362_v55  ;;  %v3360_v13 = vadd.f32 %v3293_v19, %v9393_v10 }
 0x1d1   : > { %v9501_v16 = vpop.f32.mrf.mxu0  ;;  %v9503_v12 = vpop.f32.mrf.mxu1 }
 0x1d2   : > { %9873 = vst [vmem:[#allocation15_spill] sm:$0xff] %v9501_v16  ;;  %v9505_v8 = vadd.f32 %v3683_v0, %v3360_v13  ;;  %v5015_v16 = vlaneseq }
 0x1d3   : > { %v6670_v37 = vpop.f32.mrf.mxu0  ;;  %v9507_v3 = vpop.f32.mrf.mxu1 }
 0x1d4   : > { %9874 = vst [vmem:[#allocation17_spill] sm:$0xff] %v9505_v8  ;;  %9875 = vst [vmem:[#allocation20_spill] sm:$0xff] %v9507_v3 }
 0x1d5   : > { %v3699_v57 = vpop.f32.mrf.mxu0  ;;  %v6622_v54 = vpop.f32.mrf.mxu1 }
 0x1d6   : > { %v3366_v31 = vadd.f32 %v6622_v54, %v9402_v1 }
 0x1d7   : > { %v9510_v60 = vpop.f32.mrf.mxu0  ;;  %v3309_v20 = vpop.f32.mrf.mxu1 }
 0x1d8   : > { %9876 = vst [vmem:[#allocation2_spill] sm:$0xff] %v9510_v60  ;;  %v9512_v62 = vadd.f32 %v6670_v37, %v3366_v31  ;;  %v3364_v10 = vadd.f32 %v3309_v20, %v9405_v36  ;;  %v5016_v37 = vshrl.u32 %v5015_v16, 7 }
 0x1d9   : > { %v9515_v55 = vpop.f32.mrf.mxu0  ;;  %v9517_v19 = vpop.f32.mrf.mxu1 }
 0x1da   : > { %9877 = vst [vmem:[#allocation5_spill] sm:$0xff] %v9515_v55  ;;  %v9519_v0 = vadd.f32 %v3699_v57, %v3364_v10 }
 0x1db   : > { %v6674_v13 = vpop.f32.mrf.mxu0  ;;  %v9521_v8 = vpop.f32.mrf.mxu1 }
 0x1dc   : > { %9878 = vst [vmem:[#allocation4_spill] sm:$0xff] %v9519_v0  ;;  %9879 = vst [vmem:[#allocation6_spill] sm:$0xff] %v9521_v8  ;;  %v5017_v0 = vsub.s32 0, %v5016_v37 }
 0x1dd   : > { %v3715_v6 = vpop.f32.mrf.mxu0  ;;  %v6626_v3 = vpop.f32.mrf.mxu1 }
 0x1de   : > { %v3370_v1 = vadd.f32 %v6626_v3, %v9414_v22  ;;  %v5014_v22 = vld [vmem:[%s9705_s2] sm:$0x3]  ;;  %v3343_v3 = vadd.f32 %v9433_v49, %v9336_v50 }
 0x1df   : > { %v9524_v54 = vpop.f32.mrf.mxu0  ;;  %v3325_v31 = vpop.f32.mrf.mxu1 }
 0x1e0   : > { %9880 = vst [vmem:[#allocation8_spill] sm:$0xff] %v9524_v54  ;;  %v9526_v60 = vadd.f32 %v6674_v13, %v3370_v1  ;;  %v3368_v36 = vadd.f32 %v3325_v31, %v9417_v29  ;;  %v5053_v29 = vsub.s32 1, %v5016_v37  ;;  %v3341_v1 = vadd.f32 %v9437_v18, %v9339_v4 }
 0x1e1   : > { %v9529_v20 = vpop.f32.mrf.mxu0  ;;  %v9531_v57 = vpop.f32.mrf.mxu1  ;;  %v9545_v31 = vrot.slane %v5014_v22, %v5017_v0 }
 0x1e2   : > { %9881 = vst [vmem:[#allocation10_spill] sm:$0xff] %v9526_v60  ;;  %9882 = vst [vmem:[#allocation11_spill] sm:$0xff] %v9529_v20  ;;  %v9533_v10 = vadd.f32 %v3715_v6, %v3368_v36  ;;  %v3731_v49 = vadd.f32 %v9431_v28, %v3341_v1 }
 0x1e3   : > { %9883 = vst [vmem:[#allocation12_spill] sm:$0xff] %v9531_v57  ;;  %v9535_v8 = vpop.f32.mrf.mxu1  ;;  %v9549_v57 = vrot.slane %v5014_v22, %v5053_v29 }
 0x1e4   : > { %9884 = vst [vmem:[#allocation14_spill] sm:$0xff] %v9533_v10  ;;  %v6742_v55 = vpop.f32.mrf.mxu0  ;;  %9885 = vst [vmem:[#allocation16_spill] sm:$0xff] %v9535_v8  ;;  %v3733_v10 = vadd.f32 %v9426_v33, %v3343_v3 }
 0x1e5   : > { %v6694_v13 = vpop.f32.mrf.mxu1 }
 0x1e6   : > { %v4855_v16 = vpop.f32.mrf.mxu0  ;;  %v4486_v6 = vadd.f32 %v6694_v13, %v9428_v52  ;;  %v3347_v13 = vadd.f32 %v9447_v39, %v9348_v32 }
 0x1e7   : > { %v4357_v20 = vpop.f32.mrf.mxu1 }
 0x1e8   : > { %v6743_v36 = vpop.f32.mrf.mxu0  ;;  %v4984_v54 = vadd.f32 %v6742_v55, %v4486_v6  ;;  %v4484_v8 = vadd.f32 %v4357_v20, %v9435_v38  ;;  %v3737_v39 = vadd.f32 %v9440_v42, %v3347_v13  ;;  %v3351_v42 = vadd.f32 %v9461_v14, %v9360_v47 }
 0x1e9   : > { %v6695_v50 = vpop.f32.mrf.mxu1 }
 0x1ea   : > { %v4858_v60 = vpop.f32.mrf.mxu0  ;;  %v5021_v37 = vmul.f32 %v9545_v31, %v4984_v54  ;;  %v4982_v4 = vadd.f32 %v4855_v16, %v4484_v8  ;;  %v4487_v18 = vadd.f32 %v6695_v50, %v3733_v10  ;;  %v3345_v8 = vadd.f32 %v9451_v40, %v9351_v48 }
 0x1eb   : > { %v4360_v0 = vpop.f32.mrf.mxu1 }
 0x1ec   : > { %v6746_v52 = vpop.f32.mrf.mxu0  ;;  %v5019_v33 = vmul.f32 %v9545_v31, %v4982_v4  ;;  %v4985_v55 = vadd.f32 %v6743_v36, %v4487_v18  ;;  %v4485_v38 = vadd.f32 %v4360_v0, %v3731_v49  ;;  %v5057_v22 = vadd.f32 %v9549_v57, %v5021_v37 }
 0x1ed   : > { %v6698_v3 = vpop.f32.mrf.mxu1  ;;  %v3735_v0 = vadd.f32 %v9445_v61, %v3345_v8 }
 0x1ee   : > { %v4871_v20 = vpop.f32.mrf.mxu0  ;;  %v5022_v28 = vmul.f32 %v9545_v31, %v4985_v55  ;;  %v4983_v29 = vadd.f32 %v4858_v60, %v4485_v38  ;;  %v5055_v10 = vadd.f32 %v9549_v57, %v5019_v33  ;;  %v4490_v16 = vadd.f32 %v6698_v3, %v9442_v24 }
 0x1ef   : > { %v4373_v32 = vpop.f32.mrf.mxu1  ;;  %v5089_v60 = vmax.f32 %v5057_v22, 0.0 }
 0x1f0   : > { %v6747_v54 = vpop.f32.mrf.mxu0  ;;  %v5058_v1 = vadd.f32 %v9549_v57, %v5022_v28  ;;  %v5020_v6 = vmul.f32 %v9545_v31, %v4983_v29  ;;  %v4488_v36 = vadd.f32 %v4373_v32, %v9449_v41  ;;  %v4988_v49 = vadd.f32 %v6746_v52, %v4490_v16 }
 0x1f1   : > { %v6699_v37 = vpop.f32.mrf.mxu1  ;;  %v5087_v13 = vmax.f32 %v5055_v10, 0.0  ;;  %v3741_v10 = vadd.f32 %v9454_v58, %v3351_v42  ;;  %v3349_v16 = vadd.f32 %v9465_v7, %v9363_v34 }
 0x1f2   : > { %v4874_v50 = vpop.f32.mrf.mxu0  ;;  %v5090_v4 = vmax.f32 %v5058_v1, 0.0  ;;  %v5056_v48 = vadd.f32 %v9549_v57, %v5020_v6  ;;  %v4986_v40 = vadd.f32 %v4871_v20, %v4488_v36  ;;  %v4491_v18 = vadd.f32 %v6699_v37, %v3737_v39 }
 0x1f3   : > { %v5025_v41 = vmul.f32 %v9545_v31, %v4988_v49  ;;  %v4376_v52 = vpop.f32.mrf.mxu1 }
 0x1f4   : > { %v6750_v24 = vpop.f32.mrf.mxu0  ;;  %v6037_v33 = vpack.c.bf16 %v5090_v4, %v5089_v60  ;;  %v5088_v55 = vmax.f32 %v5056_v48, 0.0  ;;  %v5023_v38 = vmul.f32 %v9545_v31, %v4986_v40  ;;  %v4989_v20 = vadd.f32 %v6747_v54, %v4491_v18 }
 0x1f5   : > { %v5061_v22 = vadd.f32 %v9549_v57, %v5025_v41  ;;  %v4489_v47 = vadd.f32 %v4376_v52, %v3735_v0  ;;  %v6702_v14 = vpop.f32.mrf.mxu1 }
 0x1f6   : > { %v4887_v61 = vpop.f32.mrf.mxu0  ;;  %6109 = vst [vmem:[%s9574_s8 + $0x8] sm:$0xff] %v6037_v33   ;;  %v6032_v3 = vpack.c.bf16 %v5088_v55, %v5087_v13  ;;  %v5026_v28 = vmul.f32 %v9545_v31, %v4989_v20  ;;  %v4494_v29 = vadd.f32 %v6702_v14, %v9456_v25  ;;  %v5059_v54 = vadd.f32 %v9549_v57, %v5023_v38 }
 0x1f7   : > { %v4987_v32 = vadd.f32 %v4874_v50, %v4489_v47  ;;  %v4389_v39 = vpop.f32.mrf.mxu1  ;;  %v5093_v49 = vmax.f32 %v5061_v22, 0.0  ;;  %v3739_v50 = vadd.f32 %v9459_v26, %v3349_v16 }
 0x1f8   : > { %v6751_v8 = vpop.f32.mrf.mxu0  ;;  %6033 = vst [vmem:[%s9574_s8] sm:$0xff] %v6032_v3   ;;  %v5062_v1 = vadd.f32 %v9549_v57, %v5026_v28  ;;  %v4992_v6 = vadd.f32 %v6750_v24, %v4494_v29  ;;  %v4492_v36 = vadd.f32 %v4389_v39, %v9463_v51  ;;  %v3355_v51 = vadd.f32 %v9475_v35, %v9372_v2 }
 0x1f9   : > { %v5024_v25 = vmul.f32 %v9545_v31, %v4987_v32  ;;  %v6703_v37 = vpop.f32.mrf.mxu1  ;;  %v5091_v24 = vmax.f32 %v5059_v54, 0.0  ;;  %v3353_v2 = vadd.f32 %v9479_v30, %v9375_v17 }
 0x1fa   : > { %v4890_v60 = vpop.f32.mrf.mxu0  ;;  %v5094_v4 = vmax.f32 %v5062_v1, 0.0  ;;  %v5029_v58 = vmul.f32 %v9545_v31, %v4992_v6  ;;  %v4990_v48 = vadd.f32 %v4887_v61, %v4492_v36  ;;  %v4495_v34 = vadd.f32 %v6703_v37, %v3741_v10 }
 0x1fb   : > { %v5060_v40 = vadd.f32 %v9549_v57, %v5024_v25  ;;  %v4392_v18 = vpop.f32.mrf.mxu1  ;;  %v3745_v14 = vadd.f32 %v9468_v45, %v3355_v51  ;;  %v3743_v1 = vadd.f32 %v9473_v46, %v3353_v2 }
 0x1fc   : > { %v6754_v7 = vpop.f32.mrf.mxu0  ;;  %v6047_v0 = vpack.c.bf16 %v5094_v4, %v5093_v49  ;;  %v4993_v42 = vadd.f32 %v6751_v8, %v4495_v34  ;;  %v5065_v52 = vadd.f32 %v9549_v57, %v5029_v58  ;;  %v5027_v33 = vmul.f32 %v9545_v31, %v4990_v48 }
 0x1fd   : > { %v5092_v41 = vmax.f32 %v5060_v40, 0.0  ;;  %v4493_v55 = vadd.f32 %v4392_v18, %v3739_v50  ;;  %v6706_v38 = vpop.f32.mrf.mxu1  ;;  %v3357_v40 = vadd.f32 %v9493_v5, %v9387_v11 }
 0x1fe   : > { %v4903_v13 = vpop.f32.mrf.mxu0  ;;  %6111 = vst [vmem:[%s9574_s8 + $0x18] sm:$0xff] %v6047_v0   ;;  %v5030_v26 = vmul.f32 %v9545_v31, %v4993_v42  ;;  %v4498_v20 = vadd.f32 %v6706_v38, %v9470_v23  ;;  %v5097_v10 = vmax.f32 %v5065_v52, 0.0  ;;  %v5063_v16 = vadd.f32 %v9549_v57, %v5027_v33 }
 0x1ff   : > { %v6042_v35 = vpack.c.bf16 %v5092_v41, %v5091_v24  ;;  %v4991_v22 = vadd.f32 %v4890_v60, %v4493_v55  ;;  %v4405_v47 = vpop.f32.mrf.mxu1 }
 0x200   : > { %v6755_v61 = vpop.f32.mrf.mxu0  ;;  %v5066_v3 = vadd.f32 %v9549_v57, %v5030_v26  ;;  %v4996_v28 = vadd.f32 %v6754_v7, %v4498_v20  ;;  %v4496_v29 = vadd.f32 %v4405_v47, %v9477_v9  ;;  %v3359_v9 = vadd.f32 %v9489_v63, %v9384_v44 }
 0x201   : > { %6110 = vst [vmem:[%s9574_s8 + $0x10] sm:$0xff] %v6042_v35   ;;  %v5028_v23 = vmul.f32 %v9545_v31, %v4991_v22  ;;  %v6707_v32 = vpop.f32.mrf.mxu1  ;;  %v5095_v4 = vmax.f32 %v5063_v16, 0.0  ;;  %v3747_v20 = vadd.f32 %v9487_v53, %v3357_v40 }
 0x202   : > { %v4906_v8 = vpop.f32.mrf.mxu0  ;;  %v5098_v39 = vmax.f32 %v5066_v3, 0.0  ;;  %v5033_v17 = vmul.f32 %v9545_v31, %v4996_v28  ;;  %v4994_v30 = vadd.f32 %v4903_v13, %v4496_v29  ;;  %v4499_v54 = vadd.f32 %v6707_v32, %v3745_v14 }
 0x203   : > { %v5064_v6 = vadd.f32 %v9549_v57, %v5028_v23  ;;  %v4408_v36 = vpop.f32.mrf.mxu1  ;;  %v3749_v50 = vadd.f32 %v9482_v15, %v3359_v9  ;;  %v9888_v9 = vld [vmem:[#allocation17_spill] sm:$0xff] }
 0x204   : > { %v6057_v60 = vpack.c.bf16 %v5098_v39, %v5097_v10  ;;  %v5031_v49 = vmul.f32 %v9545_v31, %v4994_v30  ;;  %v4997_v25 = vadd.f32 %v6755_v61, %v4499_v54  ;;  %v5069_v48 = vadd.f32 %v9549_v57, %v5033_v17  ;;  %v9887_v30 = vld [vmem:[#allocation13_spill] sm:$0xff] }
 0x205   : > { %v6758_v45 = vpop.f32.mrf.mxu0  ;;  %v5096_v58 = vmax.f32 %v5064_v6, 0.0  ;;  %v4497_v34 = vadd.f32 %v4408_v36, %v3743_v1  ;;  %v6710_v7 = vpop.f32.mrf.mxu1 }
 0x206   : > { %6113 = vst [vmem:[%s9574_s8 + $0x28] sm:$0xff] %v6057_v60   ;;  %v5034_v46 = vmul.f32 %v9545_v31, %v4997_v25  ;;  %v4502_v44 = vadd.f32 %v6710_v7, %v9484_v21  ;;  %v5067_v0 = vadd.f32 %v9549_v57, %v5031_v49  ;;  %v5101_v33 = vmax.f32 %v5069_v48, 0.0 }
 0x207   : > { %v4919_v37 = vpop.f32.mrf.mxu0  ;;  %v6052_v18 = vpack.c.bf16 %v5096_v58, %v5095_v4  ;;  %v4995_v51 = vadd.f32 %v4906_v8, %v4497_v34  ;;  %v4421_v24 = vpop.f32.mrf.mxu1  ;;  %v9889_v34 = vld [vmem:[#allocation15_spill] sm:$0xff] }
 0x208   : > { %v5070_v42 = vadd.f32 %v9549_v57, %v5034_v46  ;;  %v5000_v13 = vadd.f32 %v6758_v45, %v4502_v44  ;;  %v4500_v41 = vadd.f32 %v4421_v24, %v9491_v59  ;;  %v3363_v59 = vadd.f32 %v9503_v12, %v9396_v27  ;;  %v9886_v27 = vld [vmem:[#allocation20_spill] sm:$0xff]  ;;  %v9890_v46 = vld [vmem:[#allocation3_spill] sm:$0xff] }
 0x209   : > { %v6759_v63 = vpop.f32.mrf.mxu0  ;;  %6112 = vst [vmem:[%s9574_s8 + $0x20] sm:$0xff] %v6052_v18   ;;  %v5032_v21 = vmul.f32 %v9545_v31, %v4995_v51  ;;  %v6711_v55 = vpop.f32.mrf.mxu1  ;;  %v5099_v35 = vmax.f32 %v5067_v0, 0.0  ;;  %v3361_v12 = vadd.f32 %v9886_v27, %v9399_v43  ;;  %v3367_v44 = vadd.f32 %v9517_v19, %v9890_v46 }
 0x20a   : > { %v5102_v15 = vmax.f32 %v5070_v42, 0.0  ;;  %v5037_v38 = vmul.f32 %v9545_v31, %v5000_v13  ;;  %v4998_v11 = vadd.f32 %v4919_v37, %v4500_v41  ;;  %v4503_v5 = vadd.f32 %v6711_v55, %v3749_v50  ;;  %v9891_v55 = vld [vmem:[#allocation2_spill] sm:$0xff] }
 0x20b   : > { %v4922_v52 = vpop.f32.mrf.mxu0  ;;  %v5068_v61 = vadd.f32 %v9549_v57, %v5032_v21  ;;  %v4424_v2 = vpop.f32.mrf.mxu1  ;;  %v3753_v54 = vadd.f32 %v9887_v30, %v3363_v59  ;;  %v3751_v7 = vadd.f32 %v9889_v34, %v3361_v12 }
 0x20c   : > { %v6067_v22 = vpack.c.bf16 %v5102_v15, %v5101_v33  ;;  %v5001_v47 = vadd.f32 %v6759_v63, %v4503_v5  ;;  %v5073_v28 = vadd.f32 %v9549_v57, %v5037_v38  ;;  %v5035_v29 = vmul.f32 %v9545_v31, %v4998_v11  ;;  %v9892_v38 = vld [vmem:[#allocation7_spill] sm:$0xff]  ;;  %v9893_v11 = vld [vmem:[#allocation6_spill] sm:$0xff] }
 0x20d   : > { %v6762_v26 = vpop.f32.mrf.mxu0  ;;  %v5100_v3 = vmax.f32 %v5068_v61, 0.0  ;;  %v4501_v8 = vadd.f32 %v4424_v2, %v3747_v20  ;;  %v6714_v10 = vpop.f32.mrf.mxu1  ;;  %v3757_v15 = vadd.f32 %v9891_v55, %v3367_v44  ;;  %v3365_v5 = vadd.f32 %v9893_v11, %v9892_v38  ;;  %v9901_v44 = vld [vmem:[#allocation8_spill] sm:$0xff]  ;;  %v9903_v55 = vld [vmem:[#allocation11_spill] sm:$0xff] }
 0x20e   : > { %6115 = vst [vmem:[%s9574_s8 + $0x38] sm:$0xff] %v6067_v22   ;;  %v5038_v53 = vmul.f32 %v9545_v31, %v5001_v47  ;;  %v4506_v16 = vadd.f32 %v6714_v10, %v9498_v56  ;;  %v5105_v60 = vmax.f32 %v5073_v28, 0.0  ;;  %v5071_v49 = vadd.f32 %v9549_v57, %v5035_v29  ;;  %v9894_v22 = vld [vmem:[#allocation4_spill] sm:$0xff] }
 0x20f   : > { %v4935_v14 = vpop.f32.mrf.mxu0  ;;  %v6062_v32 = vpack.c.bf16 %v5100_v3, %v5099_v35  ;;  %v4999_v39 = vadd.f32 %v4922_v52, %v4501_v8  ;;  %v4437_v17 = vpop.f32.mrf.mxu1 }
 0x210   : > { %v5074_v45 = vadd.f32 %v9549_v57, %v5038_v53  ;;  %v5004_v1 = vadd.f32 %v6762_v26, %v4506_v16  ;;  %v4504_v6 = vadd.f32 %v4437_v17, %v9888_v9  ;;  %v5103_v0 = vmax.f32 %v5071_v49, 0.0  ;;  %v9897_v17 = vld [vmem:[#allocation12_spill] sm:$0xff] }
 0x211   : > { %v6763_v23 = vpop.f32.mrf.mxu0  ;;  %6114 = vst [vmem:[%s9574_s8 + $0x30] sm:$0xff] %v6062_v32   ;;  %v5036_v56 = vmul.f32 %v9545_v31, %v4999_v39  ;;  %v6715_v25 = vpop.f32.mrf.mxu1  ;;  %v9896_v39 = vld [vmem:[#allocation9_spill] sm:$0xff] }
 0x212   : > { %v5106_v37 = vmax.f32 %v5074_v45, 0.0  ;;  %v5041_v43 = vmul.f32 %v9545_v31, %v5004_v1  ;;  %v5002_v4 = vadd.f32 %v4935_v14, %v4504_v6  ;;  %v4507_v58 = vadd.f32 %v6715_v25, %v3753_v54  ;;  %v9898_v25 = vld [vmem:[#allocation10_spill] sm:$0xff] }
 0x213   : > { %v4938_v36 = vpop.f32.mrf.mxu0  ;;  %v5072_v63 = vadd.f32 %v9549_v57, %v5036_v56  ;;  %v4440_v50 = vpop.f32.mrf.mxu1  ;;  %v3371_v30 = vadd.f32 %v9897_v17, %v9896_v39 }
 0x214   : > { %v6077_v40 = vpack.c.bf16 %v5106_v37, %v5105_v60  ;;  %v5039_v18 = vmul.f32 %v9545_v31, %v5002_v4  ;;  %v5005_v51 = vadd.f32 %v6763_v23, %v4507_v58  ;;  %v5077_v13 = vadd.f32 %v9549_v57, %v5041_v43  ;;  %v9895_v23 = vld [vmem:[#allocation5_spill] sm:$0xff]  ;;  %v9899_v4 = vld [vmem:[#allocation18_spill] sm:$0xff]  ;;  %v9900_v58 = vld [vmem:[#allocation16_spill] sm:$0xff] }
 0x215   : > { %v6766_v48 = vpop.f32.mrf.mxu0  ;;  %v5104_v42 = vmax.f32 %v5072_v63, 0.0  ;;  %v4505_v41 = vadd.f32 %v4440_v50, %v3751_v7  ;;  %v6718_v52 = vpop.f32.mrf.mxu1  ;;  %v3755_v27 = vadd.f32 %v9895_v23, %v3365_v5  ;;  %v3761_v63 = vadd.f32 %v9901_v44, %v3371_v30 }
 0x216   : > { %6117 = vst [vmem:[%s9574_s8 + $0x48] sm:$0xff] %v6077_v40   ;;  %v5042_v33 = vmul.f32 %v9545_v31, %v5005_v51  ;;  %v4510_v19 = vadd.f32 %v6718_v52, %v9512_v62  ;;  %v5075_v2 = vadd.f32 %v9549_v57, %v5039_v18  ;;  %v5109_v3 = vmax.f32 %v5077_v13, 0.0  ;;  %v9902_v18 = vld [vmem:[#allocation14_spill] sm:$0xff] }
 0x217   : > { %v4951_v24 = vpop.f32.mrf.mxu0  ;;  %v6072_v26 = vpack.c.bf16 %v5104_v42, %v5103_v0  ;;  %v5003_v20 = vadd.f32 %v4938_v36, %v4505_v41  ;;  %v4453_v61 = vpop.f32.mrf.mxu1 }
 0x218   : > { %v5078_v59 = vadd.f32 %v9549_v57, %v5042_v33  ;;  %v5008_v35 = vadd.f32 %v6766_v48, %v4510_v19  ;;  %v4508_v47 = vadd.f32 %v4453_v61, %v9894_v22  ;;  %v5107_v54 = vmax.f32 %v5075_v2, 0.0 }
 0x219   : > { %v6767_v21 = vpop.f32.mrf.mxu0  ;;  %6116 = vst [vmem:[%s9574_s8 + $0x40] sm:$0xff] %v6072_v26   ;;  %v5040_v62 = vmul.f32 %v9545_v31, %v5003_v20  ;;  %v6719_v28 = vpop.f32.mrf.mxu1  ;;  %v3369_v48 = vadd.f32 %v9900_v58, %v9899_v4 }
 0x21a   : > { %v5110_v29 = vmax.f32 %v5078_v59, 0.0  ;;  %v5045_v8 = vmul.f32 %v9545_v31, %v5008_v35  ;;  %v5006_v10 = vadd.f32 %v4951_v24, %v4508_v47  ;;  %v4511_v53 = vadd.f32 %v6719_v28, %v3757_v15 }
 0x21b   : > { %v4954_v14 = vpop.f32.mrf.mxu0  ;;  %v5076_v12 = vadd.f32 %v9549_v57, %v5040_v62  ;;  %v4456_v32 = vpop.f32.mrf.mxu1  ;;  %v3759_v15 = vadd.f32 %v9903_v55, %v3369_v48 }
 0x21c   : > { %v6087_v45 = vpack.c.bf16 %v5110_v29, %v5109_v3  ;;  %v5009_v1 = vadd.f32 %v6767_v21, %v4511_v53  ;;  %v5081_v6 = vadd.f32 %v9549_v57, %v5045_v8  ;;  %v5043_v36 = vmul.f32 %v9545_v31, %v5006_v10 }
 0x21d   : > { %v6770_v16 = vpop.f32.mrf.mxu0  ;;  %v5108_v9 = vmax.f32 %v5076_v12, 0.0  ;;  %v4509_v60 = vadd.f32 %v4456_v32, %v3755_v27  ;;  %v6722_v49 = vpop.f32.mrf.mxu1 }
 0x21e   : > { %6119 = vst [vmem:[%s9574_s8 + $0x58] sm:$0xff] %v6087_v45   ;;  %v5046_v56 = vmul.f32 %v9545_v31, %v5009_v1  ;;  %v4514_v37 = vadd.f32 %v6722_v49, %v9898_v25  ;;  %v5113_v24 = vmax.f32 %v5081_v6, 0.0  ;;  %v5079_v0 = vadd.f32 %v9549_v57, %v5043_v36 }
 0x21f   : > { %v4967_v43 = vpop.f32.mrf.mxu0  ;;  %v6082_v34 = vpack.c.bf16 %v5108_v9, %v5107_v54  ;;  %v5007_v7 = vadd.f32 %v4954_v14, %v4509_v60  ;;  %v4469_v46 = vpop.f32.mrf.mxu1 }
 0x220   : > { %v5082_v50 = vadd.f32 %v9549_v57, %v5046_v56  ;;  %v5012_v40 = vadd.f32 %v6770_v16, %v4514_v37  ;;  %v4512_v51 = vadd.f32 %v4469_v46, %v9902_v18  ;;  %v5111_v20 = vmax.f32 %v5079_v0, 0.0 }
 0x221   : > { %6118 = vst [vmem:[%s9574_s8 + $0x50] sm:$0xff] %v6082_v34   ;;  %v5044_v42 = vmul.f32 %v9545_v31, %v5007_v7  ;;  %v6723_v13 = vpop.f32.mrf.mxu1  ;;  %v6771_v21 = vpop.f32.mrf.mxu0 }
 0x222   : > { %v5114_v41 = vmax.f32 %v5082_v50, 0.0  ;;  %v5049_v52 = vmul.f32 %v9545_v31, %v5012_v40  ;;  %v5010_v33 = vadd.f32 %v4967_v43, %v4512_v51  ;;  %v4515_v19 = vadd.f32 %v6723_v13, %v3761_v63 }
 0x223   : > { %v5080_v38 = vadd.f32 %v9549_v57, %v5044_v42  ;;  %v4472_v11 = vpop.f32.mrf.mxu1  ;;  %v4970_v47 = vpop.f32.mrf.mxu0 }
 0x224   : > { %v6097_v5 = vpack.c.bf16 %v5114_v41, %v5113_v24  ;;  %v5013_v26 = vadd.f32 %v6771_v21, %v4515_v19  ;;  %v5047_v2 = vmul.f32 %v9545_v31, %v5010_v33  ;;  %v4513_v59 = vadd.f32 %v4472_v11, %v3759_v15 }
 0x225   : > { %v5112_v61 = vmax.f32 %v5080_v38, 0.0  ;;  %v5085_v35 = vadd.f32 %v9549_v57, %v5049_v52 }
 0x226   : > { %6121 = vst [vmem:[%s9574_s8 + $0x68] sm:$0xff] %v6097_v5   ;;  %v5050_v22 = vmul.f32 %v9545_v31, %v5013_v26  ;;  %v5011_v3 = vadd.f32 %v4970_v47, %v4513_v59  ;;  %v5083_v28 = vadd.f32 %v9549_v57, %v5047_v2 }
 0x227   : > { %v6092_v14 = vpack.c.bf16 %v5112_v61, %v5111_v20  ;;  %v5117_v8 = vmax.f32 %v5085_v35, 0.0 }
 0x228   : > { %v5086_v62 = vadd.f32 %v9549_v57, %v5050_v22  ;;  %v5048_v29 = vmul.f32 %v9545_v31, %v5011_v3  ;;  %v5115_v23 = vmax.f32 %v5083_v28, 0.0 }
 0x229   : > { %6120 = vst [vmem:[%s9574_s8 + $0x60] sm:$0xff] %v6092_v14  }
 0x22a   : > { %v5118_v10 = vmax.f32 %v5086_v62, 0.0  ;;  %v5084_v53 = vadd.f32 %v9549_v57, %v5048_v29 }
 0x22c   : > { %v6107_v16 = vpack.c.bf16 %v5118_v10, %v5117_v8  ;;  %v5116_v27 = vmax.f32 %v5084_v53, 0.0 }
 0x22e   : > { %6123 = vst [vmem:[%s9574_s8 + $0x78] sm:$0xff] %v6107_v16   ;;  %v6102_v12 = vpack.c.bf16 %v5116_v27, %v5115_v23 }
 0x230   : > { %6122 = vst [vmem:[%s9574_s8 + $0x70] sm:$0xff] %v6102_v12  }
 0x231 PF: > { %s13_s14 = sadd.s32 1, %s6964_s14   ;;  %s9904_s12 = smov %s6960_s13 }
 0x232   : > { %p10_p5 = scmp.ge.s32.totalorder %s13_s14, 4   ;;  %s9905_s13 = smov %s9907_s15 }
 0x234   :  { %12 = sbr.rel (!%p10_p5) target bundleno = 2 (0x2), region = 73 }

</bundles_post_ra>
